<compile_context>
chip_gen: v7x
topology: tpu7x:2x2x1
jax: 0.10.0
libtpu: 0.0.40
codegen_flags: <defaults>
</compile_context>

<pallas_src>
import functools

import jax
import jax.numpy as jnp
from jax.experimental import pallas as pl
from jax.experimental.pallas import tpu as pltpu


def _round_up(x, m):
    return (x + m - 1) // m * m


# ---------------------------------------------------------------------------
# Pallas kernels
# ---------------------------------------------------------------------------
def _matmul_kernel(act, has_bias, a_ref, b_ref, *rest):
    """bf16 x bf16 -> f32 tiled matmul, accumulating into the output block.

    Optional fused epilogue on the last K step: + bias, relu / tanh.
    """
    if has_bias:
        bias_ref, o_ref = rest
    else:
        (o_ref,) = rest

    k = pl.program_id(2)

    @pl.when(k == 0)
    def _():
        o_ref[...] = jnp.zeros_like(o_ref)

    o_ref[...] += jnp.dot(a_ref[...], b_ref[...],
                          preferred_element_type=jnp.float32)

    if has_bias or act != "none":
        @pl.when(k == pl.num_programs(2) - 1)
        def _():
            y = o_ref[...]
            if has_bias:
                y = y + bias_ref[...]
            if act == "relu":
                y = jnp.maximum(y, 0.0)
            elif act == "tanh":
                y = jnp.tanh(y)
            o_ref[...] = y


def matmul_bias_act(a, b, bias=None, act="none", tm=256, tn=256, tk=512):
    """(M,K) @ (K,N) -> (M,N) f32 with optional fused bias / activation.

    A/B are cast to bf16 (MXU-native); accumulation stays f32.
    Tiles adapt to the actual problem size; only the remainder is zero-padded.
    """
    M, K = a.shape
    K2, N = b.shape
    assert K == K2

    Mp8 = _round_up(M, 8)
    tm = min(tm, Mp8)
    Mp = _round_up(M, tm)
    Np = _round_up(N, 128)
    tn = tn if Np % tn == 0 else 128
    Kp = _round_up(K, 128)
    tk = tk if Kp % tk == 0 else (256 if Kp % 256 == 0 else 128)

    ap = jnp.pad(a.astype(jnp.bfloat16), ((0, Mp - M), (0, Kp - K)))
    bp = jnp.pad(b.astype(jnp.bfloat16), ((0, Kp - K), (0, Np - N)))

    has_bias = bias is not None
    ins = [ap, bp]
    in_specs = [pl.BlockSpec((tm, tk), lambda i, j, k: (i, k)),
                pl.BlockSpec((tk, tn), lambda i, j, k: (k, j))]
    if has_bias:
        bias_p = jnp.pad(bias.astype(jnp.float32).reshape(1, N),
                         ((0, 0), (0, Np - N)))
        ins.append(bias_p)
        in_specs.append(pl.BlockSpec((1, tn), lambda i, j, k: (0, j)))

    out = pl.pallas_call(
        functools.partial(_matmul_kernel, act, has_bias),
        out_shape=jax.ShapeDtypeStruct((Mp, Np), jnp.float32),
        grid=(Mp // tm, Np // tn, Kp // tk),
        in_specs=in_specs,
        out_specs=pl.BlockSpec((tm, tn), lambda i, j, k: (i, j)),
        compiler_params=pltpu.CompilerParams(
            dimension_semantics=("parallel", "parallel", "arbitrary")),
    )(*ins)
    return out[:M, :N]


def _bn_stats_kernel(x_ref, s_ref, ss_ref):
    """One-pass per-channel sum and sum-of-squares accumulated over row tiles."""
    @pl.when(pl.program_id(0) == 0)
    def _():
        s_ref[...] = jnp.zeros_like(s_ref)
        ss_ref[...] = jnp.zeros_like(ss_ref)

    x = x_ref[...]
    s_ref[...] += jnp.sum(x, axis=0, keepdims=True)
    ss_ref[...] += jnp.sum(x * x, axis=0, keepdims=True)


def _affine_kernel(act, has_res, x_ref, s_ref, b_ref, *rest):
    """y = act(x * scale + shift) (+ residual), per-channel scale/shift."""
    if has_res:
        r_ref, o_ref = rest
    else:
        (o_ref,) = rest
    y = x_ref[...] * s_ref[...] + b_ref[...]
    if act == "relu":
        y = jnp.maximum(y, 0.0)
    elif act == "tanh":
        y = jnp.tanh(y)
    if has_res:
        y = y + r_ref[...]
    o_ref[...] = y


def pallas_bn_stats(x2d, bm=512):
    """x2d: (M, C) f32 -> (sum, sumsq) each (C,) f32, one pass over x."""
    M, C = x2d.shape
    Cp = _round_up(C, 128)
    bm = min(bm, _round_up(M, 8))
    Mp = _round_up(M, bm)
    xp = jnp.pad(x2d, ((0, Mp - M), (0, Cp - C)))
    s, ss = pl.pallas_call(
        _bn_stats_kernel,
        out_shape=(jax.ShapeDtypeStruct((1, Cp), jnp.float32),
                   jax.ShapeDtypeStruct((1, Cp), jnp.float32)),
        grid=(Mp // bm,),
        in_specs=[pl.BlockSpec((bm, Cp), lambda i: (i, 0))],
        out_specs=(pl.BlockSpec((1, Cp), lambda i: (0, 0)),
                   pl.BlockSpec((1, Cp), lambda i: (0, 0))),
        compiler_params=pltpu.CompilerParams(
            dimension_semantics=("arbitrary",)),
    )(xp)
    return s[0, :C], ss[0, :C]


def pallas_affine_act(x, scale, shift, act="none", residual=None, bm=512):
    """y = act(x * scale + shift) (+ residual); x: (M, C), scale/shift: (C,)."""
    M, C = x.shape
    Cp = _round_up(C, 128)
    bm = min(bm, _round_up(M, 8))
    Mp = _round_up(M, bm)
    xp = jnp.pad(x, ((0, Mp - M), (0, Cp - C)))
    sp = jnp.pad(scale.astype(jnp.float32).reshape(1, C), ((0, 0), (0, Cp - C)))
    bp = jnp.pad(shift.astype(jnp.float32).reshape(1, C), ((0, 0), (0, Cp - C)))

    has_res = residual is not None
    ins = [xp, sp, bp]
    in_specs = [pl.BlockSpec((bm, Cp), lambda i: (i, 0)),
                pl.BlockSpec((1, Cp), lambda i: (0, 0)),
                pl.BlockSpec((1, Cp), lambda i: (0, 0))]
    if has_res:
        rp = jnp.pad(residual, ((0, Mp - M), (0, Cp - C)))
        ins.append(rp)
        in_specs.append(pl.BlockSpec((bm, Cp), lambda i: (i, 0)))

    out = pl.pallas_call(
        functools.partial(_affine_kernel, act, has_res),
        out_shape=jax.ShapeDtypeStruct((Mp, Cp), jnp.float32),
        grid=(Mp // bm,),
        in_specs=in_specs,
        out_specs=pl.BlockSpec((bm, Cp), lambda i: (i, 0)),
        compiler_params=pltpu.CompilerParams(
            dimension_semantics=("parallel",)),
    )(*ins)
    return out[:M, :C]


# ---------------------------------------------------------------------------
# Conv / BN building blocks (glue = padding / im2col layout; compute = Pallas)
# ---------------------------------------------------------------------------
def conv2d(x, w, bias=None, stride=1, pad=0, pad_mode="zero", act="none"):
    """x: NHWC, w: PyTorch layout (Cout, Cin, kh, kw), optional fused bias/act."""
    Cout, Cin, kh, kw = w.shape
    x = x.astype(jnp.bfloat16)
    if isinstance(pad, int):
        pad = ((pad, pad), (pad, pad))
    if any(p for pp in pad for p in pp):
        mode = "reflect" if pad_mode == "reflect" else "constant"
        x = jnp.pad(x, ((0, 0), pad[0], pad[1], (0, 0)), mode=mode)
    N, H, W, C = x.shape
    Ho = (H - kh) // stride + 1
    Wo = (W - kw) // stride + 1
    # im2col built once, already bf16, directly consumed as the matmul A operand.
    # TODO(synk): direct conv kernel (overlapping input windows need
    # Element-indexed blocks or manual DMA) would avoid this kh*kw blow-up.
    cols = [x[:, i:i + stride * Ho:stride, j:j + stride * Wo:stride, :]
            for i in range(kh) for j in range(kw)]
    a = jnp.stack(cols, axis=3).reshape(N * Ho * Wo, kh * kw * Cin)
    wm = jnp.transpose(w, (2, 3, 1, 0)).reshape(kh * kw * Cin, Cout)
    y = matmul_bias_act(a, wm, bias=bias, act=act)
    return y.reshape(N, Ho, Wo, Cout)


def conv_transpose2d(x, w):
    """ConvTranspose2d k=4, s=2, p=1 via 4-phase sub-pixel decomposition.

    w: PyTorch layout (Cin, Cout, 4, 4).  Bias is omitted because every
    upsample_unit feeds a train-mode BatchNorm which absorbs it exactly.
    """
    Cin, Cout, kh, kw = w.shape
    assert kh == 4 and kw == 4
    N, H, W, _ = x.shape
    x = x.astype(jnp.bfloat16)

    TAPS = {0: [3, 1], 1: [2, 0]}      # kernel taps per output phase (corr. order)
    PAD = {0: (1, 0), 1: (0, 1)}       # phase -> (pad_before, pad_after)

    def phase(ph, pw):
        ww = w[:, :, TAPS[ph], :][:, :, :, TAPS[pw]]     # (Cin, Cout, 2, 2)
        we = jnp.transpose(ww, (1, 0, 2, 3))             # (Cout, Cin, 2, 2)
        return conv2d(x, we, bias=None, stride=1, pad=(PAD[ph], PAD[pw]))

    p00, p01 = phase(0, 0), phase(0, 1)
    p10, p11 = phase(1, 0), phase(1, 1)
    row_e = jnp.stack([p00, p01], axis=3).reshape(N, H, 2 * W, Cout)
    row_o = jnp.stack([p10, p11], axis=3).reshape(N, H, 2 * W, Cout)
    return jnp.stack([row_e, row_o], axis=2).reshape(N, 2 * H, 2 * W, Cout)


def bn_act(x, gamma, beta, act="none", residual=None, eps=1e-5):
    """BatchNorm2d (training-mode batch stats) + activation (+ residual add)."""
    N, H, W, C = x.shape
    M = N * H * W
    x2 = x.reshape(M, C)
    s, ss = pallas_bn_stats(x2)
    mean = s / M
    var = jnp.maximum(ss / M - mean * mean, 0.0)
    scale = gamma * jax.lax.rsqrt(var + eps)
    shift = beta - mean * scale
    r2 = residual.reshape(M, C) if residual is not None else None
    y = pallas_affine_act(x2, scale, shift, act=act, residual=r2)
    return y.reshape(N, H, W, C)


# ---------------------------------------------------------------------------
# Parameter construction (deterministic, synthetic)
# ---------------------------------------------------------------------------
def _conv_p(key, cout, cin, kh, kw):
    k1, k2 = jax.random.split(key)
    return (jax.random.normal(k1, (cout, cin, kh, kw), jnp.float32) * 0.05,
            jax.random.normal(k2, (cout,), jnp.float32) * 0.05)


def _convT_p(key, cin, cout, kh, kw):
    k1, k2 = jax.random.split(key)
    return (jax.random.normal(k1, (cin, cout, kh, kw), jnp.float32) * 0.05,
            jax.random.normal(k2, (cout,), jnp.float32) * 0.05)


def _bn_p(key, c):
    k1, k2 = jax.random.split(key)
    return (1.0 + jax.random.normal(k1, (c,), jnp.float32) * 0.05,
            jax.random.normal(k2, (c,), jnp.float32) * 0.05)


def build_params(key, input_nc, output_nc, ngf, n_downsampling=4, n_blocks=9):
    keys = iter(jax.random.split(key, 256))
    p = {}
    p["init_conv"] = _conv_p(next(keys), ngf, input_nc, 7, 7)
    p["init_bn"] = _bn_p(next(keys), ngf)
    for i in range(n_downsampling):
        mult = 2 ** i
        p[f"down{i}_conv"] = _conv_p(next(keys), ngf * mult * 2, ngf * mult, 3, 3)
        p[f"down{i}_bn"] = _bn_p(next(keys), ngf * mult * 2)
    dim = ngf * 2 ** n_downsampling
    for i in range(n_blocks):
        p[f"res{i}_conv1"] = _conv_p(next(keys), dim, dim, 3, 3)
        p[f"res{i}_bn1"] = _bn_p(next(keys), dim)
        p[f"res{i}_conv2"] = _conv_p(next(keys), dim, dim, 3, 3)
        p[f"res{i}_bn2"] = _bn_p(next(keys), dim)
    up_dims = []
    m = 2 ** (n_downsampling - 0); up_dims.append((ngf * m,     ngf * m // 2))
    m = 2 ** (n_downsampling - 1); up_dims.append((ngf * m * 2, ngf * m // 2))
    m = 2 ** (n_downsampling - 2); up_dims.append((ngf * m * 2, ngf * m // 2))
    m = 2 ** (n_downsampling - 3); up_dims.append((ngf * m,     ngf * m // 2))
    for i, (din, dout) in enumerate(up_dims):
        p[f"up{i}_conv"] = _convT_p(next(keys), din, dout, 4, 4)
        p[f"up{i}_bn"] = _bn_p(next(keys), dout)
    p["out_conv"] = _conv_p(next(keys), output_nc, ngf, 7, 7)
    return p


# ---------------------------------------------------------------------------
# Forward pass (matches Derain_GlobalGenerator.forward)
# ---------------------------------------------------------------------------
def derain_forward(params, x_nchw, n_blocks):
    x = jnp.transpose(x_nchw, (0, 2, 3, 1)).astype(jnp.float32)  # NCHW -> NHWC

    # init_conv_unit: ReflectionPad2d(3) -> Conv7x7 -> BN -> ReLU
    # (conv bias is generated to mirror nn.Conv2d but mathematically absorbed
    #  by the train-mode BatchNorm shift, so it is not applied.)
    w, _ = params["init_conv"]
    x_init = bn_act(conv2d(x, w, None, stride=1, pad=3, pad_mode="reflect"),
                    *params["init_bn"], act="relu")

    # down0..down3: Conv3x3 s=2 p=1 -> BN -> ReLU
    d = []
    cur = x_init
    for i in range(4):
        w, _ = params[f"down{i}_conv"]
        cur = bn_act(conv2d(cur, w, None, stride=2, pad=1, pad_mode="zero"),
                     *params[f"down{i}_bn"], act="relu")
        d.append(cur)

    # ResnetBlocks: (reflect-pad conv3x3 -> BN -> ReLU -> reflect-pad conv3x3
    #                -> BN) + skip (skip add fused into the second BN kernel)
    res = d[3]
    for i in range(n_blocks):
        w1, _ = params[f"res{i}_conv1"]
        h = bn_act(conv2d(res, w1, None, stride=1, pad=1, pad_mode="reflect"),
                   *params[f"res{i}_bn1"], act="relu")
        w2, _ = params[f"res{i}_conv2"]
        res = bn_act(conv2d(h, w2, None, stride=1, pad=1, pad_mode="reflect"),
                     *params[f"res{i}_bn2"], act="none", residual=res)

    # up0 -> cat d2 -> up1 -> cat d1 -> up2 -> up3
    w, _ = params["up0_conv"]
    up0 = bn_act(conv_transpose2d(res, w), *params["up0_bn"], act="relu")
    up0 = jnp.concatenate([up0, d[2]], axis=-1)          # torch.cat(dim=1) in NHWC

    w, _ = params["up1_conv"]
    up1 = bn_act(conv_transpose2d(up0, w), *params["up1_bn"], act="relu")
    up1 = jnp.concatenate([up1, d[1]], axis=-1)

    w, _ = params["up2_conv"]
    up2 = bn_act(conv_transpose2d(up1, w), *params["up2_bn"], act="relu")

    w, _ = params["up3_conv"]
    up3 = bn_act(conv_transpose2d(up2, w), *params["up3_bn"], act="relu")

    # out_unit: ReflectionPad2d(3) -> Conv7x7 (+bias) -> Tanh, fused in epilogue
    w, b = params["out_conv"]
    out = conv2d(up3, w, b, stride=1, pad=3, pad_mode="reflect", act="tanh")

    return jnp.transpose(out, (0, 3, 1, 2))              # back to NCHW


# ---------------------------------------------------------------------------
if __name__ == "__main__":
    INPUT_NC, OUTPUT_NC = 3, 3
    NGF = 8              # small ngf (module default 64) to keep the demo fast
    N_BLOCKS = 2         # small n_blocks (module default 9)
    N, H, W = 1, 32, 32  # spatial must be divisible by 2**4 (4 downsamplings)

    key = jax.random.PRNGKey(0)
    kp, kx = jax.random.split(key)
    params = build_params(kp, INPUT_NC, OUTPUT_NC, NGF, n_blocks=N_BLOCKS)
    x = jax.random.normal(kx, (N, INPUT_NC, H, W), jnp.float32)

    fwd = jax.jit(functools.partial(derain_forward, n_blocks=N_BLOCKS))
    out = fwd(params, x)
    out = jax.block_until_ready(out)

    assert out.shape == (N, OUTPUT_NC, H, W), out.shape
    assert bool(jnp.all(jnp.isfinite(out)))
    print("KERNEL_OK")
</pallas_src>

<mosaic_0001>
module attributes {stable_mosaic.version = 11 : i64} {
  func.func @_matmul_kernel(%arg0: i32, %arg1: i32, %arg2: i32, %arg3: memref<256x256xbf16, #tpu.memory_space<vmem>>, %arg4: memref<256x128xbf16, #tpu.memory_space<vmem>>, %arg5: memref<256x128xf32, #tpu.memory_space<vmem>>) attributes {dimension_semantics = [#tpu.dimension_semantics<parallel>, #tpu.dimension_semantics<parallel>, #tpu.dimension_semantics<arbitrary>], iteration_bounds = array<i64: 4, 1, 1>, scalar_prefetch = 0 : i64, scratch_operands = 0 : i64, tpu.core_type = #tpu.core_type<tc>, window_params = [{transform_indices = @transform_0, window_bounds = array<i64: 256, 256>}, {transform_indices = @transform_1, window_bounds = array<i64: 256, 128>}, {transform_indices = @transform_2, window_bounds = array<i64: 256, 128>}]} {
    %c0_i32 = arith.constant 0 : i32
    %0 = arith.cmpi eq, %arg2, %c0_i32 : i32
    %1 = arith.extui %0 : i1 to i32
    %c0_i32_0 = arith.constant 0 : i32
    %2 = arith.cmpi ne, %1, %c0_i32_0 : i32
    scf.if %2 {
      %cst_8 = arith.constant 0.000000e+00 : f32
      %9 = vector.broadcast %cst_8 : f32 to vector<256x128xf32>
      %c0_9 = arith.constant 0 : index
      %c0_10 = arith.constant 0 : index
      %10 = vector.load %arg5[%c0_9, %c0_10] : memref<256x128xf32, #tpu.memory_space<vmem>>, vector<256x128xf32>
      tpu.vector_store %arg5[%c0_9, %c0_10], %9 {strides = array<i32>} : memref<256x128xf32, #tpu.memory_space<vmem>>, vector<256x128xf32>,
    } else {
    }
    %c0 = arith.constant 0 : index
    %c0_1 = arith.constant 0 : index
    %3 = vector.load %arg5[%c0, %c0_1] : memref<256x128xf32, #tpu.memory_space<vmem>>, vector<256x128xf32>
    %c0_2 = arith.constant 0 : index
    %c0_3 = arith.constant 0 : index
    %4 = vector.load %arg3[%c0_2, %c0_3] : memref<256x256xbf16, #tpu.memory_space<vmem>>, vector<256x256xbf16>
    %c0_4 = arith.constant 0 : index
    %c0_5 = arith.constant 0 : index
    %5 = vector.load %arg4[%c0_4, %c0_5] : memref<256x128xbf16, #tpu.memory_space<vmem>>, vector<256x128xbf16>
    %cst = arith.constant dense<0.000000e+00> : vector<256x128xf32>
    %6 = tpu.matmul %4, %5, %cst {dimension_numbers = #tpu.dot_dimension_numbers<[1], [0], [0], [1], [0, 0, 1, 1], [], []>} : vector<256x256xbf16>, vector<256x128xbf16>, vector<256x128xf32> -> vector<256x128xf32>
    %7 = arith.addf %3, %6 : vector<256x128xf32>
    %c0_6 = arith.constant 0 : index
    %c0_7 = arith.constant 0 : index
    %8 = vector.load %arg5[%c0_6, %c0_7] : memref<256x128xf32, #tpu.memory_space<vmem>>, vector<256x128xf32>
    tpu.vector_store %arg5[%c0_6, %c0_7], %7 {strides = array<i32>} : memref<256x128xf32, #tpu.memory_space<vmem>>, vector<256x128xf32>,
    return
  }
  func.func @transform_0(%arg0: i32, %arg1: i32, %arg2: i32) -> (i32, i32) {
    %c0_i32 = arith.constant 0 : i32
    return %arg0, %arg2 : i32, i32
  }
  func.func @transform_1(%arg0: i32, %arg1: i32, %arg2: i32) -> (i32, i32) {
    %c0_i32 = arith.constant 0 : i32
    return %arg2, %arg1 : i32, i32
  }
  func.func @transform_2(%arg0: i32, %arg1: i32, %arg2: i32) -> (i32, i32) {
    %c0_i32 = arith.constant 0 : i32
    return %arg0, %arg1 : i32, i32
  }
}

module attributes {stable_mosaic.version = 11 : i64} {
  func.func @_bn_stats_kernel(%arg0: i32, %arg1: memref<512x128xf32, #tpu.memory_space<vmem>>, %arg2: memref<1x128xf32, #tpu.memory_space<vmem>>, %arg3: memref<1x128xf32, #tpu.memory_space<vmem>>) attributes {dimension_semantics = [#tpu.dimension_semantics<arbitrary>], iteration_bounds = array<i64: 2>, scalar_prefetch = 0 : i64, scratch_operands = 0 : i64, tpu.core_type = #tpu.core_type<tc>, window_params = [{transform_indices = @transform_0, window_bounds = array<i64: 512, 128>}, {pipeline_mode = #tpu.pipeline_mode<synchronous>, transform_indices = @transform_1, window_bounds = array<i64: 1, 128>}, {pipeline_mode = #tpu.pipeline_mode<synchronous>, transform_indices = @transform_2, window_bounds = array<i64: 1, 128>}]} {
    %c0_i32 = arith.constant 0 : i32
    %0 = arith.cmpi eq, %arg0, %c0_i32 : i32
    %1 = arith.extui %0 : i1 to i32
    %c0_i32_0 = arith.constant 0 : i32
    %2 = arith.cmpi ne, %1, %c0_i32_0 : i32
    scf.if %2 {
      %cst_11 = arith.constant 0.000000e+00 : f32
      %15 = vector.broadcast %cst_11 : f32 to vector<1x128xf32>
      %c0_12 = arith.constant 0 : index
      %c0_13 = arith.constant 0 : index
      %16 = vector.load %arg2[%c0_12, %c0_13] : memref<1x128xf32, #tpu.memory_space<vmem>>, vector<1x128xf32>
      tpu.vector_store %arg2[%c0_12, %c0_13], %15 {strides = array<i32>} : memref<1x128xf32, #tpu.memory_space<vmem>>, vector<1x128xf32>,
      %cst_14 = arith.constant 0.000000e+00 : f32
      %17 = vector.broadcast %cst_14 : f32 to vector<1x128xf32>
      %c0_15 = arith.constant 0 : index
      %c0_16 = arith.constant 0 : index
      %18 = vector.load %arg3[%c0_15, %c0_16] : memref<1x128xf32, #tpu.memory_space<vmem>>, vector<1x128xf32>
      tpu.vector_store %arg3[%c0_15, %c0_16], %17 {strides = array<i32>} : memref<1x128xf32, #tpu.memory_space<vmem>>, vector<1x128xf32>,
    } else {
    }
    %c0 = arith.constant 0 : index
    %c0_1 = arith.constant 0 : index
    %3 = vector.load %arg1[%c0, %c0_1] : memref<512x128xf32, #tpu.memory_space<vmem>>, vector<512x128xf32>
    %c0_2 = arith.constant 0 : index
    %c0_3 = arith.constant 0 : index
    %4 = vector.load %arg2[%c0_2, %c0_3] : memref<1x128xf32, #tpu.memory_space<vmem>>, vector<1x128xf32>
    %cst = arith.constant dense<0.000000e+00> : vector<128xf32>
    %5 = vector.multi_reduction <add>, %3, %cst [0] : vector<512x128xf32> to vector<128xf32>
    %6 = vector.shape_cast %5 : vector<128xf32> to vector<1x128xf32>
    %7 = arith.addf %4, %6 : vector<1x128xf32>
    %c0_4 = arith.constant 0 : index
    %c0_5 = arith.constant 0 : index
    %8 = vector.load %arg2[%c0_4, %c0_5] : memref<1x128xf32, #tpu.memory_space<vmem>>, vector<1x128xf32>
    tpu.vector_store %arg2[%c0_4, %c0_5], %7 {strides = array<i32>} : memref<1x128xf32, #tpu.memory_space<vmem>>, vector<1x128xf32>,
    %c0_6 = arith.constant 0 : index
    %c0_7 = arith.constant 0 : index
    %9 = vector.load %arg3[%c0_6, %c0_7] : memref<1x128xf32, #tpu.memory_space<vmem>>, vector<1x128xf32>
    %10 = arith.mulf %3, %3 : vector<512x128xf32>
    %cst_8 = arith.constant dense<0.000000e+00> : vector<128xf32>
    %11 = vector.multi_reduction <add>, %10, %cst_8 [0] : vector<512x128xf32> to vector<128xf32>
    %12 = vector.shape_cast %11 : vector<128xf32> to vector<1x128xf32>
    %13 = arith.addf %9, %12 : vector<1x128xf32>
    %c0_9 = arith.constant 0 : index
    %c0_10 = arith.constant 0 : index
    %14 = vector.load %arg3[%c0_9, %c0_10] : memref<1x128xf32, #tpu.memory_space<vmem>>, vector<1x128xf32>
    tpu.vector_store %arg3[%c0_9, %c0_10], %13 {strides = array<i32>} : memref<1x128xf32, #tpu.memory_space<vmem>>, vector<1x128xf32>,
    return
  }
  func.func @transform_0(%arg0: i32) -> (i32, i32) {
    %c0_i32 = arith.constant 0 : i32
    %c0_i32_0 = arith.constant 0 : i32
    return %arg0, %c0_i32 : i32, i32
  }
  func.func @transform_1(%arg0: i32) -> (i32, i32) {
    %c0_i32 = arith.constant 0 : i32
    %c0_i32_0 = arith.constant 0 : i32
    %c0_i32_1 = arith.constant 0 : i32
    return %c0_i32, %c0_i32_0 : i32, i32
  }
  func.func @transform_2(%arg0: i32) -> (i32, i32) {
    %c0_i32 = arith.constant 0 : i32
    %c0_i32_0 = arith.constant 0 : i32
    %c0_i32_1 = arith.constant 0 : i32
    return %c0_i32, %c0_i32_0 : i32, i32
  }
}

module attributes {stable_mosaic.version = 11 : i64} {
  func.func @_affine_kernel(%arg0: i32, %arg1: memref<512x128xf32, #tpu.memory_space<vmem>>, %arg2: memref<1x128xf32, #tpu.memory_space<vmem>>, %arg3: memref<1x128xf32, #tpu.memory_space<vmem>>, %arg4: memref<512x128xf32, #tpu.memory_space<vmem>>) attributes {dimension_semantics = [#tpu.dimension_semantics<parallel>], iteration_bounds = array<i64: 2>, scalar_prefetch = 0 : i64, scratch_operands = 0 : i64, tpu.core_type = #tpu.core_type<tc>, window_params = [{transform_indices = @transform_0, window_bounds = array<i64: 512, 128>}, {pipeline_mode = #tpu.pipeline_mode<synchronous>, transform_indices = @transform_1, window_bounds = array<i64: 1, 128>}, {pipeline_mode = #tpu.pipeline_mode<synchronous>, transform_indices = @transform_2, window_bounds = array<i64: 1, 128>}, {transform_indices = @transform_3, window_bounds = array<i64: 512, 128>}]} {
    %c0 = arith.constant 0 : index
    %c0_0 = arith.constant 0 : index
    %0 = vector.load %arg1[%c0, %c0_0] : memref<512x128xf32, #tpu.memory_space<vmem>>, vector<512x128xf32>
    %c0_1 = arith.constant 0 : index
    %c0_2 = arith.constant 0 : index
    %1 = vector.load %arg2[%c0_1, %c0_2] : memref<1x128xf32, #tpu.memory_space<vmem>>, vector<1x128xf32>
    %2 = vector.broadcast %1 : vector<1x128xf32> to vector<512x128xf32>
    %3 = arith.mulf %0, %2 : vector<512x128xf32>
    %c0_3 = arith.constant 0 : index
    %c0_4 = arith.constant 0 : index
    %4 = vector.load %arg3[%c0_3, %c0_4] : memref<1x128xf32, #tpu.memory_space<vmem>>, vector<1x128xf32>
    %5 = vector.broadcast %4 : vector<1x128xf32> to vector<512x128xf32>
    %6 = arith.addf %3, %5 : vector<512x128xf32>
    %cst = arith.constant 0.000000e+00 : f32
    %7 = vector.broadcast %cst : f32 to vector<512x128xf32>
    %8 = arith.maximumf %6, %7 : vector<512x128xf32>
    %c0_5 = arith.constant 0 : index
    %c0_6 = arith.constant 0 : index
    %9 = vector.load %arg4[%c0_5, %c0_6] : memref<512x128xf32, #tpu.memory_space<vmem>>, vector<512x128xf32>
    tpu.vector_store %arg4[%c0_5, %c0_6], %8 {strides = array<i32>} : memref<512x128xf32, #tpu.memory_space<vmem>>, vector<512x128xf32>,
    return
  }
  func.func @transform_0(%arg0: i32) -> (i32, i32) {
    %c0_i32 = arith.constant 0 : i32
    %c0_i32_0 = arith.constant 0 : i32
    return %arg0, %c0_i32 : i32, i32
  }
  func.func @transform_1(%arg0: i32) -> (i32, i32) {
    %c0_i32 = arith.constant 0 : i32
    %c0_i32_0 = arith.constant 0 : i32
    %c0_i32_1 = arith.constant 0 : i32
    return %c0_i32, %c0_i32_0 : i32, i32
  }
  func.func @transform_2(%arg0: i32) -> (i32, i32) {
    %c0_i32 = arith.constant 0 : i32
    %c0_i32_0 = arith.constant 0 : i32
    %c0_i32_1 = arith.constant 0 : i32
    return %c0_i32, %c0_i32_0 : i32, i32
  }
  func.func @transform_3(%arg0: i32) -> (i32, i32) {
    %c0_i32 = arith.constant 0 : i32
    %c0_i32_0 = arith.constant 0 : i32
    return %arg0, %c0_i32 : i32, i32
  }
}

module attributes {stable_mosaic.version = 11 : i64} {
  func.func @_matmul_kernel(%arg0: i32, %arg1: i32, %arg2: i32, %arg3: memref<256x128xbf16, #tpu.memory_space<vmem>>, %arg4: memref<128x128xbf16, #tpu.memory_space<vmem>>, %arg5: memref<256x128xf32, #tpu.memory_space<vmem>>) attributes {dimension_semantics = [#tpu.dimension_semantics<parallel>, #tpu.dimension_semantics<parallel>, #tpu.dimension_semantics<arbitrary>], iteration_bounds = array<i64: 1, 1, 1>, scalar_prefetch = 0 : i64, scratch_operands = 0 : i64, tpu.core_type = #tpu.core_type<tc>, window_params = [{transform_indices = @transform_0, window_bounds = array<i64: 256, 128>}, {transform_indices = @transform_1, window_bounds = array<i64: 128, 128>}, {transform_indices = @transform_2, window_bounds = array<i64: 256, 128>}]} {
    %c0_i32 = arith.constant 0 : i32
    %0 = arith.cmpi eq, %arg2, %c0_i32 : i32
    %1 = arith.extui %0 : i1 to i32
    %c0_i32_0 = arith.constant 0 : i32
    %2 = arith.cmpi ne, %1, %c0_i32_0 : i32
    scf.if %2 {
      %cst_8 = arith.constant 0.000000e+00 : f32
      %9 = vector.broadcast %cst_8 : f32 to vector<256x128xf32>
      %c0_9 = arith.constant 0 : index
      %c0_10 = arith.constant 0 : index
      %10 = vector.load %arg5[%c0_9, %c0_10] : memref<256x128xf32, #tpu.memory_space<vmem>>, vector<256x128xf32>
      tpu.vector_store %arg5[%c0_9, %c0_10], %9 {strides = array<i32>} : memref<256x128xf32, #tpu.memory_space<vmem>>, vector<256x128xf32>,
    } else {
    }
    %c0 = arith.constant 0 : index
    %c0_1 = arith.constant 0 : index
    %3 = vector.load %arg5[%c0, %c0_1] : memref<256x128xf32, #tpu.memory_space<vmem>>, vector<256x128xf32>
    %c0_2 = arith.constant 0 : index
    %c0_3 = arith.constant 0 : index
    %4 = vector.load %arg3[%c0_2, %c0_3] : memref<256x128xbf16, #tpu.memory_space<vmem>>, vector<256x128xbf16>
    %c0_4 = arith.constant 0 : index
    %c0_5 = arith.constant 0 : index
    %5 = vector.load %arg4[%c0_4, %c0_5] : memref<128x128xbf16, #tpu.memory_space<vmem>>, vector<128x128xbf16>
    %cst = arith.constant dense<0.000000e+00> : vector<256x128xf32>
    %6 = tpu.matmul %4, %5, %cst {dimension_numbers = #tpu.dot_dimension_numbers<[1], [0], [0], [1], [0, 0, 1, 1], [], []>} : vector<256x128xbf16>, vector<128x128xbf16>, vector<256x128xf32> -> vector<256x128xf32>
    %7 = arith.addf %3, %6 : vector<256x128xf32>
    %c0_6 = arith.constant 0 : index
    %c0_7 = arith.constant 0 : index
    %8 = vector.load %arg5[%c0_6, %c0_7] : memref<256x128xf32, #tpu.memory_space<vmem>>, vector<256x128xf32>
    tpu.vector_store %arg5[%c0_6, %c0_7], %7 {strides = array<i32>} : memref<256x128xf32, #tpu.memory_space<vmem>>, vector<256x128xf32>,
    return
  }
  func.func @transform_0(%arg0: i32, %arg1: i32, %arg2: i32) -> (i32, i32) {
    %c0_i32 = arith.constant 0 : i32
    return %arg0, %arg2 : i32, i32
  }
  func.func @transform_1(%arg0: i32, %arg1: i32, %arg2: i32) -> (i32, i32) {
    %c0_i32 = arith.constant 0 : i32
    return %arg2, %arg1 : i32, i32
  }
  func.func @transform_2(%arg0: i32, %arg1: i32, %arg2: i32) -> (i32, i32) {
    %c0_i32 = arith.constant 0 : i32
    return %arg0, %arg1 : i32, i32
  }
}

module attributes {stable_mosaic.version = 11 : i64} {
  func.func @_bn_stats_kernel(%arg0: i32, %arg1: memref<256x128xf32, #tpu.memory_space<vmem>>, %arg2: memref<1x128xf32, #tpu.memory_space<vmem>>, %arg3: memref<1x128xf32, #tpu.memory_space<vmem>>) attributes {dimension_semantics = [#tpu.dimension_semantics<arbitrary>], iteration_bounds = array<i64: 1>, scalar_prefetch = 0 : i64, scratch_operands = 0 : i64, tpu.core_type = #tpu.core_type<tc>, window_params = [{transform_indices = @transform_0, window_bounds = array<i64: 256, 128>}, {pipeline_mode = #tpu.pipeline_mode<synchronous>, transform_indices = @transform_1, window_bounds = array<i64: 1, 128>}, {pipeline_mode = #tpu.pipeline_mode<synchronous>, transform_indices = @transform_2, window_bounds = array<i64: 1, 128>}]} {
    %c0_i32 = arith.constant 0 : i32
    %0 = arith.cmpi eq, %arg0, %c0_i32 : i32
    %1 = arith.extui %0 : i1 to i32
    %c0_i32_0 = arith.constant 0 : i32
    %2 = arith.cmpi ne, %1, %c0_i32_0 : i32
    scf.if %2 {
      %cst_11 = arith.constant 0.000000e+00 : f32
      %15 = vector.broadcast %cst_11 : f32 to vector<1x128xf32>
      %c0_12 = arith.constant 0 : index
      %c0_13 = arith.constant 0 : index
      %16 = vector.load %arg2[%c0_12, %c0_13] : memref<1x128xf32, #tpu.memory_space<vmem>>, vector<1x128xf32>
      tpu.vector_store %arg2[%c0_12, %c0_13], %15 {strides = array<i32>} : memref<1x128xf32, #tpu.memory_space<vmem>>, vector<1x128xf32>,
      %cst_14 = arith.constant 0.000000e+00 : f32
      %17 = vector.broadcast %cst_14 : f32 to vector<1x128xf32>
      %c0_15 = arith.constant 0 : index
      %c0_16 = arith.constant 0 : index
      %18 = vector.load %arg3[%c0_15, %c0_16] : memref<1x128xf32, #tpu.memory_space<vmem>>, vector<1x128xf32>
      tpu.vector_store %arg3[%c0_15, %c0_16], %17 {strides = array<i32>} : memref<1x128xf32, #tpu.memory_space<vmem>>, vector<1x128xf32>,
    } else {
    }
    %c0 = arith.constant 0 : index
    %c0_1 = arith.constant 0 : index
    %3 = vector.load %arg1[%c0, %c0_1] : memref<256x128xf32, #tpu.memory_space<vmem>>, vector<256x128xf32>
    %c0_2 = arith.constant 0 : index
    %c0_3 = arith.constant 0 : index
    %4 = vector.load %arg2[%c0_2, %c0_3] : memref<1x128xf32, #tpu.memory_space<vmem>>, vector<1x128xf32>
    %cst = arith.constant dense<0.000000e+00> : vector<128xf32>
    %5 = vector.multi_reduction <add>, %3, %cst [0] : vector<256x128xf32> to vector<128xf32>
    %6 = vector.shape_cast %5 : vector<128xf32> to vector<1x128xf32>
    %7 = arith.addf %4, %6 : vector<1x128xf32>
    %c0_4 = arith.constant 0 : index
    %c0_5 = arith.constant 0 : index
    %8 = vector.load %arg2[%c0_4, %c0_5] : memref<1x128xf32, #tpu.memory_space<vmem>>, vector<1x128xf32>
    tpu.vector_store %arg2[%c0_4, %c0_5], %7 {strides = array<i32>} : memref<1x128xf32, #tpu.memory_space<vmem>>, vector<1x128xf32>,
    %c0_6 = arith.constant 0 : index
    %c0_7 = arith.constant 0 : index
    %9 = vector.load %arg3[%c0_6, %c0_7] : memref<1x128xf32, #tpu.memory_space<vmem>>, vector<1x128xf32>
    %10 = arith.mulf %3, %3 : vector<256x128xf32>
    %cst_8 = arith.constant dense<0.000000e+00> : vector<128xf32>
    %11 = vector.multi_reduction <add>, %10, %cst_8 [0] : vector<256x128xf32> to vector<128xf32>
    %12 = vector.shape_cast %11 : vector<128xf32> to vector<1x128xf32>
    %13 = arith.addf %9, %12 : vector<1x128xf32>
    %c0_9 = arith.constant 0 : index
    %c0_10 = arith.constant 0 : index
    %14 = vector.load %arg3[%c0_9, %c0_10] : memref<1x128xf32, #tpu.memory_space<vmem>>, vector<1x128xf32>
    tpu.vector_store %arg3[%c0_9, %c0_10], %13 {strides = array<i32>} : memref<1x128xf32, #tpu.memory_space<vmem>>, vector<1x128xf32>,
    return
  }
  func.func @transform_0(%arg0: i32) -> (i32, i32) {
    %c0_i32 = arith.constant 0 : i32
    %c0_i32_0 = arith.constant 0 : i32
    return %arg0, %c0_i32 : i32, i32
  }
  func.func @transform_1(%arg0: i32) -> (i32, i32) {
    %c0_i32 = arith.constant 0 : i32
    %c0_i32_0 = arith.constant 0 : i32
    %c0_i32_1 = arith.constant 0 : i32
    return %c0_i32, %c0_i32_0 : i32, i32
  }
  func.func @transform_2(%arg0: i32) -> (i32, i32) {
    %c0_i32 = arith.constant 0 : i32
    %c0_i32_0 = arith.constant 0 : i32
    %c0_i32_1 = arith.constant 0 : i32
    return %c0_i32, %c0_i32_0 : i32, i32
  }
}

module attributes {stable_mosaic.version = 11 : i64} {
  func.func @_affine_kernel(%arg0: i32, %arg1: memref<256x128xf32, #tpu.memory_space<vmem>>, %arg2: memref<1x128xf32, #tpu.memory_space<vmem>>, %arg3: memref<1x128xf32, #tpu.memory_space<vmem>>, %arg4: memref<256x128xf32, #tpu.memory_space<vmem>>) attributes {dimension_semantics = [#tpu.dimension_semantics<parallel>], iteration_bounds = array<i64: 1>, scalar_prefetch = 0 : i64, scratch_operands = 0 : i64, tpu.core_type = #tpu.core_type<tc>, window_params = [{transform_indices = @transform_0, window_bounds = array<i64: 256, 128>}, {pipeline_mode = #tpu.pipeline_mode<synchronous>, transform_indices = @transform_1, window_bounds = array<i64: 1, 128>}, {pipeline_mode = #tpu.pipeline_mode<synchronous>, transform_indices = @transform_2, window_bounds = array<i64: 1, 128>}, {transform_indices = @transform_3, window_bounds = array<i64: 256, 128>}]} {
    %c0 = arith.constant 0 : index
    %c0_0 = arith.constant 0 : index
    %0 = vector.load %arg1[%c0, %c0_0] : memref<256x128xf32, #tpu.memory_space<vmem>>, vector<256x128xf32>
    %c0_1 = arith.constant 0 : index
    %c0_2 = arith.constant 0 : index
    %1 = vector.load %arg2[%c0_1, %c0_2] : memref<1x128xf32, #tpu.memory_space<vmem>>, vector<1x128xf32>
    %2 = vector.broadcast %1 : vector<1x128xf32> to vector<256x128xf32>
    %3 = arith.mulf %0, %2 : vector<256x128xf32>
    %c0_3 = arith.constant 0 : index
    %c0_4 = arith.constant 0 : index
    %4 = vector.load %arg3[%c0_3, %c0_4] : memref<1x128xf32, #tpu.memory_space<vmem>>, vector<1x128xf32>
    %5 = vector.broadcast %4 : vector<1x128xf32> to vector<256x128xf32>
    %6 = arith.addf %3, %5 : vector<256x128xf32>
    %cst = arith.constant 0.000000e+00 : f32
    %7 = vector.broadcast %cst : f32 to vector<256x128xf32>
    %8 = arith.maximumf %6, %7 : vector<256x128xf32>
    %c0_5 = arith.constant 0 : index
    %c0_6 = arith.constant 0 : index
    %9 = vector.load %arg4[%c0_5, %c0_6] : memref<256x128xf32, #tpu.memory_space<vmem>>, vector<256x128xf32>
    tpu.vector_store %arg4[%c0_5, %c0_6], %8 {strides = array<i32>} : memref<256x128xf32, #tpu.memory_space<vmem>>, vector<256x128xf32>,
    return
  }
  func.func @transform_0(%arg0: i32) -> (i32, i32) {
    %c0_i32 = arith.constant 0 : i32
    %c0_i32_0 = arith.constant 0 : i32
    return %arg0, %c0_i32 : i32, i32
  }
  func.func @transform_1(%arg0: i32) -> (i32, i32) {
    %c0_i32 = arith.constant 0 : i32
    %c0_i32_0 = arith.constant 0 : i32
    %c0_i32_1 = arith.constant 0 : i32
    return %c0_i32, %c0_i32_0 : i32, i32
  }
  func.func @transform_2(%arg0: i32) -> (i32, i32) {
    %c0_i32 = arith.constant 0 : i32
    %c0_i32_0 = arith.constant 0 : i32
    %c0_i32_1 = arith.constant 0 : i32
    return %c0_i32, %c0_i32_0 : i32, i32
  }
  func.func @transform_3(%arg0: i32) -> (i32, i32) {
    %c0_i32 = arith.constant 0 : i32
    %c0_i32_0 = arith.constant 0 : i32
    return %arg0, %c0_i32 : i32, i32
  }
}

module attributes {stable_mosaic.version = 11 : i64} {
  func.func @_matmul_kernel(%arg0: i32, %arg1: i32, %arg2: i32, %arg3: memref<64x256xbf16, #tpu.memory_space<vmem>>, %arg4: memref<256x128xbf16, #tpu.memory_space<vmem>>, %arg5: memref<64x128xf32, #tpu.memory_space<vmem>>) attributes {dimension_semantics = [#tpu.dimension_semantics<parallel>, #tpu.dimension_semantics<parallel>, #tpu.dimension_semantics<arbitrary>], iteration_bounds = array<i64: 1, 1, 1>, scalar_prefetch = 0 : i64, scratch_operands = 0 : i64, tpu.core_type = #tpu.core_type<tc>, window_params = [{transform_indices = @transform_0, window_bounds = array<i64: 64, 256>}, {transform_indices = @transform_1, window_bounds = array<i64: 256, 128>}, {transform_indices = @transform_2, window_bounds = array<i64: 64, 128>}]} {
    %c0_i32 = arith.constant 0 : i32
    %0 = arith.cmpi eq, %arg2, %c0_i32 : i32
    %1 = arith.extui %0 : i1 to i32
    %c0_i32_0 = arith.constant 0 : i32
    %2 = arith.cmpi ne, %1, %c0_i32_0 : i32
    scf.if %2 {
      %cst_8 = arith.constant 0.000000e+00 : f32
      %9 = vector.broadcast %cst_8 : f32 to vector<64x128xf32>
      %c0_9 = arith.constant 0 : index
      %c0_10 = arith.constant 0 : index
      %10 = vector.load %arg5[%c0_9, %c0_10] : memref<64x128xf32, #tpu.memory_space<vmem>>, vector<64x128xf32>
      tpu.vector_store %arg5[%c0_9, %c0_10], %9 {strides = array<i32>} : memref<64x128xf32, #tpu.memory_space<vmem>>, vector<64x128xf32>,
    } else {
    }
    %c0 = arith.constant 0 : index
    %c0_1 = arith.constant 0 : index
    %3 = vector.load %arg5[%c0, %c0_1] : memref<64x128xf32, #tpu.memory_space<vmem>>, vector<64x128xf32>
    %c0_2 = arith.constant 0 : index
    %c0_3 = arith.constant 0 : index
    %4 = vector.load %arg3[%c0_2, %c0_3] : memref<64x256xbf16, #tpu.memory_space<vmem>>, vector<64x256xbf16>
    %c0_4 = arith.constant 0 : index
    %c0_5 = arith.constant 0 : index
    %5 = vector.load %arg4[%c0_4, %c0_5] : memref<256x128xbf16, #tpu.memory_space<vmem>>, vector<256x128xbf16>
    %cst = arith.constant dense<0.000000e+00> : vector<64x128xf32>
    %6 = tpu.matmul %4, %5, %cst {dimension_numbers = #tpu.dot_dimension_numbers<[1], [0], [0], [1], [0, 0, 1, 1], [], []>} : vector<64x256xbf16>, vector<256x128xbf16>, vector<64x128xf32> -> vector<64x128xf32>
    %7 = arith.addf %3, %6 : vector<64x128xf32>
    %c0_6 = arith.constant 0 : index
    %c0_7 = arith.constant 0 : index
    %8 = vector.load %arg5[%c0_6, %c0_7] : memref<64x128xf32, #tpu.memory_space<vmem>>, vector<64x128xf32>
    tpu.vector_store %arg5[%c0_6, %c0_7], %7 {strides = array<i32>} : memref<64x128xf32, #tpu.memory_space<vmem>>, vector<64x128xf32>,
    return
  }
  func.func @transform_0(%arg0: i32, %arg1: i32, %arg2: i32) -> (i32, i32) {
    %c0_i32 = arith.constant 0 : i32
    return %arg0, %arg2 : i32, i32
  }
  func.func @transform_1(%arg0: i32, %arg1: i32, %arg2: i32) -> (i32, i32) {
    %c0_i32 = arith.constant 0 : i32
    return %arg2, %arg1 : i32, i32
  }
  func.func @transform_2(%arg0: i32, %arg1: i32, %arg2: i32) -> (i32, i32) {
    %c0_i32 = arith.constant 0 : i32
    return %arg0, %arg1 : i32, i32
  }
}

module attributes {stable_mosaic.version = 11 : i64} {
  func.func @_bn_stats_kernel(%arg0: i32, %arg1: memref<64x128xf32, #tpu.memory_space<vmem>>, %arg2: memref<1x128xf32, #tpu.memory_space<vmem>>, %arg3: memref<1x128xf32, #tpu.memory_space<vmem>>) attributes {dimension_semantics = [#tpu.dimension_semantics<arbitrary>], iteration_bounds = array<i64: 1>, scalar_prefetch = 0 : i64, scratch_operands = 0 : i64, tpu.core_type = #tpu.core_type<tc>, window_params = [{transform_indices = @transform_0, window_bounds = array<i64: 64, 128>}, {pipeline_mode = #tpu.pipeline_mode<synchronous>, transform_indices = @transform_1, window_bounds = array<i64: 1, 128>}, {pipeline_mode = #tpu.pipeline_mode<synchronous>, transform_indices = @transform_2, window_bounds = array<i64: 1, 128>}]} {
    %c0_i32 = arith.constant 0 : i32
    %0 = arith.cmpi eq, %arg0, %c0_i32 : i32
    %1 = arith.extui %0 : i1 to i32
    %c0_i32_0 = arith.constant 0 : i32
    %2 = arith.cmpi ne, %1, %c0_i32_0 : i32
    scf.if %2 {
      %cst_11 = arith.constant 0.000000e+00 : f32
      %15 = vector.broadcast %cst_11 : f32 to vector<1x128xf32>
      %c0_12 = arith.constant 0 : index
      %c0_13 = arith.constant 0 : index
      %16 = vector.load %arg2[%c0_12, %c0_13] : memref<1x128xf32, #tpu.memory_space<vmem>>, vector<1x128xf32>
      tpu.vector_store %arg2[%c0_12, %c0_13], %15 {strides = array<i32>} : memref<1x128xf32, #tpu.memory_space<vmem>>, vector<1x128xf32>,
      %cst_14 = arith.constant 0.000000e+00 : f32
      %17 = vector.broadcast %cst_14 : f32 to vector<1x128xf32>
      %c0_15 = arith.constant 0 : index
      %c0_16 = arith.constant 0 : index
      %18 = vector.load %arg3[%c0_15, %c0_16] : memref<1x128xf32, #tpu.memory_space<vmem>>, vector<1x128xf32>
      tpu.vector_store %arg3[%c0_15, %c0_16], %17 {strides = array<i32>} : memref<1x128xf32, #tpu.memory_space<vmem>>, vector<1x128xf32>,
    } else {
    }
    %c0 = arith.constant 0 : index
    %c0_1 = arith.constant 0 : index
    %3 = vector.load %arg1[%c0, %c0_1] : memref<64x128xf32, #tpu.memory_space<vmem>>, vector<64x128xf32>
    %c0_2 = arith.constant 0 : index
    %c0_3 = arith.constant 0 : index
    %4 = vector.load %arg2[%c0_2, %c0_3] : memref<1x128xf32, #tpu.memory_space<vmem>>, vector<1x128xf32>
    %cst = arith.constant dense<0.000000e+00> : vector<128xf32>
    %5 = vector.multi_reduction <add>, %3, %cst [0] : vector<64x128xf32> to vector<128xf32>
    %6 = vector.shape_cast %5 : vector<128xf32> to vector<1x128xf32>
    %7 = arith.addf %4, %6 : vector<1x128xf32>
    %c0_4 = arith.constant 0 : index
    %c0_5 = arith.constant 0 : index
    %8 = vector.load %arg2[%c0_4, %c0_5] : memref<1x128xf32, #tpu.memory_space<vmem>>, vector<1x128xf32>
    tpu.vector_store %arg2[%c0_4, %c0_5], %7 {strides = array<i32>} : memref<1x128xf32, #tpu.memory_space<vmem>>, vector<1x128xf32>,
    %c0_6 = arith.constant 0 : index
    %c0_7 = arith.constant 0 : index
    %9 = vector.load %arg3[%c0_6, %c0_7] : memref<1x128xf32, #tpu.memory_space<vmem>>, vector<1x128xf32>
    %10 = arith.mulf %3, %3 : vector<64x128xf32>
    %cst_8 = arith.constant dense<0.000000e+00> : vector<128xf32>
    %11 = vector.multi_reduction <add>, %10, %cst_8 [0] : vector<64x128xf32> to vector<128xf32>
    %12 = vector.shape_cast %11 : vector<128xf32> to vector<1x128xf32>
    %13 = arith.addf %9, %12 : vector<1x128xf32>
    %c0_9 = arith.constant 0 : index
    %c0_10 = arith.constant 0 : index
    %14 = vector.load %arg3[%c0_9, %c0_10] : memref<1x128xf32, #tpu.memory_space<vmem>>, vector<1x128xf32>
    tpu.vector_store %arg3[%c0_9, %c0_10], %13 {strides = array<i32>} : memref<1x128xf32, #tpu.memory_space<vmem>>, vector<1x128xf32>,
    return
  }
  func.func @transform_0(%arg0: i32) -> (i32, i32) {
    %c0_i32 = arith.constant 0 : i32
    %c0_i32_0 = arith.constant 0 : i32
    return %arg0, %c0_i32 : i32, i32
  }
  func.func @transform_1(%arg0: i32) -> (i32, i32) {
    %c0_i32 = arith.constant 0 : i32
    %c0_i32_0 = arith.constant 0 : i32
    %c0_i32_1 = arith.constant 0 : i32
    return %c0_i32, %c0_i32_0 : i32, i32
  }
  func.func @transform_2(%arg0: i32) -> (i32, i32) {
    %c0_i32 = arith.constant 0 : i32
    %c0_i32_0 = arith.constant 0 : i32
    %c0_i32_1 = arith.constant 0 : i32
    return %c0_i32, %c0_i32_0 : i32, i32
  }
}

module attributes {stable_mosaic.version = 11 : i64} {
  func.func @_affine_kernel(%arg0: i32, %arg1: memref<64x128xf32, #tpu.memory_space<vmem>>, %arg2: memref<1x128xf32, #tpu.memory_space<vmem>>, %arg3: memref<1x128xf32, #tpu.memory_space<vmem>>, %arg4: memref<64x128xf32, #tpu.memory_space<vmem>>) attributes {dimension_semantics = [#tpu.dimension_semantics<parallel>], iteration_bounds = array<i64: 1>, scalar_prefetch = 0 : i64, scratch_operands = 0 : i64, tpu.core_type = #tpu.core_type<tc>, window_params = [{transform_indices = @transform_0, window_bounds = array<i64: 64, 128>}, {pipeline_mode = #tpu.pipeline_mode<synchronous>, transform_indices = @transform_1, window_bounds = array<i64: 1, 128>}, {pipeline_mode = #tpu.pipeline_mode<synchronous>, transform_indices = @transform_2, window_bounds = array<i64: 1, 128>}, {transform_indices = @transform_3, window_bounds = array<i64: 64, 128>}]} {
    %c0 = arith.constant 0 : index
    %c0_0 = arith.constant 0 : index
    %0 = vector.load %arg1[%c0, %c0_0] : memref<64x128xf32, #tpu.memory_space<vmem>>, vector<64x128xf32>
    %c0_1 = arith.constant 0 : index
    %c0_2 = arith.constant 0 : index
    %1 = vector.load %arg2[%c0_1, %c0_2] : memref<1x128xf32, #tpu.memory_space<vmem>>, vector<1x128xf32>
    %2 = vector.broadcast %1 : vector<1x128xf32> to vector<64x128xf32>
    %3 = arith.mulf %0, %2 : vector<64x128xf32>
    %c0_3 = arith.constant 0 : index
    %c0_4 = arith.constant 0 : index
    %4 = vector.load %arg3[%c0_3, %c0_4] : memref<1x128xf32, #tpu.memory_space<vmem>>, vector<1x128xf32>
    %5 = vector.broadcast %4 : vector<1x128xf32> to vector<64x128xf32>
    %6 = arith.addf %3, %5 : vector<64x128xf32>
    %cst = arith.constant 0.000000e+00 : f32
    %7 = vector.broadcast %cst : f32 to vector<64x128xf32>
    %8 = arith.maximumf %6, %7 : vector<64x128xf32>
    %c0_5 = arith.constant 0 : index
    %c0_6 = arith.constant 0 : index
    %9 = vector.load %arg4[%c0_5, %c0_6] : memref<64x128xf32, #tpu.memory_space<vmem>>, vector<64x128xf32>
    tpu.vector_store %arg4[%c0_5, %c0_6], %8 {strides = array<i32>} : memref<64x128xf32, #tpu.memory_space<vmem>>, vector<64x128xf32>,
    return
  }
  func.func @transform_0(%arg0: i32) -> (i32, i32) {
    %c0_i32 = arith.constant 0 : i32
    %c0_i32_0 = arith.constant 0 : i32
    return %arg0, %c0_i32 : i32, i32
  }
  func.func @transform_1(%arg0: i32) -> (i32, i32) {
    %c0_i32 = arith.constant 0 : i32
    %c0_i32_0 = arith.constant 0 : i32
    %c0_i32_1 = arith.constant 0 : i32
    return %c0_i32, %c0_i32_0 : i32, i32
  }
  func.func @transform_2(%arg0: i32) -> (i32, i32) {
    %c0_i32 = arith.constant 0 : i32
    %c0_i32_0 = arith.constant 0 : i32
    %c0_i32_1 = arith.constant 0 : i32
    return %c0_i32, %c0_i32_0 : i32, i32
  }
  func.func @transform_3(%arg0: i32) -> (i32, i32) {
    %c0_i32 = arith.constant 0 : i32
    %c0_i32_0 = arith.constant 0 : i32
    return %arg0, %c0_i32 : i32, i32
  }
}

module attributes {stable_mosaic.version = 11 : i64} {
  func.func @_bn_stats_kernel(%arg0: i32, %arg1: memref<16x128xf32, #tpu.memory_space<vmem>>, %arg2: memref<1x128xf32, #tpu.memory_space<vmem>>, %arg3: memref<1x128xf32, #tpu.memory_space<vmem>>) attributes {dimension_semantics = [#tpu.dimension_semantics<arbitrary>], iteration_bounds = array<i64: 1>, scalar_prefetch = 0 : i64, scratch_operands = 0 : i64, tpu.core_type = #tpu.core_type<tc>, window_params = [{transform_indices = @transform_0, window_bounds = array<i64: 16, 128>}, {pipeline_mode = #tpu.pipeline_mode<synchronous>, transform_indices = @transform_1, window_bounds = array<i64: 1, 128>}, {pipeline_mode = #tpu.pipeline_mode<synchronous>, transform_indices = @transform_2, window_bounds = array<i64: 1, 128>}]} {
    %c0_i32 = arith.constant 0 : i32
    %0 = arith.cmpi eq, %arg0, %c0_i32 : i32
    %1 = arith.extui %0 : i1 to i32
    %c0_i32_0 = arith.constant 0 : i32
    %2 = arith.cmpi ne, %1, %c0_i32_0 : i32
    scf.if %2 {
      %cst_11 = arith.constant 0.000000e+00 : f32
      %15 = vector.broadcast %cst_11 : f32 to vector<1x128xf32>
      %c0_12 = arith.constant 0 : index
      %c0_13 = arith.constant 0 : index
      %16 = vector.load %arg2[%c0_12, %c0_13] : memref<1x128xf32, #tpu.memory_space<vmem>>, vector<1x128xf32>
      tpu.vector_store %arg2[%c0_12, %c0_13], %15 {strides = array<i32>} : memref<1x128xf32, #tpu.memory_space<vmem>>, vector<1x128xf32>,
      %cst_14 = arith.constant 0.000000e+00 : f32
      %17 = vector.broadcast %cst_14 : f32 to vector<1x128xf32>
      %c0_15 = arith.constant 0 : index
      %c0_16 = arith.constant 0 : index
      %18 = vector.load %arg3[%c0_15, %c0_16] : memref<1x128xf32, #tpu.memory_space<vmem>>, vector<1x128xf32>
      tpu.vector_store %arg3[%c0_15, %c0_16], %17 {strides = array<i32>} : memref<1x128xf32, #tpu.memory_space<vmem>>, vector<1x128xf32>,
    } else {
    }
    %c0 = arith.constant 0 : index
    %c0_1 = arith.constant 0 : index
    %3 = vector.load %arg1[%c0, %c0_1] : memref<16x128xf32, #tpu.memory_space<vmem>>, vector<16x128xf32>
    %c0_2 = arith.constant 0 : index
    %c0_3 = arith.constant 0 : index
    %4 = vector.load %arg2[%c0_2, %c0_3] : memref<1x128xf32, #tpu.memory_space<vmem>>, vector<1x128xf32>
    %cst = arith.constant dense<0.000000e+00> : vector<128xf32>
    %5 = vector.multi_reduction <add>, %3, %cst [0] : vector<16x128xf32> to vector<128xf32>
    %6 = vector.shape_cast %5 : vector<128xf32> to vector<1x128xf32>
    %7 = arith.addf %4, %6 : vector<1x128xf32>
    %c0_4 = arith.constant 0 : index
    %c0_5 = arith.constant 0 : index
    %8 = vector.load %arg2[%c0_4, %c0_5] : memref<1x128xf32, #tpu.memory_space<vmem>>, vector<1x128xf32>
    tpu.vector_store %arg2[%c0_4, %c0_5], %7 {strides = array<i32>} : memref<1x128xf32, #tpu.memory_space<vmem>>, vector<1x128xf32>,
    %c0_6 = arith.constant 0 : index
    %c0_7 = arith.constant 0 : index
    %9 = vector.load %arg3[%c0_6, %c0_7] : memref<1x128xf32, #tpu.memory_space<vmem>>, vector<1x128xf32>
    %10 = arith.mulf %3, %3 : vector<16x128xf32>
    %cst_8 = arith.constant dense<0.000000e+00> : vector<128xf32>
    %11 = vector.multi_reduction <add>, %10, %cst_8 [0] : vector<16x128xf32> to vector<128xf32>
    %12 = vector.shape_cast %11 : vector<128xf32> to vector<1x128xf32>
    %13 = arith.addf %9, %12 : vector<1x128xf32>
    %c0_9 = arith.constant 0 : index
    %c0_10 = arith.constant 0 : index
    %14 = vector.load %arg3[%c0_9, %c0_10] : memref<1x128xf32, #tpu.memory_space<vmem>>, vector<1x128xf32>
    tpu.vector_store %arg3[%c0_9, %c0_10], %13 {strides = array<i32>} : memref<1x128xf32, #tpu.memory_space<vmem>>, vector<1x128xf32>,
    return
  }
  func.func @transform_0(%arg0: i32) -> (i32, i32) {
    %c0_i32 = arith.constant 0 : i32
    %c0_i32_0 = arith.constant 0 : i32
    return %arg0, %c0_i32 : i32, i32
  }
  func.func @transform_1(%arg0: i32) -> (i32, i32) {
    %c0_i32 = arith.constant 0 : i32
    %c0_i32_0 = arith.constant 0 : i32
    %c0_i32_1 = arith.constant 0 : i32
    return %c0_i32, %c0_i32_0 : i32, i32
  }
  func.func @transform_2(%arg0: i32) -> (i32, i32) {
    %c0_i32 = arith.constant 0 : i32
    %c0_i32_0 = arith.constant 0 : i32
    %c0_i32_1 = arith.constant 0 : i32
    return %c0_i32, %c0_i32_0 : i32, i32
  }
}

module attributes {stable_mosaic.version = 11 : i64} {
  func.func @_matmul_kernel(%arg0: i32, %arg1: i32, %arg2: i32, %arg3: memref<16x128xbf16, #tpu.memory_space<vmem>>, %arg4: memref<128x128xbf16, #tpu.memory_space<vmem>>, %arg5: memref<16x128xf32, #tpu.memory_space<vmem>>) attributes {dimension_semantics = [#tpu.dimension_semantics<parallel>, #tpu.dimension_semantics<parallel>, #tpu.dimension_semantics<arbitrary>], iteration_bounds = array<i64: 1, 1, 3>, scalar_prefetch = 0 : i64, scratch_operands = 0 : i64, tpu.core_type = #tpu.core_type<tc>, window_params = [{transform_indices = @transform_0, window_bounds = array<i64: 16, 128>}, {transform_indices = @transform_1, window_bounds = array<i64: 128, 128>}, {transform_indices = @transform_2, window_bounds = array<i64: 16, 128>}]} {
    %c0_i32 = arith.constant 0 : i32
    %0 = arith.cmpi eq, %arg2, %c0_i32 : i32
    %1 = arith.extui %0 : i1 to i32
    %c0_i32_0 = arith.constant 0 : i32
    %2 = arith.cmpi ne, %1, %c0_i32_0 : i32
    scf.if %2 {
      %cst_8 = arith.constant 0.000000e+00 : f32
      %9 = vector.broadcast %cst_8 : f32 to vector<16x128xf32>
      %c0_9 = arith.constant 0 : index
      %c0_10 = arith.constant 0 : index
      %10 = vector.load %arg5[%c0_9, %c0_10] : memref<16x128xf32, #tpu.memory_space<vmem>>, vector<16x128xf32>
      tpu.vector_store %arg5[%c0_9, %c0_10], %9 {strides = array<i32>} : memref<16x128xf32, #tpu.memory_space<vmem>>, vector<16x128xf32>,
    } else {
    }
    %c0 = arith.constant 0 : index
    %c0_1 = arith.constant 0 : index
    %3 = vector.load %arg5[%c0, %c0_1] : memref<16x128xf32, #tpu.memory_space<vmem>>, vector<16x128xf32>
    %c0_2 = arith.constant 0 : index
    %c0_3 = arith.constant 0 : index
    %4 = vector.load %arg3[%c0_2, %c0_3] : memref<16x128xbf16, #tpu.memory_space<vmem>>, vector<16x128xbf16>
    %c0_4 = arith.constant 0 : index
    %c0_5 = arith.constant 0 : index
    %5 = vector.load %arg4[%c0_4, %c0_5] : memref<128x128xbf16, #tpu.memory_space<vmem>>, vector<128x128xbf16>
    %cst = arith.constant dense<0.000000e+00> : vector<16x128xf32>
    %6 = tpu.matmul %4, %5, %cst {dimension_numbers = #tpu.dot_dimension_numbers<[1], [0], [0], [1], [0, 0, 1, 1], [], []>} : vector<16x128xbf16>, vector<128x128xbf16>, vector<16x128xf32> -> vector<16x128xf32>
    %7 = arith.addf %3, %6 : vector<16x128xf32>
    %c0_6 = arith.constant 0 : index
    %c0_7 = arith.constant 0 : index
    %8 = vector.load %arg5[%c0_6, %c0_7] : memref<16x128xf32, #tpu.memory_space<vmem>>, vector<16x128xf32>
    tpu.vector_store %arg5[%c0_6, %c0_7], %7 {strides = array<i32>} : memref<16x128xf32, #tpu.memory_space<vmem>>, vector<16x128xf32>,
    return
  }
  func.func @transform_0(%arg0: i32, %arg1: i32, %arg2: i32) -> (i32, i32) {
    %c0_i32 = arith.constant 0 : i32
    return %arg0, %arg2 : i32, i32
  }
  func.func @transform_1(%arg0: i32, %arg1: i32, %arg2: i32) -> (i32, i32) {
    %c0_i32 = arith.constant 0 : i32
    return %arg2, %arg1 : i32, i32
  }
  func.func @transform_2(%arg0: i32, %arg1: i32, %arg2: i32) -> (i32, i32) {
    %c0_i32 = arith.constant 0 : i32
    return %arg0, %arg1 : i32, i32
  }
}

module attributes {stable_mosaic.version = 11 : i64} {
  func.func @_affine_kernel(%arg0: i32, %arg1: memref<16x128xf32, #tpu.memory_space<vmem>>, %arg2: memref<1x128xf32, #tpu.memory_space<vmem>>, %arg3: memref<1x128xf32, #tpu.memory_space<vmem>>, %arg4: memref<16x128xf32, #tpu.memory_space<vmem>>) attributes {dimension_semantics = [#tpu.dimension_semantics<parallel>], iteration_bounds = array<i64: 1>, scalar_prefetch = 0 : i64, scratch_operands = 0 : i64, tpu.core_type = #tpu.core_type<tc>, window_params = [{transform_indices = @transform_0, window_bounds = array<i64: 16, 128>}, {pipeline_mode = #tpu.pipeline_mode<synchronous>, transform_indices = @transform_1, window_bounds = array<i64: 1, 128>}, {pipeline_mode = #tpu.pipeline_mode<synchronous>, transform_indices = @transform_2, window_bounds = array<i64: 1, 128>}, {transform_indices = @transform_3, window_bounds = array<i64: 16, 128>}]} {
    %c0 = arith.constant 0 : index
    %c0_0 = arith.constant 0 : index
    %0 = vector.load %arg1[%c0, %c0_0] : memref<16x128xf32, #tpu.memory_space<vmem>>, vector<16x128xf32>
    %c0_1 = arith.constant 0 : index
    %c0_2 = arith.constant 0 : index
    %1 = vector.load %arg2[%c0_1, %c0_2] : memref<1x128xf32, #tpu.memory_space<vmem>>, vector<1x128xf32>
    %2 = vector.broadcast %1 : vector<1x128xf32> to vector<16x128xf32>
    %3 = arith.mulf %0, %2 : vector<16x128xf32>
    %c0_3 = arith.constant 0 : index
    %c0_4 = arith.constant 0 : index
    %4 = vector.load %arg3[%c0_3, %c0_4] : memref<1x128xf32, #tpu.memory_space<vmem>>, vector<1x128xf32>
    %5 = vector.broadcast %4 : vector<1x128xf32> to vector<16x128xf32>
    %6 = arith.addf %3, %5 : vector<16x128xf32>
    %cst = arith.constant 0.000000e+00 : f32
    %7 = vector.broadcast %cst : f32 to vector<16x128xf32>
    %8 = arith.maximumf %6, %7 : vector<16x128xf32>
    %c0_5 = arith.constant 0 : index
    %c0_6 = arith.constant 0 : index
    %9 = vector.load %arg4[%c0_5, %c0_6] : memref<16x128xf32, #tpu.memory_space<vmem>>, vector<16x128xf32>
    tpu.vector_store %arg4[%c0_5, %c0_6], %8 {strides = array<i32>} : memref<16x128xf32, #tpu.memory_space<vmem>>, vector<16x128xf32>,
    return
  }
  func.func @transform_0(%arg0: i32) -> (i32, i32) {
    %c0_i32 = arith.constant 0 : i32
    %c0_i32_0 = arith.constant 0 : i32
    return %arg0, %c0_i32 : i32, i32
  }
  func.func @transform_1(%arg0: i32) -> (i32, i32) {
    %c0_i32 = arith.constant 0 : i32
    %c0_i32_0 = arith.constant 0 : i32
    %c0_i32_1 = arith.constant 0 : i32
    return %c0_i32, %c0_i32_0 : i32, i32
  }
  func.func @transform_2(%arg0: i32) -> (i32, i32) {
    %c0_i32 = arith.constant 0 : i32
    %c0_i32_0 = arith.constant 0 : i32
    %c0_i32_1 = arith.constant 0 : i32
    return %c0_i32, %c0_i32_0 : i32, i32
  }
  func.func @transform_3(%arg0: i32) -> (i32, i32) {
    %c0_i32 = arith.constant 0 : i32
    %c0_i32_0 = arith.constant 0 : i32
    return %arg0, %c0_i32 : i32, i32
  }
}

module attributes {stable_mosaic.version = 11 : i64} {
  func.func @_matmul_kernel(%arg0: i32, %arg1: i32, %arg2: i32, %arg3: memref<8x128xbf16, #tpu.memory_space<vmem>>, %arg4: memref<128x128xbf16, #tpu.memory_space<vmem>>, %arg5: memref<8x128xf32, #tpu.memory_space<vmem>>) attributes {dimension_semantics = [#tpu.dimension_semantics<parallel>, #tpu.dimension_semantics<parallel>, #tpu.dimension_semantics<arbitrary>], iteration_bounds = array<i64: 1, 1, 5>, scalar_prefetch = 0 : i64, scratch_operands = 0 : i64, tpu.core_type = #tpu.core_type<tc>, window_params = [{transform_indices = @transform_0, window_bounds = array<i64: 8, 128>}, {transform_indices = @transform_1, window_bounds = array<i64: 128, 128>}, {transform_indices = @transform_2, window_bounds = array<i64: 8, 128>}]} {
    %c0_i32 = arith.constant 0 : i32
    %0 = arith.cmpi eq, %arg2, %c0_i32 : i32
    %1 = arith.extui %0 : i1 to i32
    %c0_i32_0 = arith.constant 0 : i32
    %2 = arith.cmpi ne, %1, %c0_i32_0 : i32
    scf.if %2 {
      %cst_8 = arith.constant 0.000000e+00 : f32
      %9 = vector.broadcast %cst_8 : f32 to vector<8x128xf32>
      %c0_9 = arith.constant 0 : index
      %c0_10 = arith.constant 0 : index
      %10 = vector.load %arg5[%c0_9, %c0_10] : memref<8x128xf32, #tpu.memory_space<vmem>>, vector<8x128xf32>
      tpu.vector_store %arg5[%c0_9, %c0_10], %9 {strides = array<i32>} : memref<8x128xf32, #tpu.memory_space<vmem>>, vector<8x128xf32>,
    } else {
    }
    %c0 = arith.constant 0 : index
    %c0_1 = arith.constant 0 : index
    %3 = vector.load %arg5[%c0, %c0_1] : memref<8x128xf32, #tpu.memory_space<vmem>>, vector<8x128xf32>
    %c0_2 = arith.constant 0 : index
    %c0_3 = arith.constant 0 : index
    %4 = vector.load %arg3[%c0_2, %c0_3] : memref<8x128xbf16, #tpu.memory_space<vmem>>, vector<8x128xbf16>
    %c0_4 = arith.constant 0 : index
    %c0_5 = arith.constant 0 : index
    %5 = vector.load %arg4[%c0_4, %c0_5] : memref<128x128xbf16, #tpu.memory_space<vmem>>, vector<128x128xbf16>
    %cst = arith.constant dense<0.000000e+00> : vector<8x128xf32>
    %6 = tpu.matmul %4, %5, %cst {dimension_numbers = #tpu.dot_dimension_numbers<[1], [0], [0], [1], [0, 0, 1, 1], [], []>} : vector<8x128xbf16>, vector<128x128xbf16>, vector<8x128xf32> -> vector<8x128xf32>
    %7 = arith.addf %3, %6 : vector<8x128xf32>
    %c0_6 = arith.constant 0 : index
    %c0_7 = arith.constant 0 : index
    %8 = vector.load %arg5[%c0_6, %c0_7] : memref<8x128xf32, #tpu.memory_space<vmem>>, vector<8x128xf32>
    tpu.vector_store %arg5[%c0_6, %c0_7], %7 {strides = array<i32>} : memref<8x128xf32, #tpu.memory_space<vmem>>, vector<8x128xf32>,
    return
  }
  func.func @transform_0(%arg0: i32, %arg1: i32, %arg2: i32) -> (i32, i32) {
    %c0_i32 = arith.constant 0 : i32
    return %arg0, %arg2 : i32, i32
  }
  func.func @transform_1(%arg0: i32, %arg1: i32, %arg2: i32) -> (i32, i32) {
    %c0_i32 = arith.constant 0 : i32
    return %arg2, %arg1 : i32, i32
  }
  func.func @transform_2(%arg0: i32, %arg1: i32, %arg2: i32) -> (i32, i32) {
    %c0_i32 = arith.constant 0 : i32
    return %arg0, %arg1 : i32, i32
  }
}

module attributes {stable_mosaic.version = 11 : i64} {
  func.func @_bn_stats_kernel(%arg0: i32, %arg1: memref<8x128xf32, #tpu.memory_space<vmem>>, %arg2: memref<1x128xf32, #tpu.memory_space<vmem>>, %arg3: memref<1x128xf32, #tpu.memory_space<vmem>>) attributes {dimension_semantics = [#tpu.dimension_semantics<arbitrary>], iteration_bounds = array<i64: 1>, scalar_prefetch = 0 : i64, scratch_operands = 0 : i64, tpu.core_type = #tpu.core_type<tc>, window_params = [{transform_indices = @transform_0, window_bounds = array<i64: 8, 128>}, {pipeline_mode = #tpu.pipeline_mode<synchronous>, transform_indices = @transform_1, window_bounds = array<i64: 1, 128>}, {pipeline_mode = #tpu.pipeline_mode<synchronous>, transform_indices = @transform_2, window_bounds = array<i64: 1, 128>}]} {
    %c0_i32 = arith.constant 0 : i32
    %0 = arith.cmpi eq, %arg0, %c0_i32 : i32
    %1 = arith.extui %0 : i1 to i32
    %c0_i32_0 = arith.constant 0 : i32
    %2 = arith.cmpi ne, %1, %c0_i32_0 : i32
    scf.if %2 {
      %cst_11 = arith.constant 0.000000e+00 : f32
      %15 = vector.broadcast %cst_11 : f32 to vector<1x128xf32>
      %c0_12 = arith.constant 0 : index
      %c0_13 = arith.constant 0 : index
      %16 = vector.load %arg2[%c0_12, %c0_13] : memref<1x128xf32, #tpu.memory_space<vmem>>, vector<1x128xf32>
      tpu.vector_store %arg2[%c0_12, %c0_13], %15 {strides = array<i32>} : memref<1x128xf32, #tpu.memory_space<vmem>>, vector<1x128xf32>,
      %cst_14 = arith.constant 0.000000e+00 : f32
      %17 = vector.broadcast %cst_14 : f32 to vector<1x128xf32>
      %c0_15 = arith.constant 0 : index
      %c0_16 = arith.constant 0 : index
      %18 = vector.load %arg3[%c0_15, %c0_16] : memref<1x128xf32, #tpu.memory_space<vmem>>, vector<1x128xf32>
      tpu.vector_store %arg3[%c0_15, %c0_16], %17 {strides = array<i32>} : memref<1x128xf32, #tpu.memory_space<vmem>>, vector<1x128xf32>,
    } else {
    }
    %c0 = arith.constant 0 : index
    %c0_1 = arith.constant 0 : index
    %3 = vector.load %arg1[%c0, %c0_1] : memref<8x128xf32, #tpu.memory_space<vmem>>, vector<8x128xf32>
    %c0_2 = arith.constant 0 : index
    %c0_3 = arith.constant 0 : index
    %4 = vector.load %arg2[%c0_2, %c0_3] : memref<1x128xf32, #tpu.memory_space<vmem>>, vector<1x128xf32>
    %cst = arith.constant dense<0.000000e+00> : vector<128xf32>
    %5 = vector.multi_reduction <add>, %3, %cst [0] : vector<8x128xf32> to vector<128xf32>
    %6 = vector.shape_cast %5 : vector<128xf32> to vector<1x128xf32>
    %7 = arith.addf %4, %6 : vector<1x128xf32>
    %c0_4 = arith.constant 0 : index
    %c0_5 = arith.constant 0 : index
    %8 = vector.load %arg2[%c0_4, %c0_5] : memref<1x128xf32, #tpu.memory_space<vmem>>, vector<1x128xf32>
    tpu.vector_store %arg2[%c0_4, %c0_5], %7 {strides = array<i32>} : memref<1x128xf32, #tpu.memory_space<vmem>>, vector<1x128xf32>,
    %c0_6 = arith.constant 0 : index
    %c0_7 = arith.constant 0 : index
    %9 = vector.load %arg3[%c0_6, %c0_7] : memref<1x128xf32, #tpu.memory_space<vmem>>, vector<1x128xf32>
    %10 = arith.mulf %3, %3 : vector<8x128xf32>
    %cst_8 = arith.constant dense<0.000000e+00> : vector<128xf32>
    %11 = vector.multi_reduction <add>, %10, %cst_8 [0] : vector<8x128xf32> to vector<128xf32>
    %12 = vector.shape_cast %11 : vector<128xf32> to vector<1x128xf32>
    %13 = arith.addf %9, %12 : vector<1x128xf32>
    %c0_9 = arith.constant 0 : index
    %c0_10 = arith.constant 0 : index
    %14 = vector.load %arg3[%c0_9, %c0_10] : memref<1x128xf32, #tpu.memory_space<vmem>>, vector<1x128xf32>
    tpu.vector_store %arg3[%c0_9, %c0_10], %13 {strides = array<i32>} : memref<1x128xf32, #tpu.memory_space<vmem>>, vector<1x128xf32>,
    return
  }
  func.func @transform_0(%arg0: i32) -> (i32, i32) {
    %c0_i32 = arith.constant 0 : i32
    %c0_i32_0 = arith.constant 0 : i32
    return %arg0, %c0_i32 : i32, i32
  }
  func.func @transform_1(%arg0: i32) -> (i32, i32) {
    %c0_i32 = arith.constant 0 : i32
    %c0_i32_0 = arith.constant 0 : i32
    %c0_i32_1 = arith.constant 0 : i32
    return %c0_i32, %c0_i32_0 : i32, i32
  }
  func.func @transform_2(%arg0: i32) -> (i32, i32) {
    %c0_i32 = arith.constant 0 : i32
    %c0_i32_0 = arith.constant 0 : i32
    %c0_i32_1 = arith.constant 0 : i32
    return %c0_i32, %c0_i32_0 : i32, i32
  }
}

module attributes {stable_mosaic.version = 11 : i64} {
  func.func @_affine_kernel(%arg0: i32, %arg1: memref<8x128xf32, #tpu.memory_space<vmem>>, %arg2: memref<1x128xf32, #tpu.memory_space<vmem>>, %arg3: memref<1x128xf32, #tpu.memory_space<vmem>>, %arg4: memref<8x128xf32, #tpu.memory_space<vmem>>) attributes {dimension_semantics = [#tpu.dimension_semantics<parallel>], iteration_bounds = array<i64: 1>, scalar_prefetch = 0 : i64, scratch_operands = 0 : i64, tpu.core_type = #tpu.core_type<tc>, window_params = [{transform_indices = @transform_0, window_bounds = array<i64: 8, 128>}, {pipeline_mode = #tpu.pipeline_mode<synchronous>, transform_indices = @transform_1, window_bounds = array<i64: 1, 128>}, {pipeline_mode = #tpu.pipeline_mode<synchronous>, transform_indices = @transform_2, window_bounds = array<i64: 1, 128>}, {transform_indices = @transform_3, window_bounds = array<i64: 8, 128>}]} {
    %c0 = arith.constant 0 : index
    %c0_0 = arith.constant 0 : index
    %0 = vector.load %arg1[%c0, %c0_0] : memref<8x128xf32, #tpu.memory_space<vmem>>, vector<8x128xf32>
    %c0_1 = arith.constant 0 : index
    %c0_2 = arith.constant 0 : index
    %1 = vector.load %arg2[%c0_1, %c0_2] : memref<1x128xf32, #tpu.memory_space<vmem>>, vector<1x128xf32>
    %2 = vector.broadcast %1 : vector<1x128xf32> to vector<8x128xf32>
    %3 = arith.mulf %0, %2 : vector<8x128xf32>
    %c0_3 = arith.constant 0 : index
    %c0_4 = arith.constant 0 : index
    %4 = vector.load %arg3[%c0_3, %c0_4] : memref<1x128xf32, #tpu.memory_space<vmem>>, vector<1x128xf32>
    %5 = vector.broadcast %4 : vector<1x128xf32> to vector<8x128xf32>
    %6 = arith.addf %3, %5 : vector<8x128xf32>
    %cst = arith.constant 0.000000e+00 : f32
    %7 = vector.broadcast %cst : f32 to vector<8x128xf32>
    %8 = arith.maximumf %6, %7 : vector<8x128xf32>
    %c0_5 = arith.constant 0 : index
    %c0_6 = arith.constant 0 : index
    %9 = vector.load %arg4[%c0_5, %c0_6] : memref<8x128xf32, #tpu.memory_space<vmem>>, vector<8x128xf32>
    tpu.vector_store %arg4[%c0_5, %c0_6], %8 {strides = array<i32>} : memref<8x128xf32, #tpu.memory_space<vmem>>, vector<8x128xf32>,
    return
  }
  func.func @transform_0(%arg0: i32) -> (i32, i32) {
    %c0_i32 = arith.constant 0 : i32
    %c0_i32_0 = arith.constant 0 : i32
    return %arg0, %c0_i32 : i32, i32
  }
  func.func @transform_1(%arg0: i32) -> (i32, i32) {
    %c0_i32 = arith.constant 0 : i32
    %c0_i32_0 = arith.constant 0 : i32
    %c0_i32_1 = arith.constant 0 : i32
    return %c0_i32, %c0_i32_0 : i32, i32
  }
  func.func @transform_2(%arg0: i32) -> (i32, i32) {
    %c0_i32 = arith.constant 0 : i32
    %c0_i32_0 = arith.constant 0 : i32
    %c0_i32_1 = arith.constant 0 : i32
    return %c0_i32, %c0_i32_0 : i32, i32
  }
  func.func @transform_3(%arg0: i32) -> (i32, i32) {
    %c0_i32 = arith.constant 0 : i32
    %c0_i32_0 = arith.constant 0 : i32
    return %arg0, %c0_i32 : i32, i32
  }
}

module attributes {stable_mosaic.version = 11 : i64} {
  func.func @_matmul_kernel(%arg0: i32, %arg1: i32, %arg2: i32, %arg3: memref<8x128xbf16, #tpu.memory_space<vmem>>, %arg4: memref<128x128xbf16, #tpu.memory_space<vmem>>, %arg5: memref<8x128xf32, #tpu.memory_space<vmem>>) attributes {dimension_semantics = [#tpu.dimension_semantics<parallel>, #tpu.dimension_semantics<parallel>, #tpu.dimension_semantics<arbitrary>], iteration_bounds = array<i64: 1, 1, 9>, scalar_prefetch = 0 : i64, scratch_operands = 0 : i64, tpu.core_type = #tpu.core_type<tc>, window_params = [{transform_indices = @transform_0, window_bounds = array<i64: 8, 128>}, {transform_indices = @transform_1, window_bounds = array<i64: 128, 128>}, {transform_indices = @transform_2, window_bounds = array<i64: 8, 128>}]} {
    %c0_i32 = arith.constant 0 : i32
    %0 = arith.cmpi eq, %arg2, %c0_i32 : i32
    %1 = arith.extui %0 : i1 to i32
    %c0_i32_0 = arith.constant 0 : i32
    %2 = arith.cmpi ne, %1, %c0_i32_0 : i32
    scf.if %2 {
      %cst_8 = arith.constant 0.000000e+00 : f32
      %9 = vector.broadcast %cst_8 : f32 to vector<8x128xf32>
      %c0_9 = arith.constant 0 : index
      %c0_10 = arith.constant 0 : index
      %10 = vector.load %arg5[%c0_9, %c0_10] : memref<8x128xf32, #tpu.memory_space<vmem>>, vector<8x128xf32>
      tpu.vector_store %arg5[%c0_9, %c0_10], %9 {strides = array<i32>} : memref<8x128xf32, #tpu.memory_space<vmem>>, vector<8x128xf32>,
    } else {
    }
    %c0 = arith.constant 0 : index
    %c0_1 = arith.constant 0 : index
    %3 = vector.load %arg5[%c0, %c0_1] : memref<8x128xf32, #tpu.memory_space<vmem>>, vector<8x128xf32>
    %c0_2 = arith.constant 0 : index
    %c0_3 = arith.constant 0 : index
    %4 = vector.load %arg3[%c0_2, %c0_3] : memref<8x128xbf16, #tpu.memory_space<vmem>>, vector<8x128xbf16>
    %c0_4 = arith.constant 0 : index
    %c0_5 = arith.constant 0 : index
    %5 = vector.load %arg4[%c0_4, %c0_5] : memref<128x128xbf16, #tpu.memory_space<vmem>>, vector<128x128xbf16>
    %cst = arith.constant dense<0.000000e+00> : vector<8x128xf32>
    %6 = tpu.matmul %4, %5, %cst {dimension_numbers = #tpu.dot_dimension_numbers<[1], [0], [0], [1], [0, 0, 1, 1], [], []>} : vector<8x128xbf16>, vector<128x128xbf16>, vector<8x128xf32> -> vector<8x128xf32>
    %7 = arith.addf %3, %6 : vector<8x128xf32>
    %c0_6 = arith.constant 0 : index
    %c0_7 = arith.constant 0 : index
    %8 = vector.load %arg5[%c0_6, %c0_7] : memref<8x128xf32, #tpu.memory_space<vmem>>, vector<8x128xf32>
    tpu.vector_store %arg5[%c0_6, %c0_7], %7 {strides = array<i32>} : memref<8x128xf32, #tpu.memory_space<vmem>>, vector<8x128xf32>,
    return
  }
  func.func @transform_0(%arg0: i32, %arg1: i32, %arg2: i32) -> (i32, i32) {
    %c0_i32 = arith.constant 0 : i32
    return %arg0, %arg2 : i32, i32
  }
  func.func @transform_1(%arg0: i32, %arg1: i32, %arg2: i32) -> (i32, i32) {
    %c0_i32 = arith.constant 0 : i32
    return %arg2, %arg1 : i32, i32
  }
  func.func @transform_2(%arg0: i32, %arg1: i32, %arg2: i32) -> (i32, i32) {
    %c0_i32 = arith.constant 0 : i32
    return %arg0, %arg1 : i32, i32
  }
}

module attributes {stable_mosaic.version = 11 : i64} {
  func.func @_affine_kernel(%arg0: i32, %arg1: memref<8x128xf32, #tpu.memory_space<vmem>>, %arg2: memref<1x128xf32, #tpu.memory_space<vmem>>, %arg3: memref<1x128xf32, #tpu.memory_space<vmem>>, %arg4: memref<8x128xf32, #tpu.memory_space<vmem>>, %arg5: memref<8x128xf32, #tpu.memory_space<vmem>>) attributes {dimension_semantics = [#tpu.dimension_semantics<parallel>], iteration_bounds = array<i64: 1>, scalar_prefetch = 0 : i64, scratch_operands = 0 : i64, tpu.core_type = #tpu.core_type<tc>, window_params = [{transform_indices = @transform_0, window_bounds = array<i64: 8, 128>}, {pipeline_mode = #tpu.pipeline_mode<synchronous>, transform_indices = @transform_1, window_bounds = array<i64: 1, 128>}, {pipeline_mode = #tpu.pipeline_mode<synchronous>, transform_indices = @transform_2, window_bounds = array<i64: 1, 128>}, {transform_indices = @transform_3, window_bounds = array<i64: 8, 128>}, {transform_indices = @transform_4, window_bounds = array<i64: 8, 128>}]} {
    %c0 = arith.constant 0 : index
    %c0_0 = arith.constant 0 : index
    %0 = vector.load %arg1[%c0, %c0_0] : memref<8x128xf32, #tpu.memory_space<vmem>>, vector<8x128xf32>
    %c0_1 = arith.constant 0 : index
    %c0_2 = arith.constant 0 : index
    %1 = vector.load %arg2[%c0_1, %c0_2] : memref<1x128xf32, #tpu.memory_space<vmem>>, vector<1x128xf32>
    %2 = vector.broadcast %1 : vector<1x128xf32> to vector<8x128xf32>
    %3 = arith.mulf %0, %2 : vector<8x128xf32>
    %c0_3 = arith.constant 0 : index
    %c0_4 = arith.constant 0 : index
    %4 = vector.load %arg3[%c0_3, %c0_4] : memref<1x128xf32, #tpu.memory_space<vmem>>, vector<1x128xf32>
    %5 = vector.broadcast %4 : vector<1x128xf32> to vector<8x128xf32>
    %6 = arith.addf %3, %5 : vector<8x128xf32>
    %c0_5 = arith.constant 0 : index
    %c0_6 = arith.constant 0 : index
    %7 = vector.load %arg4[%c0_5, %c0_6] : memref<8x128xf32, #tpu.memory_space<vmem>>, vector<8x128xf32>
    %8 = arith.addf %6, %7 : vector<8x128xf32>
    %c0_7 = arith.constant 0 : index
    %c0_8 = arith.constant 0 : index
    %9 = vector.load %arg5[%c0_7, %c0_8] : memref<8x128xf32, #tpu.memory_space<vmem>>, vector<8x128xf32>
    tpu.vector_store %arg5[%c0_7, %c0_8], %8 {strides = array<i32>} : memref<8x128xf32, #tpu.memory_space<vmem>>, vector<8x128xf32>,
    return
  }
  func.func @transform_0(%arg0: i32) -> (i32, i32) {
    %c0_i32 = arith.constant 0 : i32
    %c0_i32_0 = arith.constant 0 : i32
    return %arg0, %c0_i32 : i32, i32
  }
  func.func @transform_1(%arg0: i32) -> (i32, i32) {
    %c0_i32 = arith.constant 0 : i32
    %c0_i32_0 = arith.constant 0 : i32
    %c0_i32_1 = arith.constant 0 : i32
    return %c0_i32, %c0_i32_0 : i32, i32
  }
  func.func @transform_2(%arg0: i32) -> (i32, i32) {
    %c0_i32 = arith.constant 0 : i32
    %c0_i32_0 = arith.constant 0 : i32
    %c0_i32_1 = arith.constant 0 : i32
    return %c0_i32, %c0_i32_0 : i32, i32
  }
  func.func @transform_3(%arg0: i32) -> (i32, i32) {
    %c0_i32 = arith.constant 0 : i32
    %c0_i32_0 = arith.constant 0 : i32
    return %arg0, %c0_i32 : i32, i32
  }
  func.func @transform_4(%arg0: i32) -> (i32, i32) {
    %c0_i32 = arith.constant 0 : i32
    %c0_i32_0 = arith.constant 0 : i32
    return %arg0, %c0_i32 : i32, i32
  }
}

module attributes {stable_mosaic.version = 11 : i64} {
  func.func @_matmul_kernel(%arg0: i32, %arg1: i32, %arg2: i32, %arg3: memref<8x512xbf16, #tpu.memory_space<vmem>>, %arg4: memref<512x128xbf16, #tpu.memory_space<vmem>>, %arg5: memref<8x128xf32, #tpu.memory_space<vmem>>) attributes {dimension_semantics = [#tpu.dimension_semantics<parallel>, #tpu.dimension_semantics<parallel>, #tpu.dimension_semantics<arbitrary>], iteration_bounds = array<i64: 1, 1, 1>, scalar_prefetch = 0 : i64, scratch_operands = 0 : i64, tpu.core_type = #tpu.core_type<tc>, window_params = [{transform_indices = @transform_0, window_bounds = array<i64: 8, 512>}, {transform_indices = @transform_1, window_bounds = array<i64: 512, 128>}, {transform_indices = @transform_2, window_bounds = array<i64: 8, 128>}]} {
    %c0_i32 = arith.constant 0 : i32
    %0 = arith.cmpi eq, %arg2, %c0_i32 : i32
    %1 = arith.extui %0 : i1 to i32
    %c0_i32_0 = arith.constant 0 : i32
    %2 = arith.cmpi ne, %1, %c0_i32_0 : i32
    scf.if %2 {
      %cst_8 = arith.constant 0.000000e+00 : f32
      %9 = vector.broadcast %cst_8 : f32 to vector<8x128xf32>
      %c0_9 = arith.constant 0 : index
      %c0_10 = arith.constant 0 : index
      %10 = vector.load %arg5[%c0_9, %c0_10] : memref<8x128xf32, #tpu.memory_space<vmem>>, vector<8x128xf32>
      tpu.vector_store %arg5[%c0_9, %c0_10], %9 {strides = array<i32>} : memref<8x128xf32, #tpu.memory_space<vmem>>, vector<8x128xf32>,
    } else {
    }
    %c0 = arith.constant 0 : index
    %c0_1 = arith.constant 0 : index
    %3 = vector.load %arg5[%c0, %c0_1] : memref<8x128xf32, #tpu.memory_space<vmem>>, vector<8x128xf32>
    %c0_2 = arith.constant 0 : index
    %c0_3 = arith.constant 0 : index
    %4 = vector.load %arg3[%c0_2, %c0_3] : memref<8x512xbf16, #tpu.memory_space<vmem>>, vector<8x512xbf16>
    %c0_4 = arith.constant 0 : index
    %c0_5 = arith.constant 0 : index
    %5 = vector.load %arg4[%c0_4, %c0_5] : memref<512x128xbf16, #tpu.memory_space<vmem>>, vector<512x128xbf16>
    %cst = arith.constant dense<0.000000e+00> : vector<8x128xf32>
    %6 = tpu.matmul %4, %5, %cst {dimension_numbers = #tpu.dot_dimension_numbers<[1], [0], [0], [1], [0, 0, 1, 1], [], []>} : vector<8x512xbf16>, vector<512x128xbf16>, vector<8x128xf32> -> vector<8x128xf32>
    %7 = arith.addf %3, %6 : vector<8x128xf32>
    %c0_6 = arith.constant 0 : index
    %c0_7 = arith.constant 0 : index
    %8 = vector.load %arg5[%c0_6, %c0_7] : memref<8x128xf32, #tpu.memory_space<vmem>>, vector<8x128xf32>
    tpu.vector_store %arg5[%c0_6, %c0_7], %7 {strides = array<i32>} : memref<8x128xf32, #tpu.memory_space<vmem>>, vector<8x128xf32>,
    return
  }
  func.func @transform_0(%arg0: i32, %arg1: i32, %arg2: i32) -> (i32, i32) {
    %c0_i32 = arith.constant 0 : i32
    return %arg0, %arg2 : i32, i32
  }
  func.func @transform_1(%arg0: i32, %arg1: i32, %arg2: i32) -> (i32, i32) {
    %c0_i32 = arith.constant 0 : i32
    return %arg2, %arg1 : i32, i32
  }
  func.func @transform_2(%arg0: i32, %arg1: i32, %arg2: i32) -> (i32, i32) {
    %c0_i32 = arith.constant 0 : i32
    return %arg0, %arg1 : i32, i32
  }
}

module attributes {stable_mosaic.version = 11 : i64} {
  func.func @_matmul_kernel(%arg0: i32, %arg1: i32, %arg2: i32, %arg3: memref<16x512xbf16, #tpu.memory_space<vmem>>, %arg4: memref<512x128xbf16, #tpu.memory_space<vmem>>, %arg5: memref<16x128xf32, #tpu.memory_space<vmem>>) attributes {dimension_semantics = [#tpu.dimension_semantics<parallel>, #tpu.dimension_semantics<parallel>, #tpu.dimension_semantics<arbitrary>], iteration_bounds = array<i64: 1, 1, 1>, scalar_prefetch = 0 : i64, scratch_operands = 0 : i64, tpu.core_type = #tpu.core_type<tc>, window_params = [{transform_indices = @transform_0, window_bounds = array<i64: 16, 512>}, {transform_indices = @transform_1, window_bounds = array<i64: 512, 128>}, {transform_indices = @transform_2, window_bounds = array<i64: 16, 128>}]} {
    %c0_i32 = arith.constant 0 : i32
    %0 = arith.cmpi eq, %arg2, %c0_i32 : i32
    %1 = arith.extui %0 : i1 to i32
    %c0_i32_0 = arith.constant 0 : i32
    %2 = arith.cmpi ne, %1, %c0_i32_0 : i32
    scf.if %2 {
      %cst_8 = arith.constant 0.000000e+00 : f32
      %9 = vector.broadcast %cst_8 : f32 to vector<16x128xf32>
      %c0_9 = arith.constant 0 : index
      %c0_10 = arith.constant 0 : index
      %10 = vector.load %arg5[%c0_9, %c0_10] : memref<16x128xf32, #tpu.memory_space<vmem>>, vector<16x128xf32>
      tpu.vector_store %arg5[%c0_9, %c0_10], %9 {strides = array<i32>} : memref<16x128xf32, #tpu.memory_space<vmem>>, vector<16x128xf32>,
    } else {
    }
    %c0 = arith.constant 0 : index
    %c0_1 = arith.constant 0 : index
    %3 = vector.load %arg5[%c0, %c0_1] : memref<16x128xf32, #tpu.memory_space<vmem>>, vector<16x128xf32>
    %c0_2 = arith.constant 0 : index
    %c0_3 = arith.constant 0 : index
    %4 = vector.load %arg3[%c0_2, %c0_3] : memref<16x512xbf16, #tpu.memory_space<vmem>>, vector<16x512xbf16>
    %c0_4 = arith.constant 0 : index
    %c0_5 = arith.constant 0 : index
    %5 = vector.load %arg4[%c0_4, %c0_5] : memref<512x128xbf16, #tpu.memory_space<vmem>>, vector<512x128xbf16>
    %cst = arith.constant dense<0.000000e+00> : vector<16x128xf32>
    %6 = tpu.matmul %4, %5, %cst {dimension_numbers = #tpu.dot_dimension_numbers<[1], [0], [0], [1], [0, 0, 1, 1], [], []>} : vector<16x512xbf16>, vector<512x128xbf16>, vector<16x128xf32> -> vector<16x128xf32>
    %7 = arith.addf %3, %6 : vector<16x128xf32>
    %c0_6 = arith.constant 0 : index
    %c0_7 = arith.constant 0 : index
    %8 = vector.load %arg5[%c0_6, %c0_7] : memref<16x128xf32, #tpu.memory_space<vmem>>, vector<16x128xf32>
    tpu.vector_store %arg5[%c0_6, %c0_7], %7 {strides = array<i32>} : memref<16x128xf32, #tpu.memory_space<vmem>>, vector<16x128xf32>,
    return
  }
  func.func @transform_0(%arg0: i32, %arg1: i32, %arg2: i32) -> (i32, i32) {
    %c0_i32 = arith.constant 0 : i32
    return %arg0, %arg2 : i32, i32
  }
  func.func @transform_1(%arg0: i32, %arg1: i32, %arg2: i32) -> (i32, i32) {
    %c0_i32 = arith.constant 0 : i32
    return %arg2, %arg1 : i32, i32
  }
  func.func @transform_2(%arg0: i32, %arg1: i32, %arg2: i32) -> (i32, i32) {
    %c0_i32 = arith.constant 0 : i32
    return %arg0, %arg1 : i32, i32
  }
}

module attributes {stable_mosaic.version = 11 : i64} {
  func.func @_matmul_kernel(%arg0: i32, %arg1: i32, %arg2: i32, %arg3: memref<256x512xbf16, #tpu.memory_space<vmem>>, %arg4: memref<512x128xbf16, #tpu.memory_space<vmem>>, %arg5: memref<1x128xf32, #tpu.memory_space<vmem>>, %arg6: memref<256x128xf32, #tpu.memory_space<vmem>>) attributes {dimension_semantics = [#tpu.dimension_semantics<parallel>, #tpu.dimension_semantics<parallel>, #tpu.dimension_semantics<arbitrary>], iteration_bounds = array<i64: 4, 1, 1>, scalar_prefetch = 0 : i64, scratch_operands = 0 : i64, tpu.core_type = #tpu.core_type<tc>, window_params = [{transform_indices = @transform_0, window_bounds = array<i64: 256, 512>}, {transform_indices = @transform_1, window_bounds = array<i64: 512, 128>}, {transform_indices = @transform_2, window_bounds = array<i64: 1, 128>}, {transform_indices = @transform_3, window_bounds = array<i64: 256, 128>}]} {
    %c0_i32 = arith.constant 0 : i32
    %0 = arith.cmpi eq, %arg2, %c0_i32 : i32
    %1 = arith.extui %0 : i1 to i32
    %c0_i32_0 = arith.constant 0 : i32
    %2 = arith.cmpi ne, %1, %c0_i32_0 : i32
    scf.if %2 {
      %cst_10 = arith.constant 0.000000e+00 : f32
      %12 = vector.broadcast %cst_10 : f32 to vector<256x128xf32>
      %c0_11 = arith.constant 0 : index
      %c0_12 = arith.constant 0 : index
      %13 = vector.load %arg6[%c0_11, %c0_12] : memref<256x128xf32, #tpu.memory_space<vmem>>, vector<256x128xf32>
      tpu.vector_store %arg6[%c0_11, %c0_12], %12 {strides = array<i32>} : memref<256x128xf32, #tpu.memory_space<vmem>>, vector<256x128xf32>,
    } else {
    }
    %c0 = arith.constant 0 : index
    %c0_1 = arith.constant 0 : index
    %3 = vector.load %arg6[%c0, %c0_1] : memref<256x128xf32, #tpu.memory_space<vmem>>, vector<256x128xf32>
    %c0_2 = arith.constant 0 : index
    %c0_3 = arith.constant 0 : index
    %4 = vector.load %arg3[%c0_2, %c0_3] : memref<256x512xbf16, #tpu.memory_space<vmem>>, vector<256x512xbf16>
    %c0_4 = arith.constant 0 : index
    %c0_5 = arith.constant 0 : index
    %5 = vector.load %arg4[%c0_4, %c0_5] : memref<512x128xbf16, #tpu.memory_space<vmem>>, vector<512x128xbf16>
    %cst = arith.constant dense<0.000000e+00> : vector<256x128xf32>
    %6 = tpu.matmul %4, %5, %cst {dimension_numbers = #tpu.dot_dimension_numbers<[1], [0], [0], [1], [0, 0, 1, 1], [], []>} : vector<256x512xbf16>, vector<512x128xbf16>, vector<256x128xf32> -> vector<256x128xf32>
    %7 = arith.addf %3, %6 : vector<256x128xf32>
    %c0_6 = arith.constant 0 : index
    %c0_7 = arith.constant 0 : index
    %8 = vector.load %arg6[%c0_6, %c0_7] : memref<256x128xf32, #tpu.memory_space<vmem>>, vector<256x128xf32>
    tpu.vector_store %arg6[%c0_6, %c0_7], %7 {strides = array<i32>} : memref<256x128xf32, #tpu.memory_space<vmem>>, vector<256x128xf32>,
    %c0_i32_8 = arith.constant 0 : i32
    %9 = arith.cmpi eq, %arg2, %c0_i32_8 : i32
    %10 = arith.extui %9 : i1 to i32
    %c0_i32_9 = arith.constant 0 : i32
    %11 = arith.cmpi ne, %10, %c0_i32_9 : i32
    scf.if %11 {
      %c0_10 = arith.constant 0 : index
      %c0_11 = arith.constant 0 : index
      %12 = vector.load %arg6[%c0_10, %c0_11] : memref<256x128xf32, #tpu.memory_space<vmem>>, vector<256x128xf32>
      %c0_12 = arith.constant 0 : index
      %c0_13 = arith.constant 0 : index
      %13 = vector.load %arg5[%c0_12, %c0_13] : memref<1x128xf32, #tpu.memory_space<vmem>>, vector<1x128xf32>
      %14 = vector.broadcast %13 : vector<1x128xf32> to vector<256x128xf32>
      %15 = arith.addf %12, %14 : vector<256x128xf32>
      %16 = math.tanh %15 : vector<256x128xf32>
      %c0_14 = arith.constant 0 : index
      %c0_15 = arith.constant 0 : index
      %17 = vector.load %arg6[%c0_14, %c0_15] : memref<256x128xf32, #tpu.memory_space<vmem>>, vector<256x128xf32>
      tpu.vector_store %arg6[%c0_14, %c0_15], %16 {strides = array<i32>} : memref<256x128xf32, #tpu.memory_space<vmem>>, vector<256x128xf32>,
    } else {
    }
    return
  }
  func.func @transform_0(%arg0: i32, %arg1: i32, %arg2: i32) -> (i32, i32) {
    %c0_i32 = arith.constant 0 : i32
    return %arg0, %arg2 : i32, i32
  }
  func.func @transform_1(%arg0: i32, %arg1: i32, %arg2: i32) -> (i32, i32) {
    %c0_i32 = arith.constant 0 : i32
    return %arg2, %arg1 : i32, i32
  }
  func.func @transform_2(%arg0: i32, %arg1: i32, %arg2: i32) -> (i32, i32) {
    %c0_i32 = arith.constant 0 : i32
    %c0_i32_0 = arith.constant 0 : i32
    return %c0_i32, %arg1 : i32, i32
  }
  func.func @transform_3(%arg0: i32, %arg1: i32, %arg2: i32) -> (i32, i32) {
    %c0_i32 = arith.constant 0 : i32
    return %arg0, %arg1 : i32, i32
  }
}

</mosaic_0001>

<bundles_post_ra>
// kernel: derain_forward.52
= control target key start
LH: loop header
LB: loop body
LE: loop exit
PB: predicated region body
PF: predicated region fallthrough
CT: control target
= control target key end

     0   :  { %s1260_s9 = smov 0   ;;  %s1262_s10 = smov 0   ;;  %s1416_s0 = inlined_call_operand.vmem [shape: bf16[1024,256], index: 0, kind: input, shape index: {}]   ;;  %s1417_s1 = inlined_call_operand.vmem [shape: bf16[256,128], index: 1, kind: input, shape index: {}]   ;;  %s1418_s2 = inlined_call_operand.vmem [shape: f32[1024,128], index: 2, kind: output, shape index: {}]  }
   0x1   :  { %s1264_s11 = smov 0  }
   0x2 LB: > { %s31_s12 = sadd.s32 1, %s1239_s10  ;;  %p947_p0 = scmp.ge.s32.totalorder %s1243_s11, 1  ;;  %s1243_s11 = sphi %s1264_s11, %s12_s11   ;;  %s1239_s10 = sphi %s1262_s10, %s1420_s10   ;;  %s1235_s9 = sphi %s1260_s9, %s1419_s9  }
   0x3   : > { %p33_p1 = scmp.ge.s32.totalorder %s31_s12, 4  ;;  %p158_p2 = scmp.lt.s32.totalorder %s1243_s11, 5 }
   0x5   : > { %s1422_s12 = smov (%p33_p1, %s31_s12), 0  ;;  %p159_p3 = pnand %p947_p0, %p158_p2 }
   0x6   : > { %v1157_v0 = vld [vmem:[%s1417_s1 + $0x40] sm:$0xff] (!%p159_p3)   ;;  %s948_s15 = sshll.u32 (!%p159_p3), %s1235_s9, 5  ;;  %v1159_v2 = vld [vmem:[%s1417_s1 + $0x48] sm:$0xff] (!%p159_p3)   ;;  %v1161_v4 = vld [vmem:[%s1417_s1 + $0x50] sm:$0xff] (!%p159_p3)  }
   0x7   : > { %162 = sbr.rel (%p159_p3) target bundleno = 313 (0x139), region = 28  ;;  %v1158_v1 = vld [vmem:[%s1417_s1] sm:$0xff] (!%p159_p3)   ;;  %1004 = vmatprep.subr.bf16.mxu0 (!%p159_p3), %v1157_v0  ;;  %1116 = vmatprep.subr.bf16.mxu1 (!%p159_p3), %v1157_v0  ;;  %v1160_v3 = vld [vmem:[%s1417_s1 + $0x8] sm:$0xff] (!%p159_p3)   ;;  %p198_p4 = scmp.lt.s32.totalorder (!%p159_p3), %s948_s15, 127  ;;  %v1162_v5 = vld [vmem:[%s1417_s1 + $0x10] sm:$0xff] (!%p159_p3)  }
   0x8   : > { %1005 = vmatpush3.bf16.msra.mxu0 (!%p159_p3), %v1158_v1  ;;  %1124 = vmatpush3.bf16.msra.mxu1 (!%p159_p3), %v1158_v1  ;;  %v1163_v6 = vld [vmem:[%s1417_s1 + $0x58] sm:$0xff] (!%p159_p3)   ;;  %v1165_v8 = vld [vmem:[%s1417_s1 + $0x60] sm:$0xff] (!%p159_p3)   ;;  %v1167_v10 = vld [vmem:[%s1417_s1 + $0x68] sm:$0xff] (!%p159_p3)  }
   0x9   : > { %1006 = vmatprep.subr.bf16.mxu0 (!%p159_p3), %v1159_v2  ;;  %1117 = vmatprep.subr.bf16.mxu1 (!%p159_p3), %v1159_v2  ;;  %v1164_v7 = vld [vmem:[%s1417_s1 + $0x18] sm:$0xff] (!%p159_p3)   ;;  %v1166_v9 = vld [vmem:[%s1417_s1 + $0x20] sm:$0xff] (!%p159_p3)   ;;  %v1168_v13 = vld [vmem:[%s1417_s1 + $0x28] sm:$0xff] (!%p159_p3)  }
   0xa   : > { %v1169_v14 = vld [vmem:[%s1417_s1 + $0x70] sm:$0xff] (!%p159_p3)   ;;  %v1171_v16 = vld [vmem:[%s1417_s1 + $0x78] sm:$0xff] (!%p159_p3)  }
   0xb   : > { %v1170_v15 = vld [vmem:[%s1417_s1 + $0x30] sm:$0xff] (!%p159_p3)   ;;  %v1172_v17 = vld [vmem:[%s1417_s1 + $0x38] sm:$0xff] (!%p159_p3)  }
   0xc   : > { %1007 = vmatpush3.bf16.msra.mxu0 (!%p159_p3), %v1160_v3  ;;  %1125 = vmatpush3.bf16.msra.mxu1 (!%p159_p3), %v1160_v3 }
   0xd   : > { %1008 = vmatprep.subr.bf16.mxu0 (!%p159_p3), %v1161_v4  ;;  %1118 = vmatprep.subr.bf16.mxu1 (!%p159_p3), %v1161_v4 }
   0xe   : > { %s1424_s15 = smov (!%p198_p4, %s948_s15), 127 }
   0xf   : > { %s1003_s30 = sshll.u32 %s1424_s15, 3 }
  0x10   : > { %1009 = vmatpush3.bf16.msra.mxu0 %v1162_v5  ;;  %1126 = vmatpush3.bf16.msra.mxu1 %v1162_v5  ;;  %s1313_s7 = scalar_lea.vmem %s1416_s0, %s1003_s30  ;;  %s1373_s28 = scalar_lea.vmem %s1418_s2, %s1003_s30 }
  0x11   : > { %1010 = vmatprep.subr.bf16.mxu0 %v1163_v6  ;;  %1119 = vmatprep.subr.bf16.mxu1 %v1163_v6  ;;  %v1175_v11 = vld [vmem:[%s1313_s7 + $0x4] ss:$8 sps:$4 sm:$0xff]   ;;  %v1173_v18 = vld [vmem:[%s1313_s7] ss:$8 sps:$4 sm:$0xff]   ;;  %v1179_v20 = vld [vmem:[%s1313_s7 + $0x14] ss:$8 sps:$4 sm:$0xff]  }
  0x12   : > { %v1178_v12 = vld [vmem:[%s1313_s7 + $0x84] ss:$8 sps:$4 sm:$0xff]   ;;  %647 = vmatprep.mubr.bf16.mxu0 %v1175_v11  ;;  %v1176_v19 = vld [vmem:[%s1313_s7 + $0x80] ss:$8 sps:$4 sm:$0xff]   ;;  %v1181_v21 = vld [vmem:[%s1313_s7 + $0x94] ss:$8 sps:$4 sm:$0xff]  }
  0x13   : > { %711 = vmatprep.mubr.bf16.mxu1 %v1178_v12  ;;  %v1183_v22 = vld [vmem:[%s1313_s7 + $0x10] ss:$8 sps:$4 sm:$0xff]   ;;  %v1185_v24 = vld [vmem:[%s1313_s7 + $0x24] ss:$8 sps:$4 sm:$0xff]   ;;  %v1189_v26 = vld [vmem:[%s1313_s7 + $0x20] ss:$8 sps:$4 sm:$0xff]  }
  0x14   : > { %1011 = vmatpush3.bf16.msra.mxu0 %v1164_v7  ;;  %1127 = vmatpush3.bf16.msra.mxu1 %v1164_v7  ;;  %v1184_v23 = vld [vmem:[%s1313_s7 + $0x90] ss:$8 sps:$4 sm:$0xff]   ;;  %v1187_v25 = vld [vmem:[%s1313_s7 + $0xa4] ss:$8 sps:$4 sm:$0xff]   ;;  %v1190_v27 = vld [vmem:[%s1313_s7 + $0xa0] ss:$8 sps:$4 sm:$0xff]  }
  0x15   : > { %1012 = vmatprep.subr.bf16.mxu0 %v1165_v8  ;;  %1120 = vmatprep.subr.bf16.mxu1 %v1165_v8  ;;  %v1191_v28 = vld [vmem:[%s1313_s7 + $0x34] ss:$8 sps:$4 sm:$0xff]   ;;  %v1195_v30 = vld [vmem:[%s1313_s7 + $0x30] ss:$8 sps:$4 sm:$0xff]   ;;  %v1197_v32 = vld [vmem:[%s1313_s7 + $0x44] ss:$8 sps:$4 sm:$0xff]  }
  0x16   : > { %v1193_v29 = vld [vmem:[%s1313_s7 + $0xb4] ss:$8 sps:$4 sm:$0xff]   ;;  %v1196_v31 = vld [vmem:[%s1313_s7 + $0xb0] ss:$8 sps:$4 sm:$0xff]   ;;  %v1199_v33 = vld [vmem:[%s1313_s7 + $0xc4] ss:$8 sps:$4 sm:$0xff]  }
  0x17   : > { %v1201_v34 = vld [vmem:[%s1313_s7 + $0x40] ss:$8 sps:$4 sm:$0xff]   ;;  %v1203_v36 = vld [vmem:[%s1313_s7 + $0x54] ss:$8 sps:$4 sm:$0xff]   ;;  %v1207_v38 = vld [vmem:[%s1313_s7 + $0x50] ss:$8 sps:$4 sm:$0xff]  }
  0x18   : > { %1013 = vmatpush3.bf16.msra.mxu0 %v1166_v9  ;;  %1128 = vmatpush3.bf16.msra.mxu1 %v1166_v9  ;;  %v1202_v35 = vld [vmem:[%s1313_s7 + $0xc0] ss:$8 sps:$4 sm:$0xff]   ;;  %v1205_v37 = vld [vmem:[%s1313_s7 + $0xd4] ss:$8 sps:$4 sm:$0xff]   ;;  %v1208_v39 = vld [vmem:[%s1313_s7 + $0xd0] ss:$8 sps:$4 sm:$0xff]  }
  0x19   : > { %1014 = vmatprep.subr.bf16.mxu0 %v1167_v10  ;;  %1121 = vmatprep.subr.bf16.mxu1 %v1167_v10  ;;  %v1209_v40 = vld [vmem:[%s1313_s7 + $0x64] ss:$8 sps:$4 sm:$0xff]   ;;  %v1213_v42 = vld [vmem:[%s1313_s7 + $0x60] ss:$8 sps:$4 sm:$0xff]   ;;  %v1215_v44 = vld [vmem:[%s1313_s7 + $0x74] ss:$8 sps:$4 sm:$0xff]  }
  0x1a   : > { %v1211_v41 = vld [vmem:[%s1313_s7 + $0xe4] ss:$8 sps:$4 sm:$0xff]   ;;  %v1214_v43 = vld [vmem:[%s1313_s7 + $0xe0] ss:$8 sps:$4 sm:$0xff]   ;;  %v1217_v45 = vld [vmem:[%s1313_s7 + $0xf4] ss:$8 sps:$4 sm:$0xff]  }
  0x1b   : > { %v1219_v46 = vld [vmem:[%s1313_s7 + $0x70] ss:$8 sps:$4 sm:$0xff]  }
  0x1c   : > { %1015 = vmatpush3.bf16.msra.mxu0 %v1168_v13  ;;  %1129 = vmatpush3.bf16.msra.mxu1 %v1168_v13  ;;  %v1220_v47 = vld [vmem:[%s1313_s7 + $0xf0] ss:$8 sps:$4 sm:$0xff]  }
  0x1d   : > { %1016 = vmatprep.subr.bf16.mxu0 %v1169_v14  ;;  %1122 = vmatprep.subr.bf16.mxu1 %v1169_v14 }
  0x20   : > { %1017 = vmatpush3.bf16.msra.mxu0 %v1170_v15  ;;  %1130 = vmatpush3.bf16.msra.mxu1 %v1170_v15 }
  0x21   : > { %1018 = vmatprep.subr.bf16.mxu0 %v1171_v16  ;;  %1123 = vmatprep.subr.bf16.mxu1 %v1171_v16 }
  0x24   : > { %1019 = vmatpush3.bf16.msra.mxu0 %v1172_v17  ;;  %1131 = vmatpush3.bf16.msra.mxu1 %v1172_v17 }
  0x27   : > { %648 = vmatmul.mubr.bf16.vlgmr.msra.gmra.mrb[0].mxu0 %v1173_v18  ;;  %712 = vmatmul.mubr.bf16.vlgmr.msra.gmra.mrb[0].mxu1 %v1176_v19 }
  0x28   : > { %655 = vmatprep.mubr.bf16.mxu0 %v1179_v20  ;;  %719 = vmatprep.mubr.bf16.mxu1 %v1181_v21 }
  0x2f   : > { %656 = vmatmul.mubr.bf16.gmra.mrb[4].mxu0 %v1183_v22  ;;  %720 = vmatmul.mubr.bf16.gmra.mrb[4].mxu1 %v1184_v23 }
  0x30   : > { %663 = vmatprep.mubr.bf16.mxu0 %v1185_v24  ;;  %727 = vmatprep.mubr.bf16.mxu1 %v1187_v25 }
  0x37   : > { %664 = vmatmul.mubr.bf16.gmra.mrb[8].mxu0 %v1189_v26  ;;  %728 = vmatmul.mubr.bf16.gmra.mrb[8].mxu1 %v1190_v27 }
  0x38   : > { %671 = vmatprep.mubr.bf16.mxu0 %v1191_v28  ;;  %735 = vmatprep.mubr.bf16.mxu1 %v1193_v29 }
  0x3f   : > { %672 = vmatmul.mubr.bf16.gmra.mrb[12].mxu0 %v1195_v30  ;;  %736 = vmatmul.mubr.bf16.gmra.mrb[12].mxu1 %v1196_v31 }
  0x40   : > { %679 = vmatprep.mubr.bf16.mxu0 %v1197_v32  ;;  %743 = vmatprep.mubr.bf16.mxu1 %v1199_v33 }
  0x47   : > { %680 = vmatmul.mubr.bf16.gmra.mrb[16].mxu0 %v1201_v34  ;;  %744 = vmatmul.mubr.bf16.gmra.mrb[16].mxu1 %v1202_v35 }
  0x48   : > { %687 = vmatprep.mubr.bf16.mxu0 %v1203_v36  ;;  %751 = vmatprep.mubr.bf16.mxu1 %v1205_v37 }
  0x4f   : > { %688 = vmatmul.mubr.bf16.gmra.mrb[20].mxu0 %v1207_v38  ;;  %752 = vmatmul.mubr.bf16.gmra.mrb[20].mxu1 %v1208_v39 }
  0x50   : > { %695 = vmatprep.mubr.bf16.mxu0 %v1209_v40  ;;  %759 = vmatprep.mubr.bf16.mxu1 %v1211_v41 }
  0x57   : > { %696 = vmatmul.mubr.bf16.gmra.mrb[24].mxu0 %v1213_v42  ;;  %760 = vmatmul.mubr.bf16.gmra.mrb[24].mxu1 %v1214_v43 }
  0x58   : > { %703 = vmatprep.mubr.bf16.mxu0 %v1215_v44  ;;  %767 = vmatprep.mubr.bf16.mxu1 %v1217_v45 }
  0x5f   : > { %704 = vmatmul.mubr.bf16.gmra.mrb[28].mxu0 %v1219_v46  ;;  %768 = vmatmul.mubr.bf16.gmra.mrb[28].mxu1 %v1220_v47 }
  0xfa   : > { %v1020_v48 = vpop.f32.mrb[0].mxu0  ;;  %v1068_v49 = vpop.f32.mrb[0].mxu1 }
  0xfb   : > { %v1021_v50 = vpop.f32.mrb[1].mxu0  ;;  %v1069_v51 = vpop.f32.mrb[1].mxu1 }
  0xfc   : > { %v1022_v52 = vadd.f32 %v1021_v50, %v1020_v48  ;;  %v1070_v53 = vadd.f32 %v1069_v51, %v1068_v49  ;;  %v1023_v54 = vpop.f32.mrb[2].mxu0  ;;  %v1071_v55 = vpop.f32.mrb[2].mxu1 }
  0xfd   : > { %v1024_v56 = vpop.f32.mrb[3].mxu0  ;;  %v1072_v57 = vpop.f32.mrb[3].mxu1 }
  0xfe   : > { %v1025_v58 = vadd.f32 %v1024_v56, %v1023_v54  ;;  %v1073_v59 = vadd.f32 %v1072_v57, %v1071_v55  ;;  %808 = vst [vmem:[%s1373_s28] sm:$0xff] %v1022_v52  ;;  %824 = vst [vmem:[%s1373_s28 + $0x80] sm:$0xff] %v1070_v53 }
 0x100   : > { %809 = vst [vmem:[%s1373_s28 + $0x8] sm:$0xff] %v1025_v58  ;;  %825 = vst [vmem:[%s1373_s28 + $0x88] sm:$0xff] %v1073_v59 }
 0x102   : > { %v1026_v60 = vpop.f32.mrb[4].mxu0  ;;  %v1074_v61 = vpop.f32.mrb[4].mxu1 }
 0x103   : > { %v1027_v62 = vpop.f32.mrb[5].mxu0  ;;  %v1075_v63 = vpop.f32.mrb[5].mxu1 }
 0x104   : > { %v1028_v0 = vadd.f32 %v1027_v62, %v1026_v60  ;;  %v1076_v1 = vadd.f32 %v1075_v63, %v1074_v61  ;;  %v1029_v2 = vpop.f32.mrb[6].mxu0  ;;  %v1077_v3 = vpop.f32.mrb[6].mxu1 }
 0x105   : > { %v1030_v4 = vpop.f32.mrb[7].mxu0  ;;  %v1078_v5 = vpop.f32.mrb[7].mxu1 }
 0x106   : > { %v1031_v6 = vadd.f32 %v1030_v4, %v1029_v2  ;;  %v1079_v7 = vadd.f32 %v1078_v5, %v1077_v3  ;;  %810 = vst [vmem:[%s1373_s28 + $0x10] sm:$0xff] %v1028_v0  ;;  %826 = vst [vmem:[%s1373_s28 + $0x90] sm:$0xff] %v1076_v1 }
 0x108   : > { %811 = vst [vmem:[%s1373_s28 + $0x18] sm:$0xff] %v1031_v6  ;;  %827 = vst [vmem:[%s1373_s28 + $0x98] sm:$0xff] %v1079_v7 }
 0x10a   : > { %v1032_v8 = vpop.f32.mrb[8].mxu0  ;;  %v1080_v9 = vpop.f32.mrb[8].mxu1 }
 0x10b   : > { %v1033_v10 = vpop.f32.mrb[9].mxu0  ;;  %v1081_v11 = vpop.f32.mrb[9].mxu1 }
 0x10c   : > { %v1034_v12 = vadd.f32 %v1033_v10, %v1032_v8  ;;  %v1082_v13 = vadd.f32 %v1081_v11, %v1080_v9  ;;  %v1035_v14 = vpop.f32.mrb[10].mxu0  ;;  %v1083_v15 = vpop.f32.mrb[10].mxu1 }
 0x10d   : > { %v1036_v16 = vpop.f32.mrb[11].mxu0  ;;  %v1084_v17 = vpop.f32.mrb[11].mxu1 }
 0x10e   : > { %v1037_v18 = vadd.f32 %v1036_v16, %v1035_v14  ;;  %v1085_v19 = vadd.f32 %v1084_v17, %v1083_v15  ;;  %812 = vst [vmem:[%s1373_s28 + $0x20] sm:$0xff] %v1034_v12  ;;  %828 = vst [vmem:[%s1373_s28 + $0xa0] sm:$0xff] %v1082_v13 }
 0x110   : > { %813 = vst [vmem:[%s1373_s28 + $0x28] sm:$0xff] %v1037_v18  ;;  %829 = vst [vmem:[%s1373_s28 + $0xa8] sm:$0xff] %v1085_v19 }
 0x112   : > { %v1038_v20 = vpop.f32.mrb[12].mxu0  ;;  %v1086_v21 = vpop.f32.mrb[12].mxu1 }
 0x113   : > { %v1039_v22 = vpop.f32.mrb[13].mxu0  ;;  %v1087_v23 = vpop.f32.mrb[13].mxu1 }
 0x114   : > { %v1040_v24 = vadd.f32 %v1039_v22, %v1038_v20  ;;  %v1088_v25 = vadd.f32 %v1087_v23, %v1086_v21  ;;  %v1041_v26 = vpop.f32.mrb[14].mxu0  ;;  %v1089_v27 = vpop.f32.mrb[14].mxu1 }
 0x115   : > { %v1042_v28 = vpop.f32.mrb[15].mxu0  ;;  %v1090_v29 = vpop.f32.mrb[15].mxu1 }
 0x116   : > { %v1043_v30 = vadd.f32 %v1042_v28, %v1041_v26  ;;  %v1091_v31 = vadd.f32 %v1090_v29, %v1089_v27  ;;  %814 = vst [vmem:[%s1373_s28 + $0x30] sm:$0xff] %v1040_v24  ;;  %830 = vst [vmem:[%s1373_s28 + $0xb0] sm:$0xff] %v1088_v25 }
 0x118   : > { %815 = vst [vmem:[%s1373_s28 + $0x38] sm:$0xff] %v1043_v30  ;;  %831 = vst [vmem:[%s1373_s28 + $0xb8] sm:$0xff] %v1091_v31 }
 0x11a   : > { %v1044_v32 = vpop.f32.mrb[16].mxu0  ;;  %v1092_v33 = vpop.f32.mrb[16].mxu1 }
 0x11b   : > { %v1045_v34 = vpop.f32.mrb[17].mxu0  ;;  %v1093_v35 = vpop.f32.mrb[17].mxu1 }
 0x11c   : > { %v1046_v36 = vadd.f32 %v1045_v34, %v1044_v32  ;;  %v1094_v37 = vadd.f32 %v1093_v35, %v1092_v33  ;;  %v1047_v38 = vpop.f32.mrb[18].mxu0  ;;  %v1095_v39 = vpop.f32.mrb[18].mxu1 }
 0x11d   : > { %v1048_v40 = vpop.f32.mrb[19].mxu0  ;;  %v1096_v41 = vpop.f32.mrb[19].mxu1 }
 0x11e   : > { %v1049_v42 = vadd.f32 %v1048_v40, %v1047_v38  ;;  %v1097_v43 = vadd.f32 %v1096_v41, %v1095_v39  ;;  %816 = vst [vmem:[%s1373_s28 + $0x40] sm:$0xff] %v1046_v36  ;;  %832 = vst [vmem:[%s1373_s28 + $0xc0] sm:$0xff] %v1094_v37 }
 0x120   : > { %817 = vst [vmem:[%s1373_s28 + $0x48] sm:$0xff] %v1049_v42  ;;  %833 = vst [vmem:[%s1373_s28 + $0xc8] sm:$0xff] %v1097_v43 }
 0x122   : > { %v1050_v44 = vpop.f32.mrb[20].mxu0  ;;  %v1098_v45 = vpop.f32.mrb[20].mxu1 }
 0x123   : > { %v1051_v46 = vpop.f32.mrb[21].mxu0  ;;  %v1099_v47 = vpop.f32.mrb[21].mxu1 }
 0x124   : > { %v1052_v48 = vadd.f32 %v1051_v46, %v1050_v44  ;;  %v1100_v49 = vadd.f32 %v1099_v47, %v1098_v45  ;;  %v1053_v50 = vpop.f32.mrb[22].mxu0  ;;  %v1101_v51 = vpop.f32.mrb[22].mxu1 }
 0x125   : > { %v1054_v52 = vpop.f32.mrb[23].mxu0  ;;  %v1102_v53 = vpop.f32.mrb[23].mxu1 }
 0x126   : > { %v1055_v54 = vadd.f32 %v1054_v52, %v1053_v50  ;;  %v1103_v55 = vadd.f32 %v1102_v53, %v1101_v51  ;;  %818 = vst [vmem:[%s1373_s28 + $0x50] sm:$0xff] %v1052_v48  ;;  %834 = vst [vmem:[%s1373_s28 + $0xd0] sm:$0xff] %v1100_v49 }
 0x128   : > { %819 = vst [vmem:[%s1373_s28 + $0x58] sm:$0xff] %v1055_v54  ;;  %835 = vst [vmem:[%s1373_s28 + $0xd8] sm:$0xff] %v1103_v55 }
 0x12a   : > { %v1056_v56 = vpop.f32.mrb[24].mxu0  ;;  %v1104_v57 = vpop.f32.mrb[24].mxu1 }
 0x12b   : > { %v1057_v58 = vpop.f32.mrb[25].mxu0  ;;  %v1105_v59 = vpop.f32.mrb[25].mxu1 }
 0x12c   : > { %v1058_v60 = vadd.f32 %v1057_v58, %v1056_v56  ;;  %v1106_v61 = vadd.f32 %v1105_v59, %v1104_v57  ;;  %v1059_v62 = vpop.f32.mrb[26].mxu0  ;;  %v1107_v63 = vpop.f32.mrb[26].mxu1 }
 0x12d   : > { %v1060_v0 = vpop.f32.mrb[27].mxu0  ;;  %v1108_v1 = vpop.f32.mrb[27].mxu1 }
 0x12e   : > { %v1061_v2 = vadd.f32 %v1060_v0, %v1059_v62  ;;  %v1109_v3 = vadd.f32 %v1108_v1, %v1107_v63  ;;  %820 = vst [vmem:[%s1373_s28 + $0x60] sm:$0xff] %v1058_v60  ;;  %836 = vst [vmem:[%s1373_s28 + $0xe0] sm:$0xff] %v1106_v61 }
 0x130   : > { %821 = vst [vmem:[%s1373_s28 + $0x68] sm:$0xff] %v1061_v2  ;;  %837 = vst [vmem:[%s1373_s28 + $0xe8] sm:$0xff] %v1109_v3 }
 0x132   : > { %v1062_v4 = vpop.f32.mrb[28].mxu0  ;;  %v1110_v5 = vpop.f32.mrb[28].mxu1 }
 0x133   : > { %v1063_v6 = vpop.f32.mrb[29].mxu0  ;;  %v1111_v7 = vpop.f32.mrb[29].mxu1 }
 0x134   : > { %v1064_v8 = vadd.f32 %v1063_v6, %v1062_v4  ;;  %v1112_v9 = vadd.f32 %v1111_v7, %v1110_v5  ;;  %v1065_v10 = vpop.f32.mrb[30].mxu0  ;;  %v1113_v11 = vpop.f32.mrb[30].mxu1 }
 0x135   : > { %v1066_v12 = vpop.f32.mrb[31].mxu0  ;;  %v1114_v13 = vpop.f32.mrb[31].mxu1 }
 0x136   : > { %v1067_v14 = vadd.f32 %v1066_v12, %v1065_v10  ;;  %v1115_v15 = vadd.f32 %v1114_v13, %v1113_v11  ;;  %822 = vst [vmem:[%s1373_s28 + $0x70] sm:$0xff] %v1064_v8  ;;  %838 = vst [vmem:[%s1373_s28 + $0xf0] sm:$0xff] %v1112_v9 }
 0x138   : > { %823 = vst [vmem:[%s1373_s28 + $0x78] sm:$0xff] %v1067_v14  ;;  %839 = vst [vmem:[%s1373_s28 + $0xf8] sm:$0xff] %v1115_v15 }
 0x139 PF: > { %s12_s11 = sadd.s32 1, %s1243_s11   ;;  %s1419_s9 = smov %s1239_s10 }
 0x13a   : > { %p9_p5 = scmp.ge.s32.totalorder %s12_s11, 6   ;;  %s1420_s10 = smov %s1422_s12 }
 0x13c   :  { %11 = sbr.rel (!%p9_p5) target bundleno = 2 (0x2), region = 65 }

// kernel: derain_forward.53
= control target key start
LH: loop header
LB: loop body
LE: loop exit
PB: predicated region body
PF: predicated region fallthrough
CT: control target
= control target key end

     0   :  { %s483_s9 = smov 0   ;;  %s581_s0 = inlined_call_operand.vmem [shape: f32[1024,128], index: 0, kind: input, shape index: {}]   ;;  %s582_s1 = inlined_call_operand.vmem [shape: f32[1,128], index: 1, kind: output, shape index: {0}]   ;;  %s583_s2 = inlined_call_operand.vmem [shape: f32[1,128], index: 2, kind: output, shape index: {1}]  }
   0x1 LB: > { %s441_s10 = sadd.s32 4294967295, %s465_s9   ;;  %p444_p0 = scmp.ge.s32.totalorder %s465_s9, 1  ;;  %s465_s9 = sphi %s483_s9, %s13_s9  }
   0x2   : > { %p106_p1 = scmp.lt.s32.totalorder %s465_s9, 3 }
   0x4   : > { %p107_p2 = pnand %p444_p0, %p106_p1 }
   0x5   : > { %s445_s11 = sshll.u32 (!%p107_p2), %s441_s10, 6  ;;  %p447_p4 = scmp.ne.s32.totalorder (!%p107_p2), %s441_s10, 0 }
   0x6   : > { %110 = sbr.rel (%p107_p2) target bundleno = 164 (0xa4), region = 24  ;;  %p124_p3 = scmp.lt.s32.totalorder (!%p107_p2), %s445_s11, 127 }
   0xd   : > { %s585_s11 = smov (!%p124_p3, %s445_s11), 127  ;;  %132 = sbr.rel (%p447_p4) target bundleno = 20 (0x14), region = 28 }
   0xe   : > { %s446_s12 = sshll.u32 %s585_s11, 3  ;;  %v467_v0 = vmov (!%p447_p4), 0.0  }
   0xf   : > { %s494_s15 = scalar_lea.vmem %s581_s0, %s446_s12  ;;  %133 = vst [vmem:[%s582_s1] sm:$0x1] (!%p447_p4), %v467_v0  ;;  %134 = vst [vmem:[%s583_s2] sm:$0x1] (!%p447_p4), %v467_v0 }
  0x14 PF: > { %v135_v1 = vld [vmem:[%s494_s15] sm:$0xff]  ;;  %v136_v2 = vld [vmem:[%s494_s15 + $0x8] sm:$0xff]  ;;  %v137_v3 = vld [vmem:[%s494_s15 + $0x10] sm:$0xff] }
  0x15   : > { %v138_v4 = vld [vmem:[%s494_s15 + $0x18] sm:$0xff]  ;;  %v200_v5 = vadd.f32 %v136_v2, %v135_v1  ;;  %v272_v6 = vmul.f32 %v135_v1, %v135_v1  ;;  %v273_v7 = vmul.f32 %v136_v2, %v136_v2  ;;  %v274_v8 = vmul.f32 %v137_v3, %v137_v3  ;;  %v139_v9 = vld [vmem:[%s494_s15 + $0x20] sm:$0xff]  ;;  %v140_v13 = vld [vmem:[%s494_s15 + $0x28] sm:$0xff] }
  0x16   : > { %v275_v11 = vmul.f32 %v138_v4, %v138_v4  ;;  %v276_v15 = vmul.f32 %v139_v9, %v139_v9  ;;  %v141_v17 = vld [vmem:[%s494_s15 + $0x30] sm:$0xff]  ;;  %v277_v19 = vmul.f32 %v140_v13, %v140_v13  ;;  %v142_v21 = vld [vmem:[%s494_s15 + $0x38] sm:$0xff]  ;;  %v143_v25 = vld [vmem:[%s494_s15 + $0x40] sm:$0xff] }
  0x17   : > { %v201_v10 = vadd.f32 %v200_v5, %v137_v3  ;;  %v336_v12 = vadd.f32 %v273_v7, %v272_v6  ;;  %v278_v23 = vmul.f32 %v141_v17, %v141_v17  ;;  %v279_v27 = vmul.f32 %v142_v21, %v142_v21  ;;  %v144_v29 = vld [vmem:[%s494_s15 + $0x48] sm:$0xff]  ;;  %v145_v33 = vld [vmem:[%s494_s15 + $0x50] sm:$0xff]  ;;  %v146_v37 = vld [vmem:[%s494_s15 + $0x58] sm:$0xff] }
  0x18   : > { %v280_v31 = vmul.f32 %v143_v25, %v143_v25  ;;  %v281_v35 = vmul.f32 %v144_v29, %v144_v29  ;;  %v282_v39 = vmul.f32 %v145_v33, %v145_v33  ;;  %v147_v41 = vld [vmem:[%s494_s15 + $0x60] sm:$0xff]  ;;  %v283_v43 = vmul.f32 %v146_v37, %v146_v37  ;;  %v148_v45 = vld [vmem:[%s494_s15 + $0x68] sm:$0xff]  ;;  %v149_v49 = vld [vmem:[%s494_s15 + $0x70] sm:$0xff] }
  0x19   : > { %v202_v14 = vadd.f32 %v201_v10, %v138_v4  ;;  %v337_v16 = vadd.f32 %v336_v12, %v274_v8  ;;  %v284_v47 = vmul.f32 %v147_v41, %v147_v41  ;;  %v285_v51 = vmul.f32 %v148_v45, %v148_v45  ;;  %v150_v53 = vld [vmem:[%s494_s15 + $0x78] sm:$0xff]  ;;  %v151_v57 = vld [vmem:[%s494_s15 + $0x80] sm:$0xff]  ;;  %v152_v61 = vld [vmem:[%s494_s15 + $0x88] sm:$0xff] }
  0x1a   : > { %v286_v55 = vmul.f32 %v149_v49, %v149_v49  ;;  %v287_v59 = vmul.f32 %v150_v53, %v150_v53  ;;  %v288_v63 = vmul.f32 %v151_v57, %v151_v57  ;;  %v153_v1 = vld [vmem:[%s494_s15 + $0x90] sm:$0xff]  ;;  %v289_v3 = vmul.f32 %v152_v61, %v152_v61  ;;  %v154_v5 = vld [vmem:[%s494_s15 + $0x98] sm:$0xff] }
  0x1b   : > { %v203_v18 = vadd.f32 %v202_v14, %v139_v9  ;;  %v338_v20 = vadd.f32 %v337_v16, %v275_v11  ;;  %v290_v7 = vmul.f32 %v153_v1, %v153_v1  ;;  %v155_v9 = vld [vmem:[%s494_s15 + $0xa0] sm:$0xff]  ;;  %v291_v11 = vmul.f32 %v154_v5, %v154_v5 }
  0x1d   : > { %v204_v22 = vadd.f32 %v203_v18, %v140_v13  ;;  %v339_v24 = vadd.f32 %v338_v20, %v276_v15  ;;  %v156_v13 = vld [vmem:[%s494_s15 + $0xa8] sm:$0xff]  ;;  %v292_v15 = vmul.f32 %v155_v9, %v155_v9 }
  0x1f   : > { %v205_v26 = vadd.f32 %v204_v22, %v141_v17  ;;  %v340_v28 = vadd.f32 %v339_v24, %v277_v19  ;;  %v157_v17 = vld [vmem:[%s494_s15 + $0xb0] sm:$0xff]  ;;  %v293_v19 = vmul.f32 %v156_v13, %v156_v13 }
  0x21   : > { %v206_v30 = vadd.f32 %v205_v26, %v142_v21  ;;  %v341_v32 = vadd.f32 %v340_v28, %v278_v23  ;;  %v158_v21 = vld [vmem:[%s494_s15 + $0xb8] sm:$0xff]  ;;  %v294_v23 = vmul.f32 %v157_v17, %v157_v17 }
  0x23   : > { %v207_v34 = vadd.f32 %v206_v30, %v143_v25  ;;  %v342_v36 = vadd.f32 %v341_v32, %v279_v27  ;;  %v159_v25 = vld [vmem:[%s494_s15 + $0xc0] sm:$0xff]  ;;  %v295_v27 = vmul.f32 %v158_v21, %v158_v21 }
  0x25   : > { %v208_v38 = vadd.f32 %v207_v34, %v144_v29  ;;  %v343_v40 = vadd.f32 %v342_v36, %v280_v31  ;;  %v160_v29 = vld [vmem:[%s494_s15 + $0xc8] sm:$0xff]  ;;  %v296_v31 = vmul.f32 %v159_v25, %v159_v25 }
  0x27   : > { %v209_v42 = vadd.f32 %v208_v38, %v145_v33  ;;  %v344_v44 = vadd.f32 %v343_v40, %v281_v35  ;;  %v161_v33 = vld [vmem:[%s494_s15 + $0xd0] sm:$0xff]  ;;  %v297_v35 = vmul.f32 %v160_v29, %v160_v29 }
  0x29   : > { %v210_v46 = vadd.f32 %v209_v42, %v146_v37  ;;  %v345_v48 = vadd.f32 %v344_v44, %v282_v39  ;;  %v162_v37 = vld [vmem:[%s494_s15 + $0xd8] sm:$0xff]  ;;  %v298_v39 = vmul.f32 %v161_v33, %v161_v33 }
  0x2b   : > { %v211_v50 = vadd.f32 %v210_v46, %v147_v41  ;;  %v346_v52 = vadd.f32 %v345_v48, %v283_v43  ;;  %v163_v41 = vld [vmem:[%s494_s15 + $0xe0] sm:$0xff]  ;;  %v299_v43 = vmul.f32 %v162_v37, %v162_v37 }
  0x2d   : > { %v212_v54 = vadd.f32 %v211_v50, %v148_v45  ;;  %v347_v56 = vadd.f32 %v346_v52, %v284_v47  ;;  %v164_v45 = vld [vmem:[%s494_s15 + $0xe8] sm:$0xff]  ;;  %v300_v47 = vmul.f32 %v163_v41, %v163_v41 }
  0x2f   : > { %v213_v58 = vadd.f32 %v212_v54, %v149_v49  ;;  %v348_v60 = vadd.f32 %v347_v56, %v285_v51  ;;  %v165_v49 = vld [vmem:[%s494_s15 + $0xf0] sm:$0xff]  ;;  %v301_v51 = vmul.f32 %v164_v45, %v164_v45 }
  0x31   : > { %v214_v62 = vadd.f32 %v213_v58, %v150_v53  ;;  %v349_v0 = vadd.f32 %v348_v60, %v286_v55  ;;  %v166_v53 = vld [vmem:[%s494_s15 + $0xf8] sm:$0xff]  ;;  %v302_v55 = vmul.f32 %v165_v49, %v165_v49 }
  0x33   : > { %v215_v2 = vadd.f32 %v214_v62, %v151_v57  ;;  %v350_v4 = vadd.f32 %v349_v0, %v287_v59  ;;  %v167_v57 = vld [vmem:[%s494_s15 + $0x100] sm:$0xff]  ;;  %v303_v59 = vmul.f32 %v166_v53, %v166_v53 }
  0x35   : > { %v216_v6 = vadd.f32 %v215_v2, %v152_v61  ;;  %v351_v8 = vadd.f32 %v350_v4, %v288_v63  ;;  %v168_v61 = vld [vmem:[%s494_s15 + $0x108] sm:$0xff]  ;;  %v304_v63 = vmul.f32 %v167_v57, %v167_v57 }
  0x37   : > { %v217_v10 = vadd.f32 %v216_v6, %v153_v1  ;;  %v352_v12 = vadd.f32 %v351_v8, %v289_v3  ;;  %v169_v1 = vld [vmem:[%s494_s15 + $0x110] sm:$0xff]  ;;  %v305_v3 = vmul.f32 %v168_v61, %v168_v61 }
  0x39   : > { %v218_v14 = vadd.f32 %v217_v10, %v154_v5  ;;  %v353_v16 = vadd.f32 %v352_v12, %v290_v7  ;;  %v170_v5 = vld [vmem:[%s494_s15 + $0x118] sm:$0xff]  ;;  %v306_v7 = vmul.f32 %v169_v1, %v169_v1 }
  0x3b   : > { %v219_v18 = vadd.f32 %v218_v14, %v155_v9  ;;  %v354_v20 = vadd.f32 %v353_v16, %v291_v11  ;;  %v171_v9 = vld [vmem:[%s494_s15 + $0x120] sm:$0xff]  ;;  %v307_v11 = vmul.f32 %v170_v5, %v170_v5 }
  0x3d   : > { %v220_v22 = vadd.f32 %v219_v18, %v156_v13  ;;  %v355_v24 = vadd.f32 %v354_v20, %v292_v15  ;;  %v172_v13 = vld [vmem:[%s494_s15 + $0x128] sm:$0xff]  ;;  %v308_v15 = vmul.f32 %v171_v9, %v171_v9 }
  0x3f   : > { %v221_v26 = vadd.f32 %v220_v22, %v157_v17  ;;  %v356_v28 = vadd.f32 %v355_v24, %v293_v19  ;;  %v173_v17 = vld [vmem:[%s494_s15 + $0x130] sm:$0xff]  ;;  %v309_v19 = vmul.f32 %v172_v13, %v172_v13 }
  0x41   : > { %v222_v30 = vadd.f32 %v221_v26, %v158_v21  ;;  %v357_v32 = vadd.f32 %v356_v28, %v294_v23  ;;  %v174_v21 = vld [vmem:[%s494_s15 + $0x138] sm:$0xff]  ;;  %v310_v23 = vmul.f32 %v173_v17, %v173_v17 }
  0x43   : > { %v223_v34 = vadd.f32 %v222_v30, %v159_v25  ;;  %v358_v36 = vadd.f32 %v357_v32, %v295_v27  ;;  %v175_v25 = vld [vmem:[%s494_s15 + $0x140] sm:$0xff]  ;;  %v311_v27 = vmul.f32 %v174_v21, %v174_v21 }
  0x45   : > { %v224_v38 = vadd.f32 %v223_v34, %v160_v29  ;;  %v359_v40 = vadd.f32 %v358_v36, %v296_v31  ;;  %v176_v29 = vld [vmem:[%s494_s15 + $0x148] sm:$0xff]  ;;  %v312_v31 = vmul.f32 %v175_v25, %v175_v25 }
  0x47   : > { %v225_v42 = vadd.f32 %v224_v38, %v161_v33  ;;  %v360_v44 = vadd.f32 %v359_v40, %v297_v35  ;;  %v177_v33 = vld [vmem:[%s494_s15 + $0x150] sm:$0xff]  ;;  %v313_v35 = vmul.f32 %v176_v29, %v176_v29 }
  0x49   : > { %v226_v46 = vadd.f32 %v225_v42, %v162_v37  ;;  %v361_v48 = vadd.f32 %v360_v44, %v298_v39  ;;  %v178_v37 = vld [vmem:[%s494_s15 + $0x158] sm:$0xff]  ;;  %v314_v39 = vmul.f32 %v177_v33, %v177_v33 }
  0x4b   : > { %v227_v50 = vadd.f32 %v226_v46, %v163_v41  ;;  %v362_v52 = vadd.f32 %v361_v48, %v299_v43  ;;  %v179_v41 = vld [vmem:[%s494_s15 + $0x160] sm:$0xff]  ;;  %v315_v43 = vmul.f32 %v178_v37, %v178_v37 }
  0x4d   : > { %v228_v54 = vadd.f32 %v227_v50, %v164_v45  ;;  %v363_v56 = vadd.f32 %v362_v52, %v300_v47  ;;  %v180_v45 = vld [vmem:[%s494_s15 + $0x168] sm:$0xff]  ;;  %v316_v47 = vmul.f32 %v179_v41, %v179_v41 }
  0x4f   : > { %v229_v58 = vadd.f32 %v228_v54, %v165_v49  ;;  %v364_v60 = vadd.f32 %v363_v56, %v301_v51  ;;  %v181_v49 = vld [vmem:[%s494_s15 + $0x170] sm:$0xff]  ;;  %v317_v51 = vmul.f32 %v180_v45, %v180_v45 }
  0x51   : > { %v230_v62 = vadd.f32 %v229_v58, %v166_v53  ;;  %v365_v0 = vadd.f32 %v364_v60, %v302_v55  ;;  %v182_v53 = vld [vmem:[%s494_s15 + $0x178] sm:$0xff]  ;;  %v318_v55 = vmul.f32 %v181_v49, %v181_v49 }
  0x53   : > { %v231_v2 = vadd.f32 %v230_v62, %v167_v57  ;;  %v366_v4 = vadd.f32 %v365_v0, %v303_v59  ;;  %v183_v57 = vld [vmem:[%s494_s15 + $0x180] sm:$0xff]  ;;  %v319_v59 = vmul.f32 %v182_v53, %v182_v53 }
  0x55   : > { %v232_v6 = vadd.f32 %v231_v2, %v168_v61  ;;  %v367_v8 = vadd.f32 %v366_v4, %v304_v63  ;;  %v184_v61 = vld [vmem:[%s494_s15 + $0x188] sm:$0xff]  ;;  %v320_v63 = vmul.f32 %v183_v57, %v183_v57 }
  0x57   : > { %v233_v10 = vadd.f32 %v232_v6, %v169_v1  ;;  %v368_v12 = vadd.f32 %v367_v8, %v305_v3  ;;  %v185_v1 = vld [vmem:[%s494_s15 + $0x190] sm:$0xff]  ;;  %v321_v3 = vmul.f32 %v184_v61, %v184_v61 }
  0x59   : > { %v234_v14 = vadd.f32 %v233_v10, %v170_v5  ;;  %v369_v16 = vadd.f32 %v368_v12, %v306_v7  ;;  %v186_v5 = vld [vmem:[%s494_s15 + $0x198] sm:$0xff]  ;;  %v322_v7 = vmul.f32 %v185_v1, %v185_v1 }
  0x5b   : > { %v235_v18 = vadd.f32 %v234_v14, %v171_v9  ;;  %v370_v20 = vadd.f32 %v369_v16, %v307_v11  ;;  %v187_v9 = vld [vmem:[%s494_s15 + $0x1a0] sm:$0xff]  ;;  %v323_v11 = vmul.f32 %v186_v5, %v186_v5 }
  0x5d   : > { %v236_v22 = vadd.f32 %v235_v18, %v172_v13  ;;  %v371_v24 = vadd.f32 %v370_v20, %v308_v15  ;;  %v188_v13 = vld [vmem:[%s494_s15 + $0x1a8] sm:$0xff]  ;;  %v324_v15 = vmul.f32 %v187_v9, %v187_v9 }
  0x5f   : > { %v237_v26 = vadd.f32 %v236_v22, %v173_v17  ;;  %v372_v28 = vadd.f32 %v371_v24, %v309_v19  ;;  %v189_v17 = vld [vmem:[%s494_s15 + $0x1b0] sm:$0xff]  ;;  %v325_v19 = vmul.f32 %v188_v13, %v188_v13 }
  0x61   : > { %v238_v30 = vadd.f32 %v237_v26, %v174_v21  ;;  %v373_v32 = vadd.f32 %v372_v28, %v310_v23  ;;  %v190_v21 = vld [vmem:[%s494_s15 + $0x1b8] sm:$0xff]  ;;  %v326_v23 = vmul.f32 %v189_v17, %v189_v17 }
  0x63   : > { %v239_v34 = vadd.f32 %v238_v30, %v175_v25  ;;  %v374_v36 = vadd.f32 %v373_v32, %v311_v27  ;;  %v191_v25 = vld [vmem:[%s494_s15 + $0x1c0] sm:$0xff]  ;;  %v327_v27 = vmul.f32 %v190_v21, %v190_v21 }
  0x65   : > { %v240_v38 = vadd.f32 %v239_v34, %v176_v29  ;;  %v375_v40 = vadd.f32 %v374_v36, %v312_v31  ;;  %v192_v29 = vld [vmem:[%s494_s15 + $0x1c8] sm:$0xff]  ;;  %v328_v31 = vmul.f32 %v191_v25, %v191_v25 }
  0x67   : > { %v241_v42 = vadd.f32 %v240_v38, %v177_v33  ;;  %v376_v44 = vadd.f32 %v375_v40, %v313_v35  ;;  %v193_v33 = vld [vmem:[%s494_s15 + $0x1d0] sm:$0xff]  ;;  %v329_v35 = vmul.f32 %v192_v29, %v192_v29 }
  0x69   : > { %v242_v46 = vadd.f32 %v241_v42, %v178_v37  ;;  %v377_v48 = vadd.f32 %v376_v44, %v314_v39  ;;  %v194_v37 = vld [vmem:[%s494_s15 + $0x1d8] sm:$0xff]  ;;  %v330_v39 = vmul.f32 %v193_v33, %v193_v33 }
  0x6b   : > { %v243_v50 = vadd.f32 %v242_v46, %v179_v41  ;;  %v378_v52 = vadd.f32 %v377_v48, %v315_v43  ;;  %v195_v41 = vld [vmem:[%s494_s15 + $0x1e0] sm:$0xff]  ;;  %v331_v43 = vmul.f32 %v194_v37, %v194_v37 }
  0x6d   : > { %v244_v54 = vadd.f32 %v243_v50, %v180_v45  ;;  %v379_v56 = vadd.f32 %v378_v52, %v316_v47  ;;  %v196_v45 = vld [vmem:[%s494_s15 + $0x1e8] sm:$0xff]  ;;  %v332_v47 = vmul.f32 %v195_v41, %v195_v41 }
  0x6f   : > { %v245_v58 = vadd.f32 %v244_v54, %v181_v49  ;;  %v380_v60 = vadd.f32 %v379_v56, %v317_v51  ;;  %v197_v49 = vld [vmem:[%s494_s15 + $0x1f0] sm:$0xff]  ;;  %v333_v51 = vmul.f32 %v196_v45, %v196_v45 }
  0x71   : > { %v246_v62 = vadd.f32 %v245_v58, %v182_v53  ;;  %v381_v0 = vadd.f32 %v380_v60, %v318_v55  ;;  %v198_v53 = vld [vmem:[%s494_s15 + $0x1f8] sm:$0xff]  ;;  %v334_v55 = vmul.f32 %v197_v49, %v197_v49 }
  0x72   : > { %v335_v58 = vmul.f32 %v198_v53, %v198_v53 }
  0x73   : > { %v247_v2 = vadd.f32 %v246_v62, %v183_v57  ;;  %v382_v4 = vadd.f32 %v381_v0, %v319_v59 }
  0x75   : > { %v248_v6 = vadd.f32 %v247_v2, %v184_v61  ;;  %v383_v8 = vadd.f32 %v382_v4, %v320_v63 }
  0x77   : > { %v249_v10 = vadd.f32 %v248_v6, %v185_v1  ;;  %v384_v12 = vadd.f32 %v383_v8, %v321_v3 }
  0x79   : > { %v250_v14 = vadd.f32 %v249_v10, %v186_v5  ;;  %v385_v16 = vadd.f32 %v384_v12, %v322_v7  ;;  %v199_v7 = vld [vmem:[%s582_s1] sm:$0x1] }
  0x7a   : > { %v271_v12 = vld [vmem:[%s583_s2] sm:$0x1] }
  0x7b   : > { %v251_v18 = vadd.f32 %v250_v14, %v187_v9  ;;  %v386_v20 = vadd.f32 %v385_v16, %v323_v11 }
  0x7d   : > { %v252_v22 = vadd.f32 %v251_v18, %v188_v13  ;;  %v387_v24 = vadd.f32 %v386_v20, %v324_v15 }
  0x7f   : > { %v253_v26 = vadd.f32 %v252_v22, %v189_v17  ;;  %v388_v28 = vadd.f32 %v387_v24, %v325_v19 }
  0x81   : > { %v254_v30 = vadd.f32 %v253_v26, %v190_v21  ;;  %v389_v32 = vadd.f32 %v388_v28, %v326_v23 }
  0x83   : > { %v255_v34 = vadd.f32 %v254_v30, %v191_v25  ;;  %v390_v36 = vadd.f32 %v389_v32, %v327_v27 }
  0x85   : > { %v256_v38 = vadd.f32 %v255_v34, %v192_v29  ;;  %v391_v40 = vadd.f32 %v390_v36, %v328_v31 }
  0x87   : > { %v257_v42 = vadd.f32 %v256_v38, %v193_v33  ;;  %v392_v44 = vadd.f32 %v391_v40, %v329_v35 }
  0x89   : > { %v258_v46 = vadd.f32 %v257_v42, %v194_v37  ;;  %v393_v48 = vadd.f32 %v392_v44, %v330_v39 }
  0x8b   : > { %v259_v50 = vadd.f32 %v258_v46, %v195_v41  ;;  %v394_v52 = vadd.f32 %v393_v48, %v331_v43 }
  0x8d   : > { %v260_v54 = vadd.f32 %v259_v50, %v196_v45  ;;  %v395_v56 = vadd.f32 %v394_v52, %v332_v47 }
  0x8f   : > { %v261_v57 = vadd.f32 %v260_v54, %v197_v49  ;;  %v396_v59 = vadd.f32 %v395_v56, %v333_v51 }
  0x91   : > { %v262_v60 = vadd.f32 %v261_v57, %v198_v53  ;;  %v397_v61 = vadd.f32 %v396_v59, %v334_v55 }
  0x93   : > { %v263_v62 = vrot.slane %v262_v60, 4  ;;  %v398_v63 = vadd.f32 %v397_v61, %v335_v58 }
  0x95   : > { %v264_v0 = vadd.f32 %v263_v62, %v262_v60  ;;  %v399_v1 = vrot.slane %v398_v63, 4 }
  0x97   : > { %v265_v2 = vrot.slane %v264_v0, 2  ;;  %v400_v3 = vadd.f32 %v399_v1, %v398_v63 }
  0x99   : > { %v266_v4 = vadd.f32 %v265_v2, %v264_v0  ;;  %v401_v5 = vrot.slane %v400_v3, 2 }
  0x9b   : > { %v267_v6 = vrot.slane %v266_v4, 1  ;;  %v402_v8 = vadd.f32 %v401_v5, %v400_v3 }
  0x9d   : > { %v268_v9 = vadd.f32 %v267_v6, %v266_v4  ;;  %v403_v10 = vrot.slane %v402_v8, 1 }
  0x9f   : > { %v269_v11 = vadd.f32 %v268_v9, %v199_v7  ;;  %v404_v13 = vadd.f32 %v403_v10, %v402_v8 }
  0xa1   : > { %270 = vst [vmem:[%s582_s1] sm:$0x1] %v269_v11  ;;  %v405_v14 = vadd.f32 %v404_v13, %v271_v12 }
  0xa3   : > { %406 = vst [vmem:[%s583_s2] sm:$0x1] %v405_v14 }
  0xa4 PF: > { %s13_s9 = sadd.s32 1, %s465_s9  }
  0xa5   : > { %p10_p5 = scmp.ge.s32.totalorder %s13_s9, 4  }
  0xa7   :  { %12 = sbr.rel (!%p10_p5) target bundleno = 1 (0x1), region = 62 }

// kernel: derain_forward.54
= control target key start
LH: loop header
LB: loop body
LE: loop exit
PB: predicated region body
PF: predicated region fallthrough
CT: control target
= control target key end

     0   :  { %s613_s12 = smov 0   ;;  %s900_s0 = inlined_call_operand.vmem [shape: f32[1024,128], index: 0, kind: input, shape index: {}]   ;;  %s901_s1 = inlined_call_operand.vmem [shape: f32[1,128], index: 1, kind: input, shape index: {}]   ;;  %s902_s2 = inlined_call_operand.vmem [shape: f32[1,128], index: 2, kind: input, shape index: {}]   ;;  %s903_s3 = inlined_call_operand.vmem [shape: f32[1024,128], index: 3, kind: output, shape index: {}]  }
   0x1 LB: > { %s564_s13 = sadd.s32 4294967295, %s591_s12   ;;  %p568_p0 = scmp.ge.s32.totalorder %s591_s12, 1  ;;  %s591_s12 = sphi %s613_s12, %s13_s12  }
   0x2   : > { %p138_p1 = scmp.lt.s32.totalorder %s591_s12, 3 }
   0x4   : > { %p139_p2 = pnand %p568_p0, %p138_p1 }
   0x5   : > { %s569_s14 = sshll.u32 (!%p139_p2), %s564_s13, 6  ;;  %v624_v0 = vld [vmem:[%s901_s1] ss:$0 sm:$0xff] (!%p139_p2) }
   0x6   : > { %142 = sbr.rel (%p139_p2) target bundleno = 70 (0x46), region = 32  ;;  %p163_p3 = scmp.lt.s32.totalorder (!%p139_p2), %s569_s14, 127  ;;  %v634_v1 = vld [vmem:[%s902_s2] ss:$0 sm:$0xff] (!%p139_p2) }
   0xd   : > { %s905_s14 = smov (!%p163_p3, %s569_s14), 127 }
   0xe   : > { %s570_s15 = sshll.u32 %s905_s14, 3 }
   0xf   : > { %s629_s20 = scalar_lea.vmem %s900_s0, %s570_s15  ;;  %s657_s25 = scalar_lea.vmem %s903_s3, %s570_s15 }
  0x10   : > { %v174_v2 = vld [vmem:[%s629_s20] sm:$0xff]  ;;  %v175_v3 = vld [vmem:[%s629_s20 + $0x8] sm:$0xff]  ;;  %v176_v4 = vld [vmem:[%s629_s20 + $0x10] sm:$0xff] }
  0x11   : > { %v245_v5 = vmul.f32 %v624_v0, %v174_v2  ;;  %v246_v6 = vmul.f32 %v624_v0, %v175_v3  ;;  %v247_v7 = vmul.f32 %v624_v0, %v176_v4  ;;  %v177_v8 = vld [vmem:[%s629_s20 + $0x18] sm:$0xff]  ;;  %v178_v9 = vld [vmem:[%s629_s20 + $0x20] sm:$0xff]  ;;  %v179_v10 = vld [vmem:[%s629_s20 + $0x28] sm:$0xff] }
  0x12   : > { %v248_v11 = vmul.f32 %v624_v0, %v177_v8  ;;  %v249_v12 = vmul.f32 %v624_v0, %v178_v9  ;;  %v250_v13 = vmul.f32 %v624_v0, %v179_v10  ;;  %v180_v14 = vld [vmem:[%s629_s20 + $0x30] sm:$0xff]  ;;  %v181_v15 = vld [vmem:[%s629_s20 + $0x38] sm:$0xff]  ;;  %v182_v24 = vld [vmem:[%s629_s20 + $0x40] sm:$0xff] }
  0x13   : > { %v316_v16 = vadd.f32 %v634_v1, %v245_v5  ;;  %v317_v17 = vadd.f32 %v634_v1, %v246_v6  ;;  %v318_v18 = vadd.f32 %v634_v1, %v247_v7  ;;  %v251_v19 = vmul.f32 %v624_v0, %v180_v14  ;;  %v183_v25 = vld [vmem:[%s629_s20 + $0x48] sm:$0xff]  ;;  %v184_v26 = vld [vmem:[%s629_s20 + $0x50] sm:$0xff]  ;;  %v185_v31 = vld [vmem:[%s629_s20 + $0x58] sm:$0xff] }
  0x14   : > { %v319_v20 = vadd.f32 %v634_v1, %v248_v11  ;;  %v320_v21 = vadd.f32 %v634_v1, %v249_v12  ;;  %v321_v22 = vadd.f32 %v634_v1, %v250_v13  ;;  %v252_v23 = vmul.f32 %v624_v0, %v181_v15  ;;  %v186_v32 = vld [vmem:[%s629_s20 + $0x60] sm:$0xff]  ;;  %v187_v33 = vld [vmem:[%s629_s20 + $0x68] sm:$0xff]  ;;  %v188_v38 = vld [vmem:[%s629_s20 + $0x70] sm:$0xff] }
  0x15   : > { %v380_v27 = vmax.f32 %v316_v16, 0.0  ;;  %v381_v28 = vmax.f32 %v317_v17, 0.0  ;;  %v382_v29 = vmax.f32 %v318_v18, 0.0  ;;  %v322_v30 = vadd.f32 %v634_v1, %v251_v19  ;;  %v189_v43 = vld [vmem:[%s629_s20 + $0x78] sm:$0xff]  ;;  %v190_v56 = vld [vmem:[%s629_s20 + $0x80] sm:$0xff]  ;;  %v191_v57 = vld [vmem:[%s629_s20 + $0x88] sm:$0xff] }
  0x16   : > { %v383_v34 = vmax.f32 %v319_v20, 0.0  ;;  %v384_v35 = vmax.f32 %v320_v21, 0.0  ;;  %v385_v36 = vmax.f32 %v321_v22, 0.0  ;;  %v323_v37 = vadd.f32 %v634_v1, %v252_v23  ;;  %v192_v58 = vld [vmem:[%s629_s20 + $0x90] sm:$0xff]  ;;  %v193_v63 = vld [vmem:[%s629_s20 + $0x98] sm:$0xff]  ;;  %v194_v2 = vld [vmem:[%s629_s20 + $0xa0] sm:$0xff] }
  0x17   : > { %444 = vst [vmem:[%s657_s25] sm:$0xff] %v380_v27  ;;  %445 = vst [vmem:[%s657_s25 + $0x8] sm:$0xff] %v381_v28  ;;  %v386_v39 = vmax.f32 %v322_v30, 0.0  ;;  %v253_v40 = vmul.f32 %v624_v0, %v182_v24  ;;  %v254_v41 = vmul.f32 %v624_v0, %v183_v25  ;;  %v255_v42 = vmul.f32 %v624_v0, %v184_v26  ;;  %v195_v3 = vld [vmem:[%s629_s20 + $0xa8] sm:$0xff]  ;;  %v196_v8 = vld [vmem:[%s629_s20 + $0xb0] sm:$0xff] }
  0x18   : > { %446 = vst [vmem:[%s657_s25 + $0x10] sm:$0xff] %v382_v29  ;;  %447 = vst [vmem:[%s657_s25 + $0x18] sm:$0xff] %v383_v34  ;;  %v387_v44 = vmax.f32 %v323_v37, 0.0  ;;  %v256_v45 = vmul.f32 %v624_v0, %v185_v31  ;;  %v257_v46 = vmul.f32 %v624_v0, %v186_v32  ;;  %v258_v47 = vmul.f32 %v624_v0, %v187_v33  ;;  %v197_v13 = vld [vmem:[%s629_s20 + $0xb8] sm:$0xff]  ;;  %v198_v26 = vld [vmem:[%s629_s20 + $0xc0] sm:$0xff] }
  0x19   : > { %448 = vst [vmem:[%s657_s25 + $0x20] sm:$0xff] %v384_v35  ;;  %449 = vst [vmem:[%s657_s25 + $0x28] sm:$0xff] %v385_v36  ;;  %v324_v48 = vadd.f32 %v634_v1, %v253_v40  ;;  %v325_v49 = vadd.f32 %v634_v1, %v254_v41  ;;  %v326_v50 = vadd.f32 %v634_v1, %v255_v42  ;;  %v199_v27 = vld [vmem:[%s629_s20 + $0xc8] sm:$0xff]  ;;  %v200_v28 = vld [vmem:[%s629_s20 + $0xd0] sm:$0xff] }
  0x1a   : > { %450 = vst [vmem:[%s657_s25 + $0x30] sm:$0xff] %v386_v39  ;;  %v259_v51 = vmul.f32 %v624_v0, %v188_v38  ;;  %451 = vst [vmem:[%s657_s25 + $0x38] sm:$0xff] %v387_v44  ;;  %v327_v52 = vadd.f32 %v634_v1, %v256_v45  ;;  %v328_v53 = vadd.f32 %v634_v1, %v257_v46  ;;  %v201_v33 = vld [vmem:[%s629_s20 + $0xd8] sm:$0xff]  ;;  %v202_v34 = vld [vmem:[%s629_s20 + $0xe0] sm:$0xff] }
  0x1b   : > { %v329_v54 = vadd.f32 %v634_v1, %v258_v47  ;;  %v260_v55 = vmul.f32 %v624_v0, %v189_v43  ;;  %v388_v59 = vmax.f32 %v324_v48, 0.0  ;;  %v389_v60 = vmax.f32 %v325_v49, 0.0  ;;  %v203_v35 = vld [vmem:[%s629_s20 + $0xe8] sm:$0xff]  ;;  %v204_v40 = vld [vmem:[%s629_s20 + $0xf0] sm:$0xff]  ;;  %v205_v45 = vld [vmem:[%s629_s20 + $0xf8] sm:$0xff] }
  0x1c   : > { %v390_v61 = vmax.f32 %v326_v50, 0.0  ;;  %v330_v62 = vadd.f32 %v634_v1, %v259_v51  ;;  %v391_v4 = vmax.f32 %v327_v52, 0.0  ;;  %v392_v5 = vmax.f32 %v328_v53, 0.0 }
  0x1d   : > { %v393_v6 = vmax.f32 %v329_v54, 0.0  ;;  %v331_v7 = vadd.f32 %v634_v1, %v260_v55  ;;  %452 = vst [vmem:[%s657_s25 + $0x40] sm:$0xff] %v388_v59  ;;  %453 = vst [vmem:[%s657_s25 + $0x48] sm:$0xff] %v389_v60  ;;  %v261_v10 = vmul.f32 %v624_v0, %v190_v56  ;;  %v262_v11 = vmul.f32 %v624_v0, %v191_v57  ;;  %v207_v59 = vld [vmem:[%s629_s20 + $0x108] sm:$0xff]  ;;  %v208_v60 = vld [vmem:[%s629_s20 + $0x110] sm:$0xff] }
  0x1e   : > { %454 = vst [vmem:[%s657_s25 + $0x50] sm:$0xff] %v390_v61  ;;  %v394_v9 = vmax.f32 %v330_v62, 0.0  ;;  %v263_v12 = vmul.f32 %v624_v0, %v192_v58  ;;  %455 = vst [vmem:[%s657_s25 + $0x58] sm:$0xff] %v391_v4  ;;  %v264_v15 = vmul.f32 %v624_v0, %v193_v63  ;;  %v265_v16 = vmul.f32 %v624_v0, %v194_v2  ;;  %v206_v58 = vld [vmem:[%s629_s20 + $0x100] sm:$0xff] }
  0x1f   : > { %456 = vst [vmem:[%s657_s25 + $0x60] sm:$0xff] %v392_v5  ;;  %457 = vst [vmem:[%s657_s25 + $0x68] sm:$0xff] %v393_v6  ;;  %v395_v14 = vmax.f32 %v331_v7, 0.0  ;;  %v266_v17 = vmul.f32 %v624_v0, %v195_v3  ;;  %v332_v18 = vadd.f32 %v634_v1, %v261_v10  ;;  %v333_v19 = vadd.f32 %v634_v1, %v262_v11  ;;  %v209_v3 = vld [vmem:[%s629_s20 + $0x118] sm:$0xff]  ;;  %v210_v4 = vld [vmem:[%s629_s20 + $0x120] sm:$0xff] }
  0x20   : > { %458 = vst [vmem:[%s657_s25 + $0x70] sm:$0xff] %v394_v9  ;;  %v334_v20 = vadd.f32 %v634_v1, %v263_v12  ;;  %v267_v21 = vmul.f32 %v624_v0, %v196_v8  ;;  %v335_v22 = vadd.f32 %v634_v1, %v264_v15  ;;  %v336_v23 = vadd.f32 %v634_v1, %v265_v16  ;;  %v211_v5 = vld [vmem:[%s629_s20 + $0x128] sm:$0xff]  ;;  %v212_v10 = vld [vmem:[%s629_s20 + $0x130] sm:$0xff]  ;;  %v213_v15 = vld [vmem:[%s629_s20 + $0x138] sm:$0xff] }
  0x21   : > { %459 = vst [vmem:[%s657_s25 + $0x78] sm:$0xff] %v395_v14  ;;  %v337_v24 = vadd.f32 %v634_v1, %v266_v17  ;;  %v268_v25 = vmul.f32 %v624_v0, %v197_v13  ;;  %v396_v29 = vmax.f32 %v332_v18, 0.0  ;;  %v397_v30 = vmax.f32 %v333_v19, 0.0 }
  0x22   : > { %v398_v31 = vmax.f32 %v334_v20, 0.0  ;;  %v338_v32 = vadd.f32 %v634_v1, %v267_v21  ;;  %v399_v36 = vmax.f32 %v335_v22, 0.0  ;;  %v400_v37 = vmax.f32 %v336_v23, 0.0 }
  0x23   : > { %v401_v38 = vmax.f32 %v337_v24, 0.0  ;;  %v339_v39 = vadd.f32 %v634_v1, %v268_v25  ;;  %460 = vst [vmem:[%s657_s25 + $0x80] sm:$0xff] %v396_v29  ;;  %461 = vst [vmem:[%s657_s25 + $0x88] sm:$0xff] %v397_v30  ;;  %v269_v42 = vmul.f32 %v624_v0, %v198_v26  ;;  %v270_v43 = vmul.f32 %v624_v0, %v199_v27  ;;  %v215_v29 = vld [vmem:[%s629_s20 + $0x148] sm:$0xff]  ;;  %v216_v30 = vld [vmem:[%s629_s20 + $0x150] sm:$0xff] }
  0x24   : > { %462 = vst [vmem:[%s657_s25 + $0x90] sm:$0xff] %v398_v31  ;;  %v402_v41 = vmax.f32 %v338_v32, 0.0  ;;  %v271_v44 = vmul.f32 %v624_v0, %v200_v28  ;;  %463 = vst [vmem:[%s657_s25 + $0x98] sm:$0xff] %v399_v36  ;;  %v272_v47 = vmul.f32 %v624_v0, %v201_v33  ;;  %v273_v48 = vmul.f32 %v624_v0, %v202_v34  ;;  %v214_v28 = vld [vmem:[%s629_s20 + $0x140] sm:$0xff] }
  0x25   : > { %464 = vst [vmem:[%s657_s25 + $0xa0] sm:$0xff] %v400_v37  ;;  %465 = vst [vmem:[%s657_s25 + $0xa8] sm:$0xff] %v401_v38  ;;  %v403_v46 = vmax.f32 %v339_v39, 0.0  ;;  %v274_v49 = vmul.f32 %v624_v0, %v203_v35  ;;  %v340_v50 = vadd.f32 %v634_v1, %v269_v42  ;;  %v341_v51 = vadd.f32 %v634_v1, %v270_v43  ;;  %v217_v35 = vld [vmem:[%s629_s20 + $0x158] sm:$0xff]  ;;  %v218_v36 = vld [vmem:[%s629_s20 + $0x160] sm:$0xff] }
  0x26   : > { %466 = vst [vmem:[%s657_s25 + $0xb0] sm:$0xff] %v402_v41  ;;  %v342_v52 = vadd.f32 %v634_v1, %v271_v44  ;;  %v275_v53 = vmul.f32 %v624_v0, %v204_v40  ;;  %v343_v54 = vadd.f32 %v634_v1, %v272_v47  ;;  %v344_v55 = vadd.f32 %v634_v1, %v273_v48  ;;  %v219_v37 = vld [vmem:[%s629_s20 + $0x168] sm:$0xff]  ;;  %v220_v42 = vld [vmem:[%s629_s20 + $0x170] sm:$0xff]  ;;  %v221_v47 = vld [vmem:[%s629_s20 + $0x178] sm:$0xff] }
  0x27   : > { %467 = vst [vmem:[%s657_s25 + $0xb8] sm:$0xff] %v403_v46  ;;  %v345_v56 = vadd.f32 %v634_v1, %v274_v49  ;;  %v276_v57 = vmul.f32 %v624_v0, %v205_v45  ;;  %v404_v61 = vmax.f32 %v340_v50, 0.0  ;;  %v405_v62 = vmax.f32 %v341_v51, 0.0 }
  0x28   : > { %v406_v63 = vmax.f32 %v342_v52, 0.0  ;;  %v346_v2 = vadd.f32 %v634_v1, %v275_v53  ;;  %v407_v6 = vmax.f32 %v343_v54, 0.0  ;;  %v408_v7 = vmax.f32 %v344_v55, 0.0 }
  0x29   : > { %v409_v8 = vmax.f32 %v345_v56, 0.0  ;;  %v347_v9 = vadd.f32 %v634_v1, %v276_v57  ;;  %468 = vst [vmem:[%s657_s25 + $0xc0] sm:$0xff] %v404_v61  ;;  %469 = vst [vmem:[%s657_s25 + $0xc8] sm:$0xff] %v405_v62  ;;  %v277_v12 = vmul.f32 %v624_v0, %v206_v58  ;;  %v278_v13 = vmul.f32 %v624_v0, %v207_v59  ;;  %v223_v61 = vld [vmem:[%s629_s20 + $0x188] sm:$0xff]  ;;  %v224_v62 = vld [vmem:[%s629_s20 + $0x190] sm:$0xff] }
  0x2a   : > { %470 = vst [vmem:[%s657_s25 + $0xd0] sm:$0xff] %v406_v63  ;;  %v410_v11 = vmax.f32 %v346_v2, 0.0  ;;  %v279_v14 = vmul.f32 %v624_v0, %v208_v60  ;;  %471 = vst [vmem:[%s657_s25 + $0xd8] sm:$0xff] %v407_v6  ;;  %v280_v17 = vmul.f32 %v624_v0, %v209_v3  ;;  %v281_v18 = vmul.f32 %v624_v0, %v210_v4  ;;  %v222_v60 = vld [vmem:[%s629_s20 + $0x180] sm:$0xff] }
  0x2b   : > { %472 = vst [vmem:[%s657_s25 + $0xe0] sm:$0xff] %v408_v7  ;;  %473 = vst [vmem:[%s657_s25 + $0xe8] sm:$0xff] %v409_v8  ;;  %v411_v16 = vmax.f32 %v347_v9, 0.0  ;;  %v282_v19 = vmul.f32 %v624_v0, %v211_v5  ;;  %v348_v20 = vadd.f32 %v634_v1, %v277_v12  ;;  %v349_v21 = vadd.f32 %v634_v1, %v278_v13  ;;  %v225_v5 = vld [vmem:[%s629_s20 + $0x198] sm:$0xff]  ;;  %v226_v6 = vld [vmem:[%s629_s20 + $0x1a0] sm:$0xff] }
  0x2c   : > { %474 = vst [vmem:[%s657_s25 + $0xf0] sm:$0xff] %v410_v11  ;;  %v350_v22 = vadd.f32 %v634_v1, %v279_v14  ;;  %v283_v23 = vmul.f32 %v624_v0, %v212_v10  ;;  %v351_v24 = vadd.f32 %v634_v1, %v280_v17  ;;  %v352_v25 = vadd.f32 %v634_v1, %v281_v18  ;;  %v227_v7 = vld [vmem:[%s629_s20 + $0x1a8] sm:$0xff]  ;;  %v228_v12 = vld [vmem:[%s629_s20 + $0x1b0] sm:$0xff]  ;;  %v229_v17 = vld [vmem:[%s629_s20 + $0x1b8] sm:$0xff] }
  0x2d   : > { %475 = vst [vmem:[%s657_s25 + $0xf8] sm:$0xff] %v411_v16  ;;  %v353_v26 = vadd.f32 %v634_v1, %v282_v19  ;;  %v284_v27 = vmul.f32 %v624_v0, %v213_v15  ;;  %v412_v31 = vmax.f32 %v348_v20, 0.0  ;;  %v413_v32 = vmax.f32 %v349_v21, 0.0 }
  0x2e   : > { %v414_v33 = vmax.f32 %v350_v22, 0.0  ;;  %v354_v34 = vadd.f32 %v634_v1, %v283_v23  ;;  %v415_v38 = vmax.f32 %v351_v24, 0.0  ;;  %v416_v39 = vmax.f32 %v352_v25, 0.0 }
  0x2f   : > { %v417_v40 = vmax.f32 %v353_v26, 0.0  ;;  %v355_v41 = vadd.f32 %v634_v1, %v284_v27  ;;  %476 = vst [vmem:[%s657_s25 + $0x100] sm:$0xff] %v412_v31  ;;  %477 = vst [vmem:[%s657_s25 + $0x108] sm:$0xff] %v413_v32  ;;  %v285_v44 = vmul.f32 %v624_v0, %v214_v28  ;;  %v286_v45 = vmul.f32 %v624_v0, %v215_v29  ;;  %v231_v31 = vld [vmem:[%s629_s20 + $0x1c8] sm:$0xff]  ;;  %v232_v32 = vld [vmem:[%s629_s20 + $0x1d0] sm:$0xff] }
  0x30   : > { %478 = vst [vmem:[%s657_s25 + $0x110] sm:$0xff] %v414_v33  ;;  %v418_v43 = vmax.f32 %v354_v34, 0.0  ;;  %v287_v46 = vmul.f32 %v624_v0, %v216_v30  ;;  %479 = vst [vmem:[%s657_s25 + $0x118] sm:$0xff] %v415_v38  ;;  %v288_v49 = vmul.f32 %v624_v0, %v217_v35  ;;  %v289_v50 = vmul.f32 %v624_v0, %v218_v36  ;;  %v230_v30 = vld [vmem:[%s629_s20 + $0x1c0] sm:$0xff] }
  0x31   : > { %480 = vst [vmem:[%s657_s25 + $0x120] sm:$0xff] %v416_v39  ;;  %481 = vst [vmem:[%s657_s25 + $0x128] sm:$0xff] %v417_v40  ;;  %v419_v48 = vmax.f32 %v355_v41, 0.0  ;;  %v290_v51 = vmul.f32 %v624_v0, %v219_v37  ;;  %v356_v52 = vadd.f32 %v634_v1, %v285_v44  ;;  %v357_v53 = vadd.f32 %v634_v1, %v286_v45  ;;  %v233_v37 = vld [vmem:[%s629_s20 + $0x1d8] sm:$0xff]  ;;  %v234_v38 = vld [vmem:[%s629_s20 + $0x1e0] sm:$0xff] }
  0x32   : > { %482 = vst [vmem:[%s657_s25 + $0x130] sm:$0xff] %v418_v43  ;;  %v358_v54 = vadd.f32 %v634_v1, %v287_v46  ;;  %v291_v55 = vmul.f32 %v624_v0, %v220_v42  ;;  %v359_v56 = vadd.f32 %v634_v1, %v288_v49  ;;  %v360_v57 = vadd.f32 %v634_v1, %v289_v50  ;;  %v235_v39 = vld [vmem:[%s629_s20 + $0x1e8] sm:$0xff]  ;;  %v236_v44 = vld [vmem:[%s629_s20 + $0x1f0] sm:$0xff]  ;;  %v237_v49 = vld [vmem:[%s629_s20 + $0x1f8] sm:$0xff] }
  0x33   : > { %483 = vst [vmem:[%s657_s25 + $0x138] sm:$0xff] %v419_v48  ;;  %v361_v58 = vadd.f32 %v634_v1, %v290_v51  ;;  %v292_v59 = vmul.f32 %v624_v0, %v221_v47  ;;  %v420_v63 = vmax.f32 %v356_v52, 0.0  ;;  %v421_v2 = vmax.f32 %v357_v53, 0.0 }
  0x34   : > { %v422_v3 = vmax.f32 %v358_v54, 0.0  ;;  %v362_v4 = vadd.f32 %v634_v1, %v291_v55  ;;  %v423_v8 = vmax.f32 %v359_v56, 0.0  ;;  %v424_v9 = vmax.f32 %v360_v57, 0.0 }
  0x35   : > { %v425_v10 = vmax.f32 %v361_v58, 0.0  ;;  %v363_v11 = vadd.f32 %v634_v1, %v292_v59  ;;  %484 = vst [vmem:[%s657_s25 + $0x140] sm:$0xff] %v420_v63  ;;  %485 = vst [vmem:[%s657_s25 + $0x148] sm:$0xff] %v421_v2  ;;  %v293_v14 = vmul.f32 %v624_v0, %v222_v60  ;;  %v294_v15 = vmul.f32 %v624_v0, %v223_v61 }
  0x36   : > { %486 = vst [vmem:[%s657_s25 + $0x150] sm:$0xff] %v422_v3  ;;  %v426_v13 = vmax.f32 %v362_v4, 0.0  ;;  %v295_v16 = vmul.f32 %v624_v0, %v224_v62  ;;  %487 = vst [vmem:[%s657_s25 + $0x158] sm:$0xff] %v423_v8  ;;  %v296_v19 = vmul.f32 %v624_v0, %v225_v5  ;;  %v297_v20 = vmul.f32 %v624_v0, %v226_v6 }
  0x37   : > { %488 = vst [vmem:[%s657_s25 + $0x160] sm:$0xff] %v424_v9  ;;  %489 = vst [vmem:[%s657_s25 + $0x168] sm:$0xff] %v425_v10  ;;  %v427_v18 = vmax.f32 %v363_v11, 0.0  ;;  %v298_v21 = vmul.f32 %v624_v0, %v227_v7  ;;  %v364_v22 = vadd.f32 %v634_v1, %v293_v14  ;;  %v365_v23 = vadd.f32 %v634_v1, %v294_v15 }
  0x38   : > { %490 = vst [vmem:[%s657_s25 + $0x170] sm:$0xff] %v426_v13  ;;  %v366_v24 = vadd.f32 %v634_v1, %v295_v16  ;;  %v299_v25 = vmul.f32 %v624_v0, %v228_v12  ;;  %v367_v26 = vadd.f32 %v634_v1, %v296_v19  ;;  %v368_v27 = vadd.f32 %v634_v1, %v297_v20 }
  0x39   : > { %491 = vst [vmem:[%s657_s25 + $0x178] sm:$0xff] %v427_v18  ;;  %v369_v28 = vadd.f32 %v634_v1, %v298_v21  ;;  %v300_v29 = vmul.f32 %v624_v0, %v229_v17  ;;  %v428_v33 = vmax.f32 %v364_v22, 0.0  ;;  %v429_v34 = vmax.f32 %v365_v23, 0.0 }
  0x3a   : > { %v430_v35 = vmax.f32 %v366_v24, 0.0  ;;  %v370_v36 = vadd.f32 %v634_v1, %v299_v25  ;;  %v431_v40 = vmax.f32 %v367_v26, 0.0  ;;  %v432_v41 = vmax.f32 %v368_v27, 0.0 }
  0x3b   : > { %v433_v42 = vmax.f32 %v369_v28, 0.0  ;;  %v371_v43 = vadd.f32 %v634_v1, %v300_v29  ;;  %492 = vst [vmem:[%s657_s25 + $0x180] sm:$0xff] %v428_v33  ;;  %493 = vst [vmem:[%s657_s25 + $0x188] sm:$0xff] %v429_v34  ;;  %v301_v46 = vmul.f32 %v624_v0, %v230_v30  ;;  %v302_v47 = vmul.f32 %v624_v0, %v231_v31 }
  0x3c   : > { %494 = vst [vmem:[%s657_s25 + $0x190] sm:$0xff] %v430_v35  ;;  %v434_v45 = vmax.f32 %v370_v36, 0.0  ;;  %v303_v48 = vmul.f32 %v624_v0, %v232_v32  ;;  %495 = vst [vmem:[%s657_s25 + $0x198] sm:$0xff] %v431_v40  ;;  %v304_v51 = vmul.f32 %v624_v0, %v233_v37  ;;  %v305_v52 = vmul.f32 %v624_v0, %v234_v38 }
  0x3d   : > { %496 = vst [vmem:[%s657_s25 + $0x1a0] sm:$0xff] %v432_v41  ;;  %497 = vst [vmem:[%s657_s25 + $0x1a8] sm:$0xff] %v433_v42  ;;  %v435_v50 = vmax.f32 %v371_v43, 0.0  ;;  %v306_v53 = vmul.f32 %v624_v0, %v235_v39  ;;  %v372_v54 = vadd.f32 %v634_v1, %v301_v46  ;;  %v373_v55 = vadd.f32 %v634_v1, %v302_v47 }
  0x3e   : > { %498 = vst [vmem:[%s657_s25 + $0x1b0] sm:$0xff] %v434_v45  ;;  %v374_v56 = vadd.f32 %v634_v1, %v303_v48  ;;  %v307_v57 = vmul.f32 %v624_v0, %v236_v44  ;;  %v375_v58 = vadd.f32 %v634_v1, %v304_v51  ;;  %v376_v59 = vadd.f32 %v634_v1, %v305_v52 }
  0x3f   : > { %499 = vst [vmem:[%s657_s25 + $0x1b8] sm:$0xff] %v435_v50  ;;  %v377_v60 = vadd.f32 %v634_v1, %v306_v53  ;;  %v308_v61 = vmul.f32 %v624_v0, %v237_v49  ;;  %v436_v62 = vmax.f32 %v372_v54, 0.0  ;;  %v437_v63 = vmax.f32 %v373_v55, 0.0 }
  0x40   : > { %v438_v2 = vmax.f32 %v374_v56, 0.0  ;;  %v378_v3 = vadd.f32 %v634_v1, %v307_v57  ;;  %v439_v4 = vmax.f32 %v375_v58, 0.0  ;;  %v440_v5 = vmax.f32 %v376_v59, 0.0 }
  0x41   : > { %v441_v6 = vmax.f32 %v377_v60, 0.0  ;;  %v379_v7 = vadd.f32 %v634_v1, %v308_v61  ;;  %500 = vst [vmem:[%s657_s25 + $0x1c0] sm:$0xff] %v436_v62  ;;  %501 = vst [vmem:[%s657_s25 + $0x1c8] sm:$0xff] %v437_v63 }
  0x42   : > { %502 = vst [vmem:[%s657_s25 + $0x1d0] sm:$0xff] %v438_v2  ;;  %v442_v8 = vmax.f32 %v378_v3, 0.0  ;;  %503 = vst [vmem:[%s657_s25 + $0x1d8] sm:$0xff] %v439_v4 }
  0x43   : > { %504 = vst [vmem:[%s657_s25 + $0x1e0] sm:$0xff] %v440_v5  ;;  %505 = vst [vmem:[%s657_s25 + $0x1e8] sm:$0xff] %v441_v6  ;;  %v443_v0 = vmax.f32 %v379_v7, 0.0 }
  0x44   : > { %506 = vst [vmem:[%s657_s25 + $0x1f0] sm:$0xff] %v442_v8 }
  0x45   : > { %507 = vst [vmem:[%s657_s25 + $0x1f8] sm:$0xff] %v443_v0 }
  0x46 PF: > { %s13_s12 = sadd.s32 1, %s591_s12  }
  0x47   : > { %p10_p4 = scmp.ge.s32.totalorder %s13_s12, 4  }
  0x49   :  { %12 = sbr.rel (!%p10_p4) target bundleno = 1 (0x1), region = 62 }

// kernel: derain_forward.55
= control target key start
LH: loop header
LB: loop body
LE: loop exit
PB: predicated region body
PF: predicated region fallthrough
CT: control target
= control target key end

     0   :  { %s821_s1 = inlined_call_operand.vmem [shape: bf16[128,128], index: 1, kind: input, shape index: {}]   ;;  %s822_s0 = inlined_call_operand.vmem [shape: bf16[256,128], index: 0, kind: input, shape index: {}]   ;;  %s823_s2 = inlined_call_operand.vmem [shape: f32[256,128], index: 2, kind: output, shape index: {}]  }
   0x1   :  { %v614_v0 = vld [vmem:[%s821_s1] sm:$0xff]   ;;  %v615_v1 = vld [vmem:[%s821_s1 + $0x8] sm:$0xff]   ;;  %v616_v2 = vld [vmem:[%s821_s1 + $0x10] sm:$0xff]  }
   0x2   :  { %549 = vmatprep.subr.bf16.mxu0 %v614_v0  ;;  %597 = vmatprep.subr.bf16.mxu1 %v614_v0  ;;  %v617_v3 = vld [vmem:[%s821_s1 + $0x18] sm:$0xff]   ;;  %v622_v4 = vld [vmem:[%s822_s0] sm:$0xff]   ;;  %v619_v7 = vld [vmem:[%s821_s1 + $0x28] sm:$0xff]  }
   0x3   :  { %550 = vmatpush3.bf16.msra.mxu0 %v614_v0  ;;  %605 = vmatpush3.bf16.msra.mxu1 %v614_v0  ;;  %v623_v5 = vld [vmem:[%s822_s0 + $0x40] sm:$0xff]   ;;  %v620_v8 = vld [vmem:[%s821_s1 + $0x30] sm:$0xff]   ;;  %v621_v9 = vld [vmem:[%s821_s1 + $0x38] sm:$0xff]  }
   0x4   :  { %551 = vmatprep.subr.bf16.mxu0 %v615_v1  ;;  %598 = vmatprep.subr.bf16.mxu1 %v615_v1  ;;  %v618_v6 = vld [vmem:[%s821_s1 + $0x20] sm:$0xff]   ;;  %v624_v10 = vld [vmem:[%s822_s0 + $0x8] sm:$0xff]   ;;  %v626_v12 = vld [vmem:[%s822_s0 + $0x10] sm:$0xff]  }
   0x5   :  { %565 = vmatprep.mubr.bf16.mxu0 %v622_v4  ;;  %581 = vmatprep.mubr.bf16.mxu1 %v623_v5  ;;  %v625_v11 = vld [vmem:[%s822_s0 + $0x48] sm:$0xff]   ;;  %v627_v13 = vld [vmem:[%s822_s0 + $0x50] sm:$0xff]   ;;  %v628_v14 = vld [vmem:[%s822_s0 + $0x18] sm:$0xff]  }
   0x6   :  { %v629_v15 = vld [vmem:[%s822_s0 + $0x58] sm:$0xff]   ;;  %v630_v16 = vld [vmem:[%s822_s0 + $0x20] sm:$0xff]   ;;  %v632_v18 = vld [vmem:[%s822_s0 + $0x28] sm:$0xff]  }
   0x7   :  { %552 = vmatpush3.bf16.msra.mxu0 %v615_v1  ;;  %606 = vmatpush3.bf16.msra.mxu1 %v615_v1  ;;  %v631_v17 = vld [vmem:[%s822_s0 + $0x60] sm:$0xff]   ;;  %v633_v19 = vld [vmem:[%s822_s0 + $0x68] sm:$0xff]   ;;  %v634_v20 = vld [vmem:[%s822_s0 + $0x30] sm:$0xff]  }
   0x8   :  { %553 = vmatprep.subr.bf16.mxu0 %v616_v2  ;;  %599 = vmatprep.subr.bf16.mxu1 %v616_v2  ;;  %v635_v21 = vld [vmem:[%s822_s0 + $0x70] sm:$0xff]   ;;  %v636_v22 = vld [vmem:[%s822_s0 + $0x38] sm:$0xff]  }
   0x9   :  { %v637_v23 = vld [vmem:[%s822_s0 + $0x78] sm:$0xff]  }
   0xb   :  { %554 = vmatpush3.bf16.msra.mxu0 %v616_v2  ;;  %607 = vmatpush3.bf16.msra.mxu1 %v616_v2 }
   0xc   :  { %555 = vmatprep.subr.bf16.mxu0 %v617_v3  ;;  %600 = vmatprep.subr.bf16.mxu1 %v617_v3 }
   0xf   :  { %556 = vmatpush3.bf16.msra.mxu0 %v617_v3  ;;  %608 = vmatpush3.bf16.msra.mxu1 %v617_v3 }
  0x10   :  { %557 = vmatprep.subr.bf16.mxu0 %v618_v6  ;;  %601 = vmatprep.subr.bf16.mxu1 %v618_v6 }
  0x13   :  { %558 = vmatpush3.bf16.msra.mxu0 %v618_v6  ;;  %609 = vmatpush3.bf16.msra.mxu1 %v618_v6 }
  0x14   :  { %559 = vmatprep.subr.bf16.mxu0 %v619_v7  ;;  %602 = vmatprep.subr.bf16.mxu1 %v619_v7 }
  0x17   :  { %560 = vmatpush3.bf16.msra.mxu0 %v619_v7  ;;  %610 = vmatpush3.bf16.msra.mxu1 %v619_v7 }
  0x18   :  { %561 = vmatprep.subr.bf16.mxu0 %v620_v8  ;;  %603 = vmatprep.subr.bf16.mxu1 %v620_v8 }
  0x1b   :  { %562 = vmatpush3.bf16.msra.mxu0 %v620_v8  ;;  %611 = vmatpush3.bf16.msra.mxu1 %v620_v8 }
  0x1c   :  { %563 = vmatprep.subr.bf16.mxu0 %v621_v9  ;;  %604 = vmatprep.subr.bf16.mxu1 %v621_v9 }
  0x1f   :  { %564 = vmatpush3.bf16.msra.mxu0 %v621_v9  ;;  %612 = vmatpush3.bf16.msra.mxu1 %v621_v9 }
  0x22   :  { %566 = vmatmul.mubr.bf16.vlgmr.msra.gmra.mrb[0].mxu0 %v624_v10  ;;  %582 = vmatmul.mubr.bf16.vlgmr.msra.gmra.mrb[0].mxu1 %v625_v11 }
  0x23   :  { %569 = vmatprep.mubr.bf16.mxu0 %v626_v12  ;;  %585 = vmatprep.mubr.bf16.mxu1 %v627_v13 }
  0x2a   :  { %570 = vmatmul.mubr.bf16.gmra.mrb[4].mxu0 %v628_v14  ;;  %586 = vmatmul.mubr.bf16.gmra.mrb[4].mxu1 %v629_v15 }
  0x2b   :  { %573 = vmatprep.mubr.bf16.mxu0 %v630_v16  ;;  %589 = vmatprep.mubr.bf16.mxu1 %v631_v17 }
  0x32   :  { %574 = vmatmul.mubr.bf16.gmra.mrb[8].mxu0 %v632_v18  ;;  %590 = vmatmul.mubr.bf16.gmra.mrb[8].mxu1 %v633_v19 }
  0x33   :  { %577 = vmatprep.mubr.bf16.mxu0 %v634_v20  ;;  %593 = vmatprep.mubr.bf16.mxu1 %v635_v21 }
  0x3a   :  { %578 = vmatmul.mubr.bf16.gmra.mrb[12].mxu0 %v636_v22  ;;  %594 = vmatmul.mubr.bf16.gmra.mrb[12].mxu1 %v637_v23 }
  0xf5   :  { %v567_v24 = vpop.f32.mrb[0].mxu0  ;;  %v583_v25 = vpop.f32.mrb[0].mxu1 }
  0xf6   :  { %v306_v26 = vpop.f32.mrb[1].mxu0  ;;  %v370_v27 = vpop.f32.mrb[1].mxu1  ;;  %467 = vst [vmem:[%s823_s2 + $0x10] sm:$0xff] %v567_v24  ;;  %483 = vst [vmem:[%s823_s2 + $0x90] sm:$0xff] %v583_v25 }
  0xf7   :  { %v568_v28 = vpop.f32.mrb[2].mxu0  ;;  %v584_v29 = vpop.f32.mrb[2].mxu1  ;;  %465 = vst [vmem:[%s823_s2] sm:$0xff] %v306_v26  ;;  %481 = vst [vmem:[%s823_s2 + $0x80] sm:$0xff] %v370_v27 }
  0xf8   :  { %v309_v30 = vpop.f32.mrb[3].mxu0  ;;  %v373_v31 = vpop.f32.mrb[3].mxu1  ;;  %468 = vst [vmem:[%s823_s2 + $0x18] sm:$0xff] %v568_v28  ;;  %484 = vst [vmem:[%s823_s2 + $0x98] sm:$0xff] %v584_v29 }
  0xf9   :  { %466 = vst [vmem:[%s823_s2 + $0x8] sm:$0xff] %v309_v30  ;;  %482 = vst [vmem:[%s823_s2 + $0x88] sm:$0xff] %v373_v31 }
  0xfd   :  { %v571_v32 = vpop.f32.mrb[4].mxu0  ;;  %v587_v33 = vpop.f32.mrb[4].mxu1 }
  0xfe   :  { %v322_v34 = vpop.f32.mrb[5].mxu0  ;;  %v386_v35 = vpop.f32.mrb[5].mxu1  ;;  %471 = vst [vmem:[%s823_s2 + $0x30] sm:$0xff] %v571_v32  ;;  %487 = vst [vmem:[%s823_s2 + $0xb0] sm:$0xff] %v587_v33 }
  0xff   :  { %v572_v36 = vpop.f32.mrb[6].mxu0  ;;  %v588_v37 = vpop.f32.mrb[6].mxu1  ;;  %469 = vst [vmem:[%s823_s2 + $0x20] sm:$0xff] %v322_v34  ;;  %485 = vst [vmem:[%s823_s2 + $0xa0] sm:$0xff] %v386_v35 }
 0x100   :  { %v325_v38 = vpop.f32.mrb[7].mxu0  ;;  %v389_v39 = vpop.f32.mrb[7].mxu1  ;;  %472 = vst [vmem:[%s823_s2 + $0x38] sm:$0xff] %v572_v36  ;;  %488 = vst [vmem:[%s823_s2 + $0xb8] sm:$0xff] %v588_v37 }
 0x101   :  { %470 = vst [vmem:[%s823_s2 + $0x28] sm:$0xff] %v325_v38  ;;  %486 = vst [vmem:[%s823_s2 + $0xa8] sm:$0xff] %v389_v39 }
 0x105   :  { %v575_v40 = vpop.f32.mrb[8].mxu0  ;;  %v591_v41 = vpop.f32.mrb[8].mxu1 }
 0x106   :  { %v338_v42 = vpop.f32.mrb[9].mxu0  ;;  %v402_v43 = vpop.f32.mrb[9].mxu1  ;;  %475 = vst [vmem:[%s823_s2 + $0x50] sm:$0xff] %v575_v40  ;;  %491 = vst [vmem:[%s823_s2 + $0xd0] sm:$0xff] %v591_v41 }
 0x107   :  { %v576_v44 = vpop.f32.mrb[10].mxu0  ;;  %v592_v45 = vpop.f32.mrb[10].mxu1  ;;  %473 = vst [vmem:[%s823_s2 + $0x40] sm:$0xff] %v338_v42  ;;  %489 = vst [vmem:[%s823_s2 + $0xc0] sm:$0xff] %v402_v43 }
 0x108   :  { %v341_v46 = vpop.f32.mrb[11].mxu0  ;;  %v405_v47 = vpop.f32.mrb[11].mxu1  ;;  %476 = vst [vmem:[%s823_s2 + $0x58] sm:$0xff] %v576_v44  ;;  %492 = vst [vmem:[%s823_s2 + $0xd8] sm:$0xff] %v592_v45 }
 0x109   :  { %474 = vst [vmem:[%s823_s2 + $0x48] sm:$0xff] %v341_v46  ;;  %490 = vst [vmem:[%s823_s2 + $0xc8] sm:$0xff] %v405_v47 }
 0x10d   :  { %v579_v48 = vpop.f32.mrb[12].mxu0  ;;  %v595_v49 = vpop.f32.mrb[12].mxu1 }
 0x10e   :  { %v354_v50 = vpop.f32.mrb[13].mxu0  ;;  %v418_v51 = vpop.f32.mrb[13].mxu1  ;;  %479 = vst [vmem:[%s823_s2 + $0x70] sm:$0xff] %v579_v48  ;;  %495 = vst [vmem:[%s823_s2 + $0xf0] sm:$0xff] %v595_v49 }
 0x10f   :  { %v580_v52 = vpop.f32.mrb[14].mxu0  ;;  %v596_v53 = vpop.f32.mrb[14].mxu1  ;;  %477 = vst [vmem:[%s823_s2 + $0x60] sm:$0xff] %v354_v50  ;;  %493 = vst [vmem:[%s823_s2 + $0xe0] sm:$0xff] %v418_v51 }
 0x110   :  { %v357_v54 = vpop.f32.mrb[15].mxu0  ;;  %v421_v55 = vpop.f32.mrb[15].mxu1  ;;  %480 = vst [vmem:[%s823_s2 + $0x78] sm:$0xff] %v580_v52  ;;  %496 = vst [vmem:[%s823_s2 + $0xf8] sm:$0xff] %v596_v53 }
 0x111   :  { %478 = vst [vmem:[%s823_s2 + $0x68] sm:$0xff] %v357_v54  ;;  %494 = vst [vmem:[%s823_s2 + $0xe8] sm:$0xff] %v421_v55 }

// kernel: derain_forward.56
= control target key start
LH: loop header
LB: loop body
LE: loop exit
PB: predicated region body
PF: predicated region fallthrough
CT: control target
= control target key end

     0   :  { %v169_v0 = vmov 0.0   ;;  %s299_s1 = inlined_call_operand.vmem [shape: f32[1,128], index: 1, kind: output, shape index: {0}]   ;;  %s300_s2 = inlined_call_operand.vmem [shape: f32[1,128], index: 2, kind: output, shape index: {1}]   ;;  %s301_s0 = inlined_call_operand.vmem [shape: f32[256,128], index: 0, kind: input, shape index: {}]  }
   0x1   :  { %14 = vst [vmem:[%s299_s1] sm:$0x1] %v169_v0  ;;  %15 = vst [vmem:[%s300_s2] sm:$0x1] %v169_v0  ;;  %v16_v1 = vld [vmem:[%s301_s0] sm:$0xff]  ;;  %v17_v2 = vld [vmem:[%s301_s0 + $0x8] sm:$0xff] }
   0x2   :  { %v18_v3 = vld [vmem:[%s301_s0 + $0x10] sm:$0xff]  ;;  %v19_v4 = vld [vmem:[%s301_s0 + $0x18] sm:$0xff]  ;;  %v49_v5 = vadd.f32 %v17_v2, %v16_v1  ;;  %v89_v6 = vmul.f32 %v16_v1, %v16_v1  ;;  %v90_v7 = vmul.f32 %v17_v2, %v17_v2  ;;  %v20_v9 = vld [vmem:[%s301_s0 + $0x20] sm:$0xff] }
   0x3   :  { %v91_v8 = vmul.f32 %v18_v3, %v18_v3  ;;  %v92_v11 = vmul.f32 %v19_v4, %v19_v4  ;;  %v21_v13 = vld [vmem:[%s301_s0 + $0x28] sm:$0xff]  ;;  %v93_v15 = vmul.f32 %v20_v9, %v20_v9  ;;  %v22_v17 = vld [vmem:[%s301_s0 + $0x30] sm:$0xff]  ;;  %v23_v21 = vld [vmem:[%s301_s0 + $0x38] sm:$0xff] }
   0x4   :  { %v50_v10 = vadd.f32 %v49_v5, %v18_v3  ;;  %v121_v12 = vadd.f32 %v90_v7, %v89_v6  ;;  %v94_v19 = vmul.f32 %v21_v13, %v21_v13  ;;  %v95_v23 = vmul.f32 %v22_v17, %v22_v17  ;;  %v24_v25 = vld [vmem:[%s301_s0 + $0x40] sm:$0xff]  ;;  %v25_v29 = vld [vmem:[%s301_s0 + $0x48] sm:$0xff]  ;;  %v26_v33 = vld [vmem:[%s301_s0 + $0x50] sm:$0xff] }
   0x5   :  { %v96_v27 = vmul.f32 %v23_v21, %v23_v21  ;;  %v97_v31 = vmul.f32 %v24_v25, %v24_v25  ;;  %v98_v35 = vmul.f32 %v25_v29, %v25_v29  ;;  %v27_v37 = vld [vmem:[%s301_s0 + $0x58] sm:$0xff]  ;;  %v99_v39 = vmul.f32 %v26_v33, %v26_v33  ;;  %v28_v41 = vld [vmem:[%s301_s0 + $0x60] sm:$0xff]  ;;  %v29_v45 = vld [vmem:[%s301_s0 + $0x68] sm:$0xff] }
   0x6   :  { %v51_v14 = vadd.f32 %v50_v10, %v19_v4  ;;  %v122_v16 = vadd.f32 %v121_v12, %v91_v8  ;;  %v100_v43 = vmul.f32 %v27_v37, %v27_v37  ;;  %v101_v47 = vmul.f32 %v28_v41, %v28_v41  ;;  %v30_v49 = vld [vmem:[%s301_s0 + $0x70] sm:$0xff]  ;;  %v31_v53 = vld [vmem:[%s301_s0 + $0x78] sm:$0xff]  ;;  %v32_v57 = vld [vmem:[%s301_s0 + $0x80] sm:$0xff] }
   0x7   :  { %v102_v51 = vmul.f32 %v29_v45, %v29_v45  ;;  %v103_v55 = vmul.f32 %v30_v49, %v30_v49  ;;  %v104_v59 = vmul.f32 %v31_v53, %v31_v53  ;;  %v33_v61 = vld [vmem:[%s301_s0 + $0x88] sm:$0xff]  ;;  %v105_v63 = vmul.f32 %v32_v57, %v32_v57  ;;  %v34_v1 = vld [vmem:[%s301_s0 + $0x90] sm:$0xff]  ;;  %v35_v5 = vld [vmem:[%s301_s0 + $0x98] sm:$0xff] }
   0x8   :  { %v52_v18 = vadd.f32 %v51_v14, %v20_v9  ;;  %v123_v20 = vadd.f32 %v122_v16, %v92_v11  ;;  %v106_v3 = vmul.f32 %v33_v61, %v33_v61  ;;  %v107_v7 = vmul.f32 %v34_v1, %v34_v1  ;;  %v36_v9 = vld [vmem:[%s301_s0 + $0xa0] sm:$0xff] }
   0x9   :  { %v108_v11 = vmul.f32 %v35_v5, %v35_v5 }
   0xa   :  { %v53_v22 = vadd.f32 %v52_v18, %v21_v13  ;;  %v124_v24 = vadd.f32 %v123_v20, %v93_v15  ;;  %v37_v13 = vld [vmem:[%s301_s0 + $0xa8] sm:$0xff]  ;;  %v109_v15 = vmul.f32 %v36_v9, %v36_v9 }
   0xc   :  { %v54_v26 = vadd.f32 %v53_v22, %v22_v17  ;;  %v125_v28 = vadd.f32 %v124_v24, %v94_v19  ;;  %v38_v17 = vld [vmem:[%s301_s0 + $0xb0] sm:$0xff]  ;;  %v110_v19 = vmul.f32 %v37_v13, %v37_v13 }
   0xe   :  { %v55_v30 = vadd.f32 %v54_v26, %v23_v21  ;;  %v126_v32 = vadd.f32 %v125_v28, %v95_v23  ;;  %v39_v21 = vld [vmem:[%s301_s0 + $0xb8] sm:$0xff]  ;;  %v111_v23 = vmul.f32 %v38_v17, %v38_v17 }
  0x10   :  { %v56_v34 = vadd.f32 %v55_v30, %v24_v25  ;;  %v127_v36 = vadd.f32 %v126_v32, %v96_v27  ;;  %v40_v25 = vld [vmem:[%s301_s0 + $0xc0] sm:$0xff]  ;;  %v112_v27 = vmul.f32 %v39_v21, %v39_v21 }
  0x12   :  { %v57_v38 = vadd.f32 %v56_v34, %v25_v29  ;;  %v128_v40 = vadd.f32 %v127_v36, %v97_v31  ;;  %v41_v29 = vld [vmem:[%s301_s0 + $0xc8] sm:$0xff]  ;;  %v113_v31 = vmul.f32 %v40_v25, %v40_v25 }
  0x14   :  { %v58_v42 = vadd.f32 %v57_v38, %v26_v33  ;;  %v129_v44 = vadd.f32 %v128_v40, %v98_v35  ;;  %v42_v33 = vld [vmem:[%s301_s0 + $0xd0] sm:$0xff]  ;;  %v114_v35 = vmul.f32 %v41_v29, %v41_v29 }
  0x16   :  { %v59_v46 = vadd.f32 %v58_v42, %v27_v37  ;;  %v130_v48 = vadd.f32 %v129_v44, %v99_v39  ;;  %v43_v37 = vld [vmem:[%s301_s0 + $0xd8] sm:$0xff]  ;;  %v115_v39 = vmul.f32 %v42_v33, %v42_v33 }
  0x18   :  { %v60_v50 = vadd.f32 %v59_v46, %v28_v41  ;;  %v131_v52 = vadd.f32 %v130_v48, %v100_v43  ;;  %v44_v41 = vld [vmem:[%s301_s0 + $0xe0] sm:$0xff]  ;;  %v116_v43 = vmul.f32 %v43_v37, %v43_v37 }
  0x1a   :  { %v61_v54 = vadd.f32 %v60_v50, %v29_v45  ;;  %v132_v56 = vadd.f32 %v131_v52, %v101_v47  ;;  %v45_v45 = vld [vmem:[%s301_s0 + $0xe8] sm:$0xff]  ;;  %v117_v47 = vmul.f32 %v44_v41, %v44_v41 }
  0x1c   :  { %v62_v58 = vadd.f32 %v61_v54, %v30_v49  ;;  %v133_v60 = vadd.f32 %v132_v56, %v102_v51  ;;  %v46_v49 = vld [vmem:[%s301_s0 + $0xf0] sm:$0xff]  ;;  %v118_v51 = vmul.f32 %v45_v45, %v45_v45 }
  0x1e   :  { %v63_v62 = vadd.f32 %v62_v58, %v31_v53  ;;  %v134_v0 = vadd.f32 %v133_v60, %v103_v55  ;;  %v47_v53 = vld [vmem:[%s301_s0 + $0xf8] sm:$0xff]  ;;  %v119_v55 = vmul.f32 %v46_v49, %v46_v49 }
  0x1f   :  { %v120_v58 = vmul.f32 %v47_v53, %v47_v53 }
  0x20   :  { %v64_v2 = vadd.f32 %v63_v62, %v32_v57  ;;  %v135_v4 = vadd.f32 %v134_v0, %v104_v59 }
  0x22   :  { %v65_v6 = vadd.f32 %v64_v2, %v33_v61  ;;  %v136_v8 = vadd.f32 %v135_v4, %v105_v63 }
  0x24   :  { %v66_v10 = vadd.f32 %v65_v6, %v34_v1  ;;  %v137_v12 = vadd.f32 %v136_v8, %v106_v3 }
  0x26   :  { %v67_v14 = vadd.f32 %v66_v10, %v35_v5  ;;  %v138_v16 = vadd.f32 %v137_v12, %v107_v7  ;;  %v48_v7 = vld [vmem:[%s299_s1] sm:$0x1] }
  0x27   :  { %v88_v12 = vld [vmem:[%s300_s2] sm:$0x1] }
  0x28   :  { %v68_v18 = vadd.f32 %v67_v14, %v36_v9  ;;  %v139_v20 = vadd.f32 %v138_v16, %v108_v11 }
  0x2a   :  { %v69_v22 = vadd.f32 %v68_v18, %v37_v13  ;;  %v140_v24 = vadd.f32 %v139_v20, %v109_v15 }
  0x2c   :  { %v70_v26 = vadd.f32 %v69_v22, %v38_v17  ;;  %v141_v28 = vadd.f32 %v140_v24, %v110_v19 }
  0x2e   :  { %v71_v30 = vadd.f32 %v70_v26, %v39_v21  ;;  %v142_v32 = vadd.f32 %v141_v28, %v111_v23 }
  0x30   :  { %v72_v34 = vadd.f32 %v71_v30, %v40_v25  ;;  %v143_v36 = vadd.f32 %v142_v32, %v112_v27 }
  0x32   :  { %v73_v38 = vadd.f32 %v72_v34, %v41_v29  ;;  %v144_v40 = vadd.f32 %v143_v36, %v113_v31 }
  0x34   :  { %v74_v42 = vadd.f32 %v73_v38, %v42_v33  ;;  %v145_v44 = vadd.f32 %v144_v40, %v114_v35 }
  0x36   :  { %v75_v46 = vadd.f32 %v74_v42, %v43_v37  ;;  %v146_v48 = vadd.f32 %v145_v44, %v115_v39 }
  0x38   :  { %v76_v50 = vadd.f32 %v75_v46, %v44_v41  ;;  %v147_v52 = vadd.f32 %v146_v48, %v116_v43 }
  0x3a   :  { %v77_v54 = vadd.f32 %v76_v50, %v45_v45  ;;  %v148_v56 = vadd.f32 %v147_v52, %v117_v47 }
  0x3c   :  { %v78_v57 = vadd.f32 %v77_v54, %v46_v49  ;;  %v149_v59 = vadd.f32 %v148_v56, %v118_v51 }
  0x3e   :  { %v79_v60 = vadd.f32 %v78_v57, %v47_v53  ;;  %v150_v61 = vadd.f32 %v149_v59, %v119_v55 }
  0x40   :  { %v80_v62 = vrot.slane %v79_v60, 4  ;;  %v151_v63 = vadd.f32 %v150_v61, %v120_v58 }
  0x42   :  { %v81_v0 = vadd.f32 %v80_v62, %v79_v60  ;;  %v152_v1 = vrot.slane %v151_v63, 4 }
  0x44   :  { %v82_v2 = vrot.slane %v81_v0, 2  ;;  %v153_v3 = vadd.f32 %v152_v1, %v151_v63 }
  0x46   :  { %v83_v4 = vadd.f32 %v82_v2, %v81_v0  ;;  %v154_v5 = vrot.slane %v153_v3, 2 }
  0x48   :  { %v84_v6 = vrot.slane %v83_v4, 1  ;;  %v155_v8 = vadd.f32 %v154_v5, %v153_v3 }
  0x4a   :  { %v85_v9 = vadd.f32 %v84_v6, %v83_v4  ;;  %v156_v10 = vrot.slane %v155_v8, 1 }
  0x4c   :  { %v86_v11 = vadd.f32 %v85_v9, %v48_v7  ;;  %v157_v13 = vadd.f32 %v156_v10, %v155_v8 }
  0x4e   :  { %87 = vst [vmem:[%s299_s1] sm:$0x1] %v86_v11  ;;  %v158_v14 = vadd.f32 %v157_v13, %v88_v12 }
  0x50   :  { %159 = vst [vmem:[%s300_s2] sm:$0x1] %v158_v14 }

// kernel: derain_forward.57
= control target key start
LH: loop header
LB: loop body
LE: loop exit
PB: predicated region body
PF: predicated region fallthrough
CT: control target
= control target key end

     0   :  { %s480_s0 = inlined_call_operand.vmem [shape: f32[256,128], index: 0, kind: input, shape index: {}]   ;;  %s481_s1 = inlined_call_operand.vmem [shape: f32[1,128], index: 1, kind: input, shape index: {}]   ;;  %s482_s2 = inlined_call_operand.vmem [shape: f32[1,128], index: 2, kind: input, shape index: {}]   ;;  %s483_s3 = inlined_call_operand.vmem [shape: f32[256,128], index: 3, kind: output, shape index: {}]  }
   0x1   :  { %v14_v0 = vld [vmem:[%s480_s0] sm:$0xff]  ;;  %v15_v4 = vld [vmem:[%s480_s0 + $0x8] sm:$0xff]  ;;  %v16_v5 = vld [vmem:[%s480_s0 + $0x10] sm:$0xff] }
   0x2   :  { %v220_v1 = vld [vmem:[%s481_s1] ss:$0 sm:$0xff]  ;;  %v17_v6 = vld [vmem:[%s480_s0 + $0x18] sm:$0xff]  ;;  %v19_v11 = vld [vmem:[%s480_s0 + $0x28] sm:$0xff] }
   0x3   :  { %v225_v2 = vld [vmem:[%s482_s2] ss:$0 sm:$0xff]  ;;  %v53_v3 = vmul.f32 %v220_v1, %v14_v0  ;;  %v54_v7 = vmul.f32 %v220_v1, %v15_v4  ;;  %v55_v8 = vmul.f32 %v220_v1, %v16_v5  ;;  %v56_v9 = vmul.f32 %v220_v1, %v17_v6  ;;  %v20_v12 = vld [vmem:[%s480_s0 + $0x30] sm:$0xff]  ;;  %v21_v17 = vld [vmem:[%s480_s0 + $0x38] sm:$0xff] }
   0x4   :  { %v18_v10 = vld [vmem:[%s480_s0 + $0x20] sm:$0xff]  ;;  %v58_v15 = vmul.f32 %v220_v1, %v19_v11  ;;  %v59_v16 = vmul.f32 %v220_v1, %v20_v12  ;;  %v60_v21 = vmul.f32 %v220_v1, %v21_v17  ;;  %v23_v27 = vld [vmem:[%s480_s0 + $0x48] sm:$0xff]  ;;  %v24_v28 = vld [vmem:[%s480_s0 + $0x50] sm:$0xff] }
   0x5   :  { %v92_v13 = vadd.f32 %v225_v2, %v53_v3  ;;  %v57_v14 = vmul.f32 %v220_v1, %v18_v10  ;;  %v93_v18 = vadd.f32 %v225_v2, %v54_v7  ;;  %v94_v19 = vadd.f32 %v225_v2, %v55_v8  ;;  %v22_v22 = vld [vmem:[%s480_s0 + $0x40] sm:$0xff]  ;;  %v25_v29 = vld [vmem:[%s480_s0 + $0x58] sm:$0xff]  ;;  %v27_v35 = vld [vmem:[%s480_s0 + $0x68] sm:$0xff] }
   0x6   :  { %v95_v20 = vadd.f32 %v225_v2, %v56_v9  ;;  %v97_v25 = vadd.f32 %v225_v2, %v58_v15  ;;  %v98_v26 = vadd.f32 %v225_v2, %v59_v16  ;;  %v99_v33 = vadd.f32 %v225_v2, %v60_v21  ;;  %v26_v34 = vld [vmem:[%s480_s0 + $0x60] sm:$0xff]  ;;  %v28_v36 = vld [vmem:[%s480_s0 + $0x70] sm:$0xff]  ;;  %v29_v41 = vld [vmem:[%s480_s0 + $0x78] sm:$0xff] }
   0x7   :  { %v124_v23 = vmax.f32 %v92_v13, 0.0  ;;  %v96_v24 = vadd.f32 %v225_v2, %v57_v14  ;;  %v125_v30 = vmax.f32 %v93_v18, 0.0  ;;  %v126_v31 = vmax.f32 %v94_v19, 0.0  ;;  %v30_v54 = vld [vmem:[%s480_s0 + $0x80] sm:$0xff]  ;;  %v31_v59 = vld [vmem:[%s480_s0 + $0x88] sm:$0xff]  ;;  %v32_v60 = vld [vmem:[%s480_s0 + $0x90] sm:$0xff] }
   0x8   :  { %v127_v32 = vmax.f32 %v95_v20, 0.0  ;;  %v129_v38 = vmax.f32 %v97_v25, 0.0  ;;  %v130_v39 = vmax.f32 %v98_v26, 0.0  ;;  %v61_v40 = vmul.f32 %v220_v1, %v22_v22  ;;  %v33_v61 = vld [vmem:[%s480_s0 + $0x98] sm:$0xff]  ;;  %v34_v4 = vld [vmem:[%s480_s0 + $0xa0] sm:$0xff]  ;;  %v35_v5 = vld [vmem:[%s480_s0 + $0xa8] sm:$0xff] }
   0x9   :  { %156 = vst [vmem:[%s483_s3] sm:$0xff] %v124_v23  ;;  %v128_v37 = vmax.f32 %v96_v24, 0.0  ;;  %157 = vst [vmem:[%s483_s3 + $0x8] sm:$0xff] %v125_v30  ;;  %v131_v42 = vmax.f32 %v99_v33, 0.0  ;;  %v62_v43 = vmul.f32 %v220_v1, %v23_v27  ;;  %v63_v44 = vmul.f32 %v220_v1, %v24_v28  ;;  %v36_v6 = vld [vmem:[%s480_s0 + $0xb0] sm:$0xff]  ;;  %v37_v11 = vld [vmem:[%s480_s0 + $0xb8] sm:$0xff] }
   0xa   :  { %158 = vst [vmem:[%s483_s3 + $0x10] sm:$0xff] %v126_v31  ;;  %159 = vst [vmem:[%s483_s3 + $0x18] sm:$0xff] %v127_v32  ;;  %v64_v45 = vmul.f32 %v220_v1, %v25_v29  ;;  %v100_v46 = vadd.f32 %v225_v2, %v61_v40  ;;  %v65_v47 = vmul.f32 %v220_v1, %v26_v34  ;;  %v38_v24 = vld [vmem:[%s480_s0 + $0xc0] sm:$0xff]  ;;  %v39_v29 = vld [vmem:[%s480_s0 + $0xc8] sm:$0xff] }
   0xb   :  { %160 = vst [vmem:[%s483_s3 + $0x20] sm:$0xff] %v128_v37  ;;  %161 = vst [vmem:[%s483_s3 + $0x28] sm:$0xff] %v129_v38  ;;  %v66_v48 = vmul.f32 %v220_v1, %v27_v35  ;;  %v67_v49 = vmul.f32 %v220_v1, %v28_v36  ;;  %v101_v50 = vadd.f32 %v225_v2, %v62_v43  ;;  %v40_v30 = vld [vmem:[%s480_s0 + $0xd0] sm:$0xff]  ;;  %v41_v31 = vld [vmem:[%s480_s0 + $0xd8] sm:$0xff] }
   0xc   :  { %162 = vst [vmem:[%s483_s3 + $0x30] sm:$0xff] %v130_v39  ;;  %163 = vst [vmem:[%s483_s3 + $0x38] sm:$0xff] %v131_v42  ;;  %v102_v51 = vadd.f32 %v225_v2, %v63_v44  ;;  %v103_v52 = vadd.f32 %v225_v2, %v64_v45  ;;  %v68_v53 = vmul.f32 %v220_v1, %v29_v41  ;;  %v132_v55 = vmax.f32 %v100_v46, 0.0  ;;  %v42_v36 = vld [vmem:[%s480_s0 + $0xe0] sm:$0xff]  ;;  %v43_v37 = vld [vmem:[%s480_s0 + $0xe8] sm:$0xff] }
   0xd   :  { %v104_v56 = vadd.f32 %v225_v2, %v65_v47  ;;  %v105_v57 = vadd.f32 %v225_v2, %v66_v48  ;;  %v106_v58 = vadd.f32 %v225_v2, %v67_v49  ;;  %v133_v62 = vmax.f32 %v101_v50, 0.0  ;;  %v44_v38 = vld [vmem:[%s480_s0 + $0xf0] sm:$0xff]  ;;  %v45_v43 = vld [vmem:[%s480_s0 + $0xf8] sm:$0xff] }
   0xe   :  { %v134_v63 = vmax.f32 %v102_v51, 0.0  ;;  %v135_v0 = vmax.f32 %v103_v52, 0.0  ;;  %v107_v3 = vadd.f32 %v225_v2, %v68_v53  ;;  %164 = vst [vmem:[%s483_s3 + $0x40] sm:$0xff] %v132_v55  ;;  %v69_v10 = vmul.f32 %v220_v1, %v30_v54 }
   0xf   :  { %v136_v7 = vmax.f32 %v104_v56, 0.0  ;;  %v137_v8 = vmax.f32 %v105_v57, 0.0  ;;  %v138_v9 = vmax.f32 %v106_v58, 0.0  ;;  %165 = vst [vmem:[%s483_s3 + $0x48] sm:$0xff] %v133_v62  ;;  %v70_v13 = vmul.f32 %v220_v1, %v31_v59 }
  0x10   :  { %166 = vst [vmem:[%s483_s3 + $0x50] sm:$0xff] %v134_v63  ;;  %167 = vst [vmem:[%s483_s3 + $0x58] sm:$0xff] %v135_v0  ;;  %v139_v12 = vmax.f32 %v107_v3, 0.0  ;;  %v71_v14 = vmul.f32 %v220_v1, %v32_v60  ;;  %v72_v15 = vmul.f32 %v220_v1, %v33_v61  ;;  %v108_v16 = vadd.f32 %v225_v2, %v69_v10 }
  0x11   :  { %168 = vst [vmem:[%s483_s3 + $0x60] sm:$0xff] %v136_v7  ;;  %169 = vst [vmem:[%s483_s3 + $0x68] sm:$0xff] %v137_v8  ;;  %v73_v17 = vmul.f32 %v220_v1, %v34_v4  ;;  %v74_v18 = vmul.f32 %v220_v1, %v35_v5  ;;  %v75_v19 = vmul.f32 %v220_v1, %v36_v6 }
  0x12   :  { %170 = vst [vmem:[%s483_s3 + $0x70] sm:$0xff] %v138_v9  ;;  %171 = vst [vmem:[%s483_s3 + $0x78] sm:$0xff] %v139_v12  ;;  %v109_v20 = vadd.f32 %v225_v2, %v70_v13  ;;  %v110_v21 = vadd.f32 %v225_v2, %v71_v14  ;;  %v111_v22 = vadd.f32 %v225_v2, %v72_v15  ;;  %v140_v25 = vmax.f32 %v108_v16, 0.0 }
  0x13   :  { %v76_v23 = vmul.f32 %v220_v1, %v37_v11  ;;  %v112_v26 = vadd.f32 %v225_v2, %v73_v17  ;;  %v113_v27 = vadd.f32 %v225_v2, %v74_v18  ;;  %v114_v28 = vadd.f32 %v225_v2, %v75_v19 }
  0x14   :  { %v141_v32 = vmax.f32 %v109_v20, 0.0  ;;  %v142_v33 = vmax.f32 %v110_v21, 0.0  ;;  %v143_v34 = vmax.f32 %v111_v22, 0.0  ;;  %172 = vst [vmem:[%s483_s3 + $0x80] sm:$0xff] %v140_v25  ;;  %v77_v42 = vmul.f32 %v220_v1, %v38_v24 }
  0x15   :  { %v115_v35 = vadd.f32 %v225_v2, %v76_v23  ;;  %v144_v39 = vmax.f32 %v112_v26, 0.0  ;;  %v145_v40 = vmax.f32 %v113_v27, 0.0  ;;  %v146_v41 = vmax.f32 %v114_v28, 0.0 }
  0x16   :  { %173 = vst [vmem:[%s483_s3 + $0x88] sm:$0xff] %v141_v32  ;;  %174 = vst [vmem:[%s483_s3 + $0x90] sm:$0xff] %v142_v33  ;;  %v78_v45 = vmul.f32 %v220_v1, %v39_v29  ;;  %v79_v46 = vmul.f32 %v220_v1, %v40_v30  ;;  %v80_v47 = vmul.f32 %v220_v1, %v41_v31 }
  0x17   :  { %175 = vst [vmem:[%s483_s3 + $0x98] sm:$0xff] %v143_v34  ;;  %v147_v44 = vmax.f32 %v115_v35, 0.0  ;;  %176 = vst [vmem:[%s483_s3 + $0xa0] sm:$0xff] %v144_v39  ;;  %v116_v48 = vadd.f32 %v225_v2, %v77_v42  ;;  %v81_v49 = vmul.f32 %v220_v1, %v42_v36  ;;  %v82_v50 = vmul.f32 %v220_v1, %v43_v37 }
  0x18   :  { %177 = vst [vmem:[%s483_s3 + $0xa8] sm:$0xff] %v145_v40  ;;  %178 = vst [vmem:[%s483_s3 + $0xb0] sm:$0xff] %v146_v41  ;;  %v83_v51 = vmul.f32 %v220_v1, %v44_v38  ;;  %v117_v52 = vadd.f32 %v225_v2, %v78_v45  ;;  %v118_v53 = vadd.f32 %v225_v2, %v79_v46 }
  0x19   :  { %179 = vst [vmem:[%s483_s3 + $0xb8] sm:$0xff] %v147_v44  ;;  %v119_v54 = vadd.f32 %v225_v2, %v80_v47  ;;  %v84_v55 = vmul.f32 %v220_v1, %v45_v43  ;;  %v148_v56 = vmax.f32 %v116_v48, 0.0  ;;  %v120_v57 = vadd.f32 %v225_v2, %v81_v49 }
  0x1a   :  { %v121_v58 = vadd.f32 %v225_v2, %v82_v50  ;;  %v122_v59 = vadd.f32 %v225_v2, %v83_v51  ;;  %v149_v60 = vmax.f32 %v117_v52, 0.0  ;;  %v150_v61 = vmax.f32 %v118_v53, 0.0 }
  0x1b   :  { %v151_v62 = vmax.f32 %v119_v54, 0.0  ;;  %v123_v63 = vadd.f32 %v225_v2, %v84_v55  ;;  %180 = vst [vmem:[%s483_s3 + $0xc0] sm:$0xff] %v148_v56  ;;  %v152_v0 = vmax.f32 %v120_v57, 0.0 }
  0x1c   :  { %v153_v3 = vmax.f32 %v121_v58, 0.0  ;;  %v154_v4 = vmax.f32 %v122_v59, 0.0  ;;  %181 = vst [vmem:[%s483_s3 + $0xc8] sm:$0xff] %v149_v60  ;;  %182 = vst [vmem:[%s483_s3 + $0xd0] sm:$0xff] %v150_v61 }
  0x1d   :  { %183 = vst [vmem:[%s483_s3 + $0xd8] sm:$0xff] %v151_v62  ;;  %v155_v1 = vmax.f32 %v123_v63, 0.0  ;;  %184 = vst [vmem:[%s483_s3 + $0xe0] sm:$0xff] %v152_v0 }
  0x1e   :  { %185 = vst [vmem:[%s483_s3 + $0xe8] sm:$0xff] %v153_v3  ;;  %186 = vst [vmem:[%s483_s3 + $0xf0] sm:$0xff] %v154_v4 }
  0x1f   :  { %187 = vst [vmem:[%s483_s3 + $0xf8] sm:$0xff] %v155_v1 }

// kernel: derain_forward.58
= control target key start
LH: loop header
LB: loop body
LE: loop exit
PB: predicated region body
PF: predicated region fallthrough
CT: control target
= control target key end

     0   :  { %s513_s1 = inlined_call_operand.vmem [shape: bf16[256,128], index: 1, kind: input, shape index: {}]   ;;  %s514_s0 = inlined_call_operand.vmem [shape: bf16[64,256], index: 0, kind: input, shape index: {}]   ;;  %s515_s2 = inlined_call_operand.vmem [shape: f32[64,128], index: 2, kind: output, shape index: {}]  }
   0x1   :  { %v374_v0 = vld [vmem:[%s513_s1 + $0x40] sm:$0xff]   ;;  %v376_v2 = vld [vmem:[%s513_s1 + $0x48] sm:$0xff]   ;;  %v378_v4 = vld [vmem:[%s513_s1 + $0x50] sm:$0xff]  }
   0x2   :  { %v375_v1 = vld [vmem:[%s513_s1] sm:$0xff]   ;;  %317 = vmatprep.subr.bf16.mxu0 %v374_v0  ;;  %357 = vmatprep.subr.bf16.mxu1 %v374_v0  ;;  %v377_v3 = vld [vmem:[%s513_s1 + $0x8] sm:$0xff]   ;;  %v379_v5 = vld [vmem:[%s513_s1 + $0x10] sm:$0xff]  }
   0x3   :  { %318 = vmatpush3.bf16.msra.mxu0 %v375_v1  ;;  %365 = vmatpush3.bf16.msra.mxu1 %v375_v1  ;;  %v380_v6 = vld [vmem:[%s513_s1 + $0x58] sm:$0xff]   ;;  %v382_v8 = vld [vmem:[%s513_s1 + $0x60] sm:$0xff]   ;;  %v384_v10 = vld [vmem:[%s513_s1 + $0x68] sm:$0xff]  }
   0x4   :  { %319 = vmatprep.subr.bf16.mxu0 %v376_v2  ;;  %358 = vmatprep.subr.bf16.mxu1 %v376_v2  ;;  %v381_v7 = vld [vmem:[%s513_s1 + $0x18] sm:$0xff]   ;;  %v383_v9 = vld [vmem:[%s513_s1 + $0x20] sm:$0xff]   ;;  %v385_v13 = vld [vmem:[%s513_s1 + $0x28] sm:$0xff]  }
   0x5   :  { %v392_v11 = vld [vmem:[%s514_s0 + $0x4] ss:$8 sps:$4 sm:$0xff]   ;;  %v386_v14 = vld [vmem:[%s513_s1 + $0x70] sm:$0xff]   ;;  %v388_v16 = vld [vmem:[%s513_s1 + $0x78] sm:$0xff]  }
   0x6   :  { %v395_v12 = vld [vmem:[%s514_s0 + $0x24] ss:$8 sps:$4 sm:$0xff]   ;;  %240 = vmatprep.mubr.bf16.mxu0 %v392_v11  ;;  %v387_v15 = vld [vmem:[%s513_s1 + $0x30] sm:$0xff]   ;;  %v389_v17 = vld [vmem:[%s513_s1 + $0x38] sm:$0xff]  }
   0x7   :  { %320 = vmatpush3.bf16.msra.mxu0 %v377_v3  ;;  %366 = vmatpush3.bf16.msra.mxu1 %v377_v3  ;;  %v390_v18 = vld [vmem:[%s514_s0] ss:$8 sps:$4 sm:$0xff]   ;;  %v396_v20 = vld [vmem:[%s514_s0 + $0x14] ss:$8 sps:$4 sm:$0xff]   ;;  %v400_v22 = vld [vmem:[%s514_s0 + $0x10] ss:$8 sps:$4 sm:$0xff]  }
   0x8   :  { %321 = vmatprep.subr.bf16.mxu0 %v378_v4  ;;  %359 = vmatprep.subr.bf16.mxu1 %v378_v4  ;;  %v393_v19 = vld [vmem:[%s514_s0 + $0x20] ss:$8 sps:$4 sm:$0xff]   ;;  %v398_v21 = vld [vmem:[%s514_s0 + $0x34] ss:$8 sps:$4 sm:$0xff]   ;;  %v401_v23 = vld [vmem:[%s514_s0 + $0x30] ss:$8 sps:$4 sm:$0xff]  }
   0x9   :  { %256 = vmatprep.mubr.bf16.mxu1 %v395_v12 }
   0xb   :  { %322 = vmatpush3.bf16.msra.mxu0 %v379_v5  ;;  %367 = vmatpush3.bf16.msra.mxu1 %v379_v5 }
   0xc   :  { %323 = vmatprep.subr.bf16.mxu0 %v380_v6  ;;  %360 = vmatprep.subr.bf16.mxu1 %v380_v6 }
   0xf   :  { %324 = vmatpush3.bf16.msra.mxu0 %v381_v7  ;;  %368 = vmatpush3.bf16.msra.mxu1 %v381_v7 }
  0x10   :  { %325 = vmatprep.subr.bf16.mxu0 %v382_v8  ;;  %361 = vmatprep.subr.bf16.mxu1 %v382_v8 }
  0x13   :  { %326 = vmatpush3.bf16.msra.mxu0 %v383_v9  ;;  %369 = vmatpush3.bf16.msra.mxu1 %v383_v9 }
  0x14   :  { %327 = vmatprep.subr.bf16.mxu0 %v384_v10  ;;  %362 = vmatprep.subr.bf16.mxu1 %v384_v10 }
  0x17   :  { %328 = vmatpush3.bf16.msra.mxu0 %v385_v13  ;;  %370 = vmatpush3.bf16.msra.mxu1 %v385_v13 }
  0x18   :  { %329 = vmatprep.subr.bf16.mxu0 %v386_v14  ;;  %363 = vmatprep.subr.bf16.mxu1 %v386_v14 }
  0x1b   :  { %330 = vmatpush3.bf16.msra.mxu0 %v387_v15  ;;  %371 = vmatpush3.bf16.msra.mxu1 %v387_v15 }
  0x1c   :  { %331 = vmatprep.subr.bf16.mxu0 %v388_v16  ;;  %364 = vmatprep.subr.bf16.mxu1 %v388_v16 }
  0x1f   :  { %332 = vmatpush3.bf16.msra.mxu0 %v389_v17  ;;  %372 = vmatpush3.bf16.msra.mxu1 %v389_v17 }
  0x22   :  { %241 = vmatmul.mubr.bf16.vlgmr.msra.gmra.mrb[0].mxu0 %v390_v18  ;;  %257 = vmatmul.mubr.bf16.vlgmr.msra.gmra.mrb[0].mxu1 %v393_v19 }
  0x23   :  { %248 = vmatprep.mubr.bf16.mxu0 %v396_v20  ;;  %264 = vmatprep.mubr.bf16.mxu1 %v398_v21 }
  0x2a   :  { %249 = vmatmul.mubr.bf16.gmra.mrb[4].mxu0 %v400_v22  ;;  %265 = vmatmul.mubr.bf16.gmra.mrb[4].mxu1 %v401_v23 }
  0xf5   :  { %v333_v24 = vpop.f32.mrb[0].mxu0  ;;  %v345_v25 = vpop.f32.mrb[0].mxu1 }
  0xf6   :  { %v334_v26 = vpop.f32.mrb[1].mxu0  ;;  %v346_v27 = vpop.f32.mrb[1].mxu1 }
  0xf7   :  { %v335_v28 = vadd.f32 %v334_v26, %v333_v24  ;;  %v347_v29 = vadd.f32 %v346_v27, %v345_v25  ;;  %v336_v30 = vpop.f32.mrb[2].mxu0  ;;  %v348_v31 = vpop.f32.mrb[2].mxu1 }
  0xf8   :  { %v337_v32 = vpop.f32.mrb[3].mxu0  ;;  %v349_v33 = vpop.f32.mrb[3].mxu1 }
  0xf9   :  { %v338_v34 = vadd.f32 %v337_v32, %v336_v30  ;;  %v350_v35 = vadd.f32 %v349_v33, %v348_v31  ;;  %281 = vst [vmem:[%s515_s2] sm:$0xff] %v335_v28  ;;  %285 = vst [vmem:[%s515_s2 + $0x20] sm:$0xff] %v347_v29 }
  0xfb   :  { %282 = vst [vmem:[%s515_s2 + $0x8] sm:$0xff] %v338_v34  ;;  %286 = vst [vmem:[%s515_s2 + $0x28] sm:$0xff] %v350_v35 }
  0xfd   :  { %v339_v36 = vpop.f32.mrb[4].mxu0  ;;  %v351_v37 = vpop.f32.mrb[4].mxu1 }
  0xfe   :  { %v340_v38 = vpop.f32.mrb[5].mxu0  ;;  %v352_v39 = vpop.f32.mrb[5].mxu1 }
  0xff   :  { %v341_v40 = vadd.f32 %v340_v38, %v339_v36  ;;  %v353_v41 = vadd.f32 %v352_v39, %v351_v37  ;;  %v342_v42 = vpop.f32.mrb[6].mxu0  ;;  %v354_v43 = vpop.f32.mrb[6].mxu1 }
 0x100   :  { %v343_v44 = vpop.f32.mrb[7].mxu0  ;;  %v355_v45 = vpop.f32.mrb[7].mxu1 }
 0x101   :  { %v344_v46 = vadd.f32 %v343_v44, %v342_v42  ;;  %v356_v47 = vadd.f32 %v355_v45, %v354_v43  ;;  %283 = vst [vmem:[%s515_s2 + $0x10] sm:$0xff] %v341_v40  ;;  %287 = vst [vmem:[%s515_s2 + $0x30] sm:$0xff] %v353_v41 }
 0x103   :  { %284 = vst [vmem:[%s515_s2 + $0x18] sm:$0xff] %v344_v46  ;;  %288 = vst [vmem:[%s515_s2 + $0x38] sm:$0xff] %v356_v47 }

// kernel: derain_forward.59
= control target key start
LH: loop header
LB: loop body
LE: loop exit
PB: predicated region body
PF: predicated region fallthrough
CT: control target
= control target key end

     0   :  { %v73_v0 = vmov 0.0   ;;  %s131_s1 = inlined_call_operand.vmem [shape: f32[1,128], index: 1, kind: output, shape index: {0}]   ;;  %s132_s2 = inlined_call_operand.vmem [shape: f32[1,128], index: 2, kind: output, shape index: {1}]   ;;  %s133_s0 = inlined_call_operand.vmem [shape: f32[64,128], index: 0, kind: input, shape index: {}]  }
   0x1   :  { %14 = vst [vmem:[%s131_s1] sm:$0x1] %v73_v0  ;;  %15 = vst [vmem:[%s132_s2] sm:$0x1] %v73_v0  ;;  %v16_v1 = vld [vmem:[%s133_s0] sm:$0xff]  ;;  %v17_v2 = vld [vmem:[%s133_s0 + $0x8] sm:$0xff] }
   0x2   :  { %v18_v3 = vld [vmem:[%s133_s0 + $0x10] sm:$0xff]  ;;  %v19_v4 = vld [vmem:[%s133_s0 + $0x18] sm:$0xff]  ;;  %v25_v5 = vadd.f32 %v17_v2, %v16_v1  ;;  %v41_v6 = vmul.f32 %v16_v1, %v16_v1  ;;  %v42_v7 = vmul.f32 %v17_v2, %v17_v2  ;;  %v20_v9 = vld [vmem:[%s133_s0 + $0x20] sm:$0xff] }
   0x3   :  { %v43_v8 = vmul.f32 %v18_v3, %v18_v3  ;;  %v44_v11 = vmul.f32 %v19_v4, %v19_v4  ;;  %v21_v13 = vld [vmem:[%s133_s0 + $0x28] sm:$0xff]  ;;  %v45_v15 = vmul.f32 %v20_v9, %v20_v9  ;;  %v22_v17 = vld [vmem:[%s133_s0 + $0x30] sm:$0xff]  ;;  %v23_v21 = vld [vmem:[%s133_s0 + $0x38] sm:$0xff] }
   0x4   :  { %v26_v10 = vadd.f32 %v25_v5, %v18_v3  ;;  %v49_v12 = vadd.f32 %v42_v7, %v41_v6  ;;  %v46_v19 = vmul.f32 %v21_v13, %v21_v13  ;;  %v47_v23 = vmul.f32 %v22_v17, %v22_v17 }
   0x5   :  { %v48_v26 = vmul.f32 %v23_v21, %v23_v21 }
   0x6   :  { %v27_v14 = vadd.f32 %v26_v10, %v19_v4  ;;  %v50_v16 = vadd.f32 %v49_v12, %v43_v8 }
   0x8   :  { %v28_v18 = vadd.f32 %v27_v14, %v20_v9  ;;  %v51_v20 = vadd.f32 %v50_v16, %v44_v11  ;;  %v24_v40 = vld [vmem:[%s131_s1] sm:$0x1] }
   0x9   :  { %v40_v43 = vld [vmem:[%s132_s2] sm:$0x1] }
   0xa   :  { %v29_v22 = vadd.f32 %v28_v18, %v21_v13  ;;  %v52_v24 = vadd.f32 %v51_v20, %v45_v15 }
   0xc   :  { %v30_v25 = vadd.f32 %v29_v22, %v22_v17  ;;  %v53_v27 = vadd.f32 %v52_v24, %v46_v19 }
   0xe   :  { %v31_v28 = vadd.f32 %v30_v25, %v23_v21  ;;  %v54_v29 = vadd.f32 %v53_v27, %v47_v23 }
  0x10   :  { %v32_v30 = vrot.slane %v31_v28, 4  ;;  %v55_v31 = vadd.f32 %v54_v29, %v48_v26 }
  0x12   :  { %v33_v32 = vadd.f32 %v32_v30, %v31_v28  ;;  %v56_v33 = vrot.slane %v55_v31, 4 }
  0x14   :  { %v34_v34 = vrot.slane %v33_v32, 2  ;;  %v57_v35 = vadd.f32 %v56_v33, %v55_v31 }
  0x16   :  { %v35_v36 = vadd.f32 %v34_v34, %v33_v32  ;;  %v58_v37 = vrot.slane %v57_v35, 2 }
  0x18   :  { %v36_v38 = vrot.slane %v35_v36, 1  ;;  %v59_v39 = vadd.f32 %v58_v37, %v57_v35 }
  0x1a   :  { %v37_v41 = vadd.f32 %v36_v38, %v35_v36  ;;  %v60_v42 = vrot.slane %v59_v39, 1 }
  0x1c   :  { %v38_v44 = vadd.f32 %v37_v41, %v24_v40  ;;  %v61_v45 = vadd.f32 %v60_v42, %v59_v39 }
  0x1e   :  { %39 = vst [vmem:[%s131_s1] sm:$0x1] %v38_v44  ;;  %v62_v46 = vadd.f32 %v61_v45, %v40_v43 }
  0x20   :  { %63 = vst [vmem:[%s132_s2] sm:$0x1] %v62_v46 }

// kernel: derain_forward.60
= control target key start
LH: loop header
LB: loop body
LE: loop exit
PB: predicated region body
PF: predicated region fallthrough
CT: control target
= control target key end

     0   :  { %s148_s0 = inlined_call_operand.vmem [shape: f32[64,128], index: 0, kind: input, shape index: {}]   ;;  %s149_s1 = inlined_call_operand.vmem [shape: f32[1,128], index: 1, kind: input, shape index: {}]   ;;  %s150_s2 = inlined_call_operand.vmem [shape: f32[1,128], index: 2, kind: input, shape index: {}]   ;;  %s151_s3 = inlined_call_operand.vmem [shape: f32[64,128], index: 3, kind: output, shape index: {}]  }
   0x1   :  { %v14_v0 = vld [vmem:[%s148_s0] sm:$0xff]  ;;  %v15_v4 = vld [vmem:[%s148_s0 + $0x8] sm:$0xff]  ;;  %v16_v5 = vld [vmem:[%s148_s0 + $0x10] sm:$0xff] }
   0x2   :  { %v72_v1 = vld [vmem:[%s149_s1] ss:$0 sm:$0xff]  ;;  %v17_v6 = vld [vmem:[%s148_s0 + $0x18] sm:$0xff]  ;;  %v19_v11 = vld [vmem:[%s148_s0 + $0x28] sm:$0xff] }
   0x3   :  { %v73_v2 = vld [vmem:[%s150_s2] ss:$0 sm:$0xff]  ;;  %v29_v3 = vmul.f32 %v72_v1, %v14_v0  ;;  %v30_v7 = vmul.f32 %v72_v1, %v15_v4  ;;  %v31_v8 = vmul.f32 %v72_v1, %v16_v5  ;;  %v32_v9 = vmul.f32 %v72_v1, %v17_v6  ;;  %v20_v12 = vld [vmem:[%s148_s0 + $0x30] sm:$0xff]  ;;  %v21_v17 = vld [vmem:[%s148_s0 + $0x38] sm:$0xff] }
   0x4   :  { %v18_v10 = vld [vmem:[%s148_s0 + $0x20] sm:$0xff]  ;;  %v34_v15 = vmul.f32 %v72_v1, %v19_v11  ;;  %v35_v16 = vmul.f32 %v72_v1, %v20_v12  ;;  %v36_v21 = vmul.f32 %v72_v1, %v21_v17 }
   0x5   :  { %v44_v13 = vadd.f32 %v73_v2, %v29_v3  ;;  %v33_v14 = vmul.f32 %v72_v1, %v18_v10  ;;  %v45_v18 = vadd.f32 %v73_v2, %v30_v7  ;;  %v46_v19 = vadd.f32 %v73_v2, %v31_v8 }
   0x6   :  { %v47_v20 = vadd.f32 %v73_v2, %v32_v9  ;;  %v49_v24 = vadd.f32 %v73_v2, %v34_v15  ;;  %v50_v25 = vadd.f32 %v73_v2, %v35_v16  ;;  %v51_v29 = vadd.f32 %v73_v2, %v36_v21 }
   0x7   :  { %v52_v22 = vmax.f32 %v44_v13, 0.0  ;;  %v48_v23 = vadd.f32 %v73_v2, %v33_v14  ;;  %v53_v26 = vmax.f32 %v45_v18, 0.0  ;;  %v54_v27 = vmax.f32 %v46_v19, 0.0 }
   0x8   :  { %v55_v28 = vmax.f32 %v47_v20, 0.0  ;;  %v57_v31 = vmax.f32 %v49_v24, 0.0  ;;  %v58_v32 = vmax.f32 %v50_v25, 0.0  ;;  %v59_v33 = vmax.f32 %v51_v29, 0.0 }
   0x9   :  { %60 = vst [vmem:[%s151_s3] sm:$0xff] %v52_v22  ;;  %v56_v30 = vmax.f32 %v48_v23, 0.0  ;;  %61 = vst [vmem:[%s151_s3 + $0x8] sm:$0xff] %v53_v26 }
   0xa   :  { %62 = vst [vmem:[%s151_s3 + $0x10] sm:$0xff] %v54_v27  ;;  %63 = vst [vmem:[%s151_s3 + $0x18] sm:$0xff] %v55_v28 }
   0xb   :  { %64 = vst [vmem:[%s151_s3 + $0x20] sm:$0xff] %v56_v30  ;;  %65 = vst [vmem:[%s151_s3 + $0x28] sm:$0xff] %v57_v31 }
   0xc   :  { %66 = vst [vmem:[%s151_s3 + $0x30] sm:$0xff] %v58_v32  ;;  %67 = vst [vmem:[%s151_s3 + $0x38] sm:$0xff] %v59_v33 }

// kernel: derain_forward.62
= control target key start
LH: loop header
LB: loop body
LE: loop exit
PB: predicated region body
PF: predicated region fallthrough
CT: control target
= control target key end

     0   :  { %v49_v0 = vmov 0.0   ;;  %s89_s1 = inlined_call_operand.vmem [shape: f32[1,128], index: 1, kind: output, shape index: {0}]   ;;  %s90_s2 = inlined_call_operand.vmem [shape: f32[1,128], index: 2, kind: output, shape index: {1}]   ;;  %s91_s0 = inlined_call_operand.vmem [shape: f32[16,128], index: 0, kind: input, shape index: {}]  }
   0x1   :  { %14 = vst [vmem:[%s89_s1] sm:$0x1] %v49_v0  ;;  %15 = vst [vmem:[%s90_s2] sm:$0x1] %v49_v0  ;;  %v16_v1 = vld [vmem:[%s91_s0] sm:$0xff]  ;;  %v17_v2 = vld [vmem:[%s91_s0 + $0x8] sm:$0xff] }
   0x2   :  { %v19_v3 = vadd.f32 %v17_v2, %v16_v1  ;;  %v29_v4 = vmul.f32 %v16_v1, %v16_v1  ;;  %v30_v5 = vmul.f32 %v17_v2, %v17_v2 }
   0x4   :  { %v20_v6 = vrot.slane %v19_v3, 4  ;;  %v31_v7 = vadd.f32 %v30_v5, %v29_v4 }
   0x6   :  { %v21_v8 = vadd.f32 %v20_v6, %v19_v3  ;;  %v32_v9 = vrot.slane %v31_v7, 4 }
   0x8   :  { %v22_v10 = vrot.slane %v21_v8, 2  ;;  %v33_v11 = vadd.f32 %v32_v9, %v31_v7  ;;  %v18_v16 = vld [vmem:[%s89_s1] sm:$0x1] }
   0x9   :  { %v28_v19 = vld [vmem:[%s90_s2] sm:$0x1] }
   0xa   :  { %v23_v12 = vadd.f32 %v22_v10, %v21_v8  ;;  %v34_v13 = vrot.slane %v33_v11, 2 }
   0xc   :  { %v24_v14 = vrot.slane %v23_v12, 1  ;;  %v35_v15 = vadd.f32 %v34_v13, %v33_v11 }
   0xe   :  { %v25_v17 = vadd.f32 %v24_v14, %v23_v12  ;;  %v36_v18 = vrot.slane %v35_v15, 1 }
  0x10   :  { %v26_v20 = vadd.f32 %v25_v17, %v18_v16  ;;  %v37_v21 = vadd.f32 %v36_v18, %v35_v15 }
  0x12   :  { %27 = vst [vmem:[%s89_s1] sm:$0x1] %v26_v20  ;;  %v38_v22 = vadd.f32 %v37_v21, %v28_v19 }
  0x14   :  { %39 = vst [vmem:[%s90_s2] sm:$0x1] %v38_v22 }

// kernel: derain_forward.61
= control target key start
LH: loop header
LB: loop body
LE: loop exit
PB: predicated region body
PF: predicated region fallthrough
CT: control target
= control target key end

     0   :  { %s642_s9 = smov 0   ;;  %s644_s10 = smov 0   ;;  %s741_s0 = inlined_call_operand.vmem [shape: bf16[16,384], index: 0, kind: input, shape index: {}]   ;;  %s742_s1 = inlined_call_operand.vmem [shape: bf16[384,128], index: 1, kind: input, shape index: {}]   ;;  %s743_s2 = inlined_call_operand.vmem [shape: f32[16,128], index: 2, kind: output, shape index: {}]  }
   0x1   :  { %s646_s11 = smov 0   ;;  %s648_s12 = smov 0  }
   0x2   :  { %s650_s13 = smov 0  }
   0x3 LB: > { %s24_s14 = sadd.s32 1, %s618_s12  ;;  %p47_p1 = scmp.ne.s32.totalorder %s610_s10, %s606_s9  ;;  %s622_s13 = sphi %s650_s13, %s12_s13   ;;  %s618_s12 = sphi %s648_s12, %s747_s12   ;;  %s614_s11 = sphi %s646_s11, %s746_s11   ;;  %s610_s10 = sphi %s644_s10, %s745_s10   ;;  %s606_s9 = sphi %s642_s9, %s744_s9  }
   0x4   : > { %p25_p0 = scmp.ge.s32.totalorder %s24_s14, 3  ;;  %p48_p2 = scmp.eq.s32.totalorder %s622_s13, 0 }
   0x5   : > { %s40_s16 = sadd.s32 1, %s610_s10  ;;  %p482_p5 = scmp.ge.s32.totalorder %s622_s13, 3 }
   0x6   : > { %s749_s14 = smov (%p25_p0, %s24_s14), 0  ;;  %p49_p3 = por %p48_p2, %p47_p1 }
   0x7   : > { %s36_s15 = ssub.s32 %s618_s12, %s749_s14  ;;  %129 = sbr.rel (%p482_p5) target bundleno = 21 (0x15), region = 16 }
   0x8   : > { %p38_p4 = scmp.eq.s32.totalorder %s36_s15, 0 }
   0xa   : > { %s677_s17 = scalar_select %p38_p4, %s610_s10, %s40_s16  }
   0xe   : > { %132 = sbr.rel (!%p49_p3) target bundleno = 21 (0x15), region = 20  ;;  %s134_s18 = sand.u32 (%p49_p3), 1, %s610_s10  }
   0xf   : > { %s484_s19 = sshll.u32 (%p49_p3), %s618_s12, 2  ;;  %s483_s20 = sshll.u32 (%p49_p3), %s134_s18, 3 }
  0x10   : > { %s141_s23 = scalar_lea.vmem (%p49_p3), %s741_s0, %s484_s19  ;;  %s136_s24 = scalar_lea.vmem (%p49_p3), [#allocation2], %s483_s20 }
  0x11   : > { %v157_v0 = vld [vmem:[%s141_s23] sm:$0xf] (%p49_p3)  ;;  %v159_v1 = vld [vmem:[%s141_s23 + $0xc] sm:$0xf] (%p49_p3) }
  0x12   : > { %158 = vst [vmem:[%s136_s24] sm:$0xf] (%p49_p3), %v157_v0  ;;  %160 = vst [vmem:[%s136_s24 + $0x4] sm:$0xf] (%p49_p3), %v159_v1 }
  0x15 PF: > { %p485_p6 = scmp.ge.s32.totalorder %s622_s13, 1  ;;  %p198_p7 = scmp.lt.s32.totalorder %s622_s13, 4 }
  0x17   : > { %p199_p8 = pnand %p485_p6, %p198_p7 }
  0x18   : > { %s205_s25 = sand.u32 (!%p199_p8), 1, %s606_s9   ;;  %s487_s26 = sshll.u32 (!%p199_p8), %s614_s11, 4 }
  0x19   : > { %202 = sbr.rel (%p199_p8) target bundleno = 289 (0x121), region = 65  ;;  %s689_s27 = sshll.u32 (!%p199_p8), %s205_s25, 3 }
  0x1a   : > { %p239_p9 = scmp.lt.s32.totalorder (!%p199_p8), %s487_s26, 47  ;;  %s207_s4 = scalar_lea.vmem (!%p199_p8), [#allocation2], %s689_s27 }
  0x1b   : > { %p489_p10 = scmp.ne.s32.totalorder (!%p199_p8), %s614_s11, 0 }
  0x20   : > { %s751_s26 = smov (!%p239_p9, %s487_s26), 47  ;;  %260 = sbr.rel (%p489_p10) target bundleno = 39 (0x27), region = 73 }
  0x21   : > { %s488_s28 = sshll.u32 %s751_s26, 2  ;;  %v624_v2 = vmov (!%p489_p10), 0.0  }
  0x22   : > { %s694_s3 = scalar_lea.vmem %s742_s1, %s488_s28  ;;  %261 = vst [vmem:[%s743_s2] sm:$0xff] (!%p489_p10), %v624_v2  ;;  %262 = vst [vmem:[%s743_s2 + $0x8] sm:$0xff] (!%p489_p10), %v624_v2 }
  0x27 PF: > { %v575_v3 = vld [vmem:[%s694_s3] sm:$0xff]   ;;  %v625_v4 = vmov 0.0   ;;  %v576_v5 = vld [vmem:[%s694_s3 + $0x8] sm:$0xff]   ;;  %vm626_vm0 = vmmov 0   ;;  %v577_v6 = vld [vmem:[%s694_s3 + $0x10] sm:$0xff]  }
  0x28   : > { %512 = vmatprep.subr.bf16.mxu0 %v625_v4  ;;  %528 = vmatprep.mubr.msk.bf16.mxu0 %vm626_vm0, %v625_v4  ;;  %v578_v7 = vld [vmem:[%s694_s3 + $0x18] sm:$0xff]   ;;  %v579_v8 = vld [vmem:[%s694_s3 + $0x20] sm:$0xff]   ;;  %v580_v9 = vld [vmem:[%s694_s3 + $0x28] sm:$0xff]  }
  0x29   : > { %513 = vmatpush3.bf16.msra.mxu0 %v575_v3  ;;  %v581_v10 = vld [vmem:[%s694_s3 + $0x30] sm:$0xff]   ;;  %v582_v11 = vld [vmem:[%s694_s3 + $0x38] sm:$0xff]   ;;  %v583_v12 = vld [vmem:[%s207_s4] sm:$0xff]  }
  0x2a   : > { %514 = vmatprep.subr.bf16.mxu0 %v625_v4  ;;  %v263_v13 = vld [vmem:[%s743_s2] sm:$0xff]  ;;  %v264_v15 = vld [vmem:[%s743_s2 + $0x8] sm:$0xff] }
  0x2d   : > { %515 = vmatpush3.bf16.msra.mxu0 %v576_v5 }
  0x2e   : > { %516 = vmatprep.subr.bf16.mxu0 %v625_v4 }
  0x31   : > { %517 = vmatpush3.bf16.msra.mxu0 %v577_v6 }
  0x32   : > { %518 = vmatprep.subr.bf16.mxu0 %v625_v4 }
  0x35   : > { %519 = vmatpush3.bf16.msra.mxu0 %v578_v7 }
  0x36   : > { %520 = vmatprep.subr.bf16.mxu0 %v625_v4 }
  0x39   : > { %521 = vmatpush3.bf16.msra.mxu0 %v579_v8 }
  0x3a   : > { %522 = vmatprep.subr.bf16.mxu0 %v625_v4 }
  0x3d   : > { %523 = vmatpush3.bf16.msra.mxu0 %v580_v9 }
  0x3e   : > { %524 = vmatprep.subr.bf16.mxu0 %v625_v4 }
  0x41   : > { %525 = vmatpush3.bf16.msra.mxu0 %v581_v10 }
  0x42   : > { %526 = vmatprep.subr.bf16.mxu0 %v625_v4 }
  0x45   : > { %527 = vmatpush3.bf16.msra.mxu0 %v582_v11 }
  0x48   : > { %529 = vmatmul.mubr.bf16.vlgmr.msra.gmra.mrb[0].mxu0 %v583_v12 }
 0x11b   : > { %v371_v14 = vpop.f32.mrb[0].mxu0 }
 0x11c   : > { %v378_v16 = vadd.f32 %v371_v14, %v263_v13  ;;  %v530_v17 = vpop.f32.mrb[1].mxu0 }
 0x11d   : > { %v374_v18 = vpop.f32.mrb[2].mxu0 }
 0x11e   : > { %380 = vst [vmem:[%s743_s2] sm:$0xff] %v378_v16  ;;  %v379_v19 = vadd.f32 %v374_v18, %v264_v15  ;;  %v531_v20 = vpop.f32.mrb[3].mxu0 }
 0x120   : > { %381 = vst [vmem:[%s743_s2 + $0x8] sm:$0xff] %v379_v19 }
 0x121 PF: > { %s12_s13 = sadd.s32 1, %s622_s13   ;;  %s744_s9 = smov %s610_s10 }
 0x122   : > { %p9_p11 = scmp.ge.s32.totalorder %s12_s13, 5   ;;  %s745_s10 = smov %s677_s17 }
 0x123   : > { %s746_s11 = smov %s618_s12  ;;  %s747_s12 = smov %s749_s14 }
 0x124   :  { %11 = sbr.rel (!%p9_p11) target bundleno = 3 (0x3), region = 111 }

// kernel: derain_forward.63
= control target key start
LH: loop header
LB: loop body
LE: loop exit
PB: predicated region body
PF: predicated region fallthrough
CT: control target
= control target key end

     0   :  { %s82_s0 = inlined_call_operand.vmem [shape: f32[16,128], index: 0, kind: input, shape index: {}]   ;;  %s83_s1 = inlined_call_operand.vmem [shape: f32[1,128], index: 1, kind: input, shape index: {}]   ;;  %s84_s2 = inlined_call_operand.vmem [shape: f32[1,128], index: 2, kind: input, shape index: {}]   ;;  %s85_s3 = inlined_call_operand.vmem [shape: f32[16,128], index: 3, kind: output, shape index: {}]  }
   0x1   :  { %v14_v0 = vld [vmem:[%s82_s0] sm:$0xff]  ;;  %v15_v4 = vld [vmem:[%s82_s0 + $0x8] sm:$0xff] }
   0x2   :  { %v42_v1 = vld [vmem:[%s83_s1] ss:$0 sm:$0xff] }
   0x3   :  { %v43_v2 = vld [vmem:[%s84_s2] ss:$0 sm:$0xff]  ;;  %v23_v3 = vmul.f32 %v42_v1, %v14_v0  ;;  %v24_v5 = vmul.f32 %v42_v1, %v15_v4 }
   0x5   :  { %v32_v6 = vadd.f32 %v43_v2, %v23_v3  ;;  %v33_v7 = vadd.f32 %v43_v2, %v24_v5 }
   0x7   :  { %v34_v8 = vmax.f32 %v32_v6, 0.0  ;;  %v35_v9 = vmax.f32 %v33_v7, 0.0 }
   0x9   :  { %36 = vst [vmem:[%s85_s3] sm:$0xff] %v34_v8  ;;  %37 = vst [vmem:[%s85_s3 + $0x8] sm:$0xff] %v35_v9 }

// kernel: derain_forward.65
= control target key start
LH: loop header
LB: loop body
LE: loop exit
PB: predicated region body
PF: predicated region fallthrough
CT: control target
= control target key end

     0   :  { %v45_v0 = vmov 0.0   ;;  %s82_s1 = inlined_call_operand.vmem [shape: f32[1,128], index: 1, kind: output, shape index: {0}]   ;;  %s83_s2 = inlined_call_operand.vmem [shape: f32[1,128], index: 2, kind: output, shape index: {1}]   ;;  %s84_s0 = inlined_call_operand.vmem [shape: f32[8,128], index: 0, kind: input, shape index: {}]  }
   0x1   :  { %14 = vst [vmem:[%s82_s1] sm:$0x1] %v45_v0  ;;  %15 = vst [vmem:[%s83_s2] sm:$0x1] %v45_v0  ;;  %v16_v1 = vld [vmem:[%s84_s0] sm:$0xff] }
   0x2   :  { %v18_v2 = vrot.slane %v16_v1, 4  ;;  %v27_v3 = vmul.f32 %v16_v1, %v16_v1 }
   0x4   :  { %v19_v4 = vadd.f32 %v18_v2, %v16_v1  ;;  %v28_v5 = vrot.slane %v27_v3, 4 }
   0x6   :  { %v20_v6 = vrot.slane %v19_v4, 2  ;;  %v29_v7 = vadd.f32 %v28_v5, %v27_v3 }
   0x8   :  { %v21_v8 = vadd.f32 %v20_v6, %v19_v4  ;;  %v30_v9 = vrot.slane %v29_v7, 2  ;;  %v17_v12 = vld [vmem:[%s82_s1] sm:$0x1] }
   0x9   :  { %v26_v15 = vld [vmem:[%s83_s2] sm:$0x1] }
   0xa   :  { %v22_v10 = vrot.slane %v21_v8, 1  ;;  %v31_v11 = vadd.f32 %v30_v9, %v29_v7 }
   0xc   :  { %v23_v13 = vadd.f32 %v22_v10, %v21_v8  ;;  %v32_v14 = vrot.slane %v31_v11, 1 }
   0xe   :  { %v24_v16 = vadd.f32 %v23_v13, %v17_v12  ;;  %v33_v17 = vadd.f32 %v32_v14, %v31_v11 }
  0x10   :  { %25 = vst [vmem:[%s82_s1] sm:$0x1] %v24_v16  ;;  %v34_v18 = vadd.f32 %v33_v17, %v26_v15 }
  0x12   :  { %35 = vst [vmem:[%s83_s2] sm:$0x1] %v34_v18 }

// kernel: derain_forward.66
= control target key start
LH: loop header
LB: loop body
LE: loop exit
PB: predicated region body
PF: predicated region fallthrough
CT: control target
= control target key end

     0   :  { %s71_s0 = inlined_call_operand.vmem [shape: f32[8,128], index: 0, kind: input, shape index: {}]   ;;  %s72_s1 = inlined_call_operand.vmem [shape: f32[1,128], index: 1, kind: input, shape index: {}]   ;;  %s73_s2 = inlined_call_operand.vmem [shape: f32[1,128], index: 2, kind: input, shape index: {}]   ;;  %s74_s3 = inlined_call_operand.vmem [shape: f32[8,128], index: 3, kind: output, shape index: {}]  }
   0x1   :  { %v14_v0 = vld [vmem:[%s71_s0] sm:$0xff] }
   0x2   :  { %v37_v1 = vld [vmem:[%s72_s1] ss:$0 sm:$0xff] }
   0x3   :  { %v38_v2 = vld [vmem:[%s73_s2] ss:$0 sm:$0xff]  ;;  %v22_v3 = vmul.f32 %v37_v1, %v14_v0 }
   0x5   :  { %v30_v4 = vadd.f32 %v38_v2, %v22_v3 }
   0x7   :  { %v31_v5 = vmax.f32 %v30_v4, 0.0 }
   0x9   :  { %32 = vst [vmem:[%s74_s3] sm:$0xff] %v31_v5 }

// kernel: derain_forward.64
= control target key start
LH: loop header
LB: loop body
LE: loop exit
PB: predicated region body
PF: predicated region fallthrough
CT: control target
= control target key end

     0   :  { %s545_s9 = smov 0   ;;  %s547_s10 = smov 0   ;;  %s590_s0 = inlined_call_operand.vmem [shape: bf16[8,640], index: 0, kind: input, shape index: {}]   ;;  %s591_s1 = inlined_call_operand.vmem [shape: bf16[640,128], index: 1, kind: input, shape index: {}]   ;;  %s592_s2 = inlined_call_operand.vmem [shape: f32[8,128], index: 2, kind: output, shape index: {}]  }
   0x1   :  { %s549_s11 = smov 0  }
   0x2 LB: > { %s24_s12 = sadd.s32 1, %s521_s10  ;;  %p423_p0 = scmp.ge.s32.totalorder %s525_s11, 1  ;;  %s525_s11 = sphi %s549_s11, %s12_s11   ;;  %s521_s10 = sphi %s547_s10, %s594_s10   ;;  %s517_s9 = sphi %s545_s9, %s593_s9  }
   0x3   : > { %p25_p1 = scmp.ge.s32.totalorder %s24_s12, 5  ;;  %p154_p2 = scmp.lt.s32.totalorder %s525_s11, 6 }
   0x5   : > { %s596_s12 = smov (%p25_p1, %s24_s12), 0  ;;  %p155_p3 = pnand %p423_p0, %p154_p2 }
   0x6   : > { %p191_p4 = scmp.lt.s32.totalorder (!%p155_p3), %s517_s9, 4  ;;  %s425_s13 = sshll.u32 (!%p155_p3), %s517_s9, 4 }
   0x7   : > { %158 = sbr.rel (%p155_p3) target bundleno = 270 (0x10e), region = 28  ;;  %p198_p5 = scmp.lt.s32.totalorder (!%p155_p3), %s425_s13, 79 }
   0x8   : > { %p427_p6 = scmp.ne.s32.totalorder (!%p155_p3), %s517_s9, 0 }
   0xe   : > { %s192_s14 = scalar_select %p191_p4, %s517_s9, 4 }
   0xf   : > { %s598_s13 = smov (!%p198_p5, %s425_s13), 79  ;;  %217 = sbr.rel (%p427_p6) target bundleno = 22 (0x16), region = 32 }
  0x10   : > { %s424_s15 = sshll.u32 %s192_s14, 2  ;;  %s426_s19 = sshll.u32 %s598_s13, 2  ;;  %v527_v0 = vmov (!%p427_p6), 0.0  }
  0x11   : > { %s566_s18 = scalar_lea.vmem %s590_s0, %s424_s15  ;;  %s204_s22 = scalar_lea.vmem %s591_s1, %s426_s19  ;;  %218 = vst [vmem:[%s592_s2] sm:$0xff] (!%p427_p6), %v527_v0 }
  0x16 PF: > { %v495_v1 = vld [vmem:[%s204_s22] sm:$0xff]   ;;  %v528_v2 = vmov 0.0   ;;  %v496_v3 = vld [vmem:[%s204_s22 + $0x8] sm:$0xff]   ;;  %vm529_vm0 = vmmov 0   ;;  %v497_v4 = vld [vmem:[%s204_s22 + $0x10] sm:$0xff]  }
  0x17   : > { %448 = vmatprep.subr.bf16.mxu0 %v528_v2  ;;  %464 = vmatprep.mubr.msk.bf16.mxu0 %vm529_vm0, %v528_v2  ;;  %v498_v5 = vld [vmem:[%s204_s22 + $0x18] sm:$0xff]   ;;  %v499_v6 = vld [vmem:[%s204_s22 + $0x20] sm:$0xff]   ;;  %v500_v7 = vld [vmem:[%s204_s22 + $0x28] sm:$0xff]  }
  0x18   : > { %449 = vmatpush3.bf16.msra.mxu0 %v495_v1  ;;  %v501_v8 = vld [vmem:[%s204_s22 + $0x30] sm:$0xff]   ;;  %v502_v9 = vld [vmem:[%s204_s22 + $0x38] sm:$0xff]   ;;  %v220_v10 = vld [vmem:[%s566_s18] sm:$0xf] }
  0x19   : > { %450 = vmatprep.subr.bf16.mxu0 %v528_v2  ;;  %v219_v11 = vld [vmem:[%s592_s2] sm:$0xff] }
  0x1c   : > { %451 = vmatpush3.bf16.msra.mxu0 %v496_v3 }
  0x1d   : > { %452 = vmatprep.subr.bf16.mxu0 %v528_v2 }
  0x20   : > { %453 = vmatpush3.bf16.msra.mxu0 %v497_v4 }
  0x21   : > { %454 = vmatprep.subr.bf16.mxu0 %v528_v2 }
  0x24   : > { %455 = vmatpush3.bf16.msra.mxu0 %v498_v5 }
  0x25   : > { %456 = vmatprep.subr.bf16.mxu0 %v528_v2 }
  0x28   : > { %457 = vmatpush3.bf16.msra.mxu0 %v499_v6 }
  0x29   : > { %458 = vmatprep.subr.bf16.mxu0 %v528_v2 }
  0x2c   : > { %459 = vmatpush3.bf16.msra.mxu0 %v500_v7 }
  0x2d   : > { %460 = vmatprep.subr.bf16.mxu0 %v528_v2 }
  0x30   : > { %461 = vmatpush3.bf16.msra.mxu0 %v501_v8 }
  0x31   : > { %462 = vmatprep.subr.bf16.mxu0 %v528_v2 }
  0x34   : > { %463 = vmatpush3.bf16.msra.mxu0 %v502_v9 }
  0x37   : > { %465 = vmatmul.mubr.bf16.vlgmr.msra.gmra.mrb[0].mxu0 %v220_v10 }
 0x10a   : > { %v319_v12 = vpop.f32.mrb[0].mxu0 }
 0x10b   : > { %v325_v13 = vadd.f32 %v319_v12, %v219_v11  ;;  %v466_v14 = vpop.f32.mrb[1].mxu0 }
 0x10c   : > { %v322_v15 = vpop.f32.mrb[2].mxu0 }
 0x10d   : > { %326 = vst [vmem:[%s592_s2] sm:$0xff] %v325_v13  ;;  %v467_v16 = vpop.f32.mrb[3].mxu0 }
 0x10e PF: > { %s12_s11 = sadd.s32 1, %s525_s11   ;;  %s593_s9 = smov %s521_s10 }
 0x10f   : > { %p9_p7 = scmp.ge.s32.totalorder %s12_s11, 7   ;;  %s594_s10 = smov %s596_s12 }
 0x111   :  { %11 = sbr.rel (!%p9_p7) target bundleno = 2 (0x2), region = 65 }

// kernel: derain_forward.67
= control target key start
LH: loop header
LB: loop body
LE: loop exit
PB: predicated region body
PF: predicated region fallthrough
CT: control target
= control target key end

     0   :  { %s545_s9 = smov 0   ;;  %s547_s10 = smov 0   ;;  %s590_s0 = inlined_call_operand.vmem [shape: bf16[8,1152], index: 0, kind: input, shape index: {}]   ;;  %s591_s1 = inlined_call_operand.vmem [shape: bf16[1152,128], index: 1, kind: input, shape index: {}]   ;;  %s592_s2 = inlined_call_operand.vmem [shape: f32[8,128], index: 2, kind: output, shape index: {}]  }
   0x1   :  { %s549_s11 = smov 0  }
   0x2 LB: > { %s24_s12 = sadd.s32 1, %s521_s10  ;;  %p423_p0 = scmp.ge.s32.totalorder %s525_s11, 1  ;;  %s525_s11 = sphi %s549_s11, %s12_s11   ;;  %s521_s10 = sphi %s547_s10, %s594_s10   ;;  %s517_s9 = sphi %s545_s9, %s593_s9  }
   0x3   : > { %p25_p1 = scmp.ge.s32.totalorder %s24_s12, 9  ;;  %p154_p2 = scmp.lt.s32.totalorder %s525_s11, 10 }
   0x5   : > { %s596_s12 = smov (%p25_p1, %s24_s12), 0  ;;  %p155_p3 = pnand %p423_p0, %p154_p2 }
   0x6   : > { %p191_p4 = scmp.lt.s32.totalorder (!%p155_p3), %s517_s9, 8  ;;  %s425_s13 = sshll.u32 (!%p155_p3), %s517_s9, 4 }
   0x7   : > { %158 = sbr.rel (%p155_p3) target bundleno = 270 (0x10e), region = 28  ;;  %p198_p5 = scmp.lt.s32.totalorder (!%p155_p3), %s425_s13, 143 }
   0x8   : > { %p427_p6 = scmp.ne.s32.totalorder (!%p155_p3), %s517_s9, 0 }
   0xe   : > { %s192_s14 = scalar_select %p191_p4, %s517_s9, 8 }
   0xf   : > { %s598_s13 = smov (!%p198_p5, %s425_s13), 143  ;;  %217 = sbr.rel (%p427_p6) target bundleno = 22 (0x16), region = 32 }
  0x10   : > { %s424_s15 = sshll.u32 %s192_s14, 2  ;;  %s426_s19 = sshll.u32 %s598_s13, 2  ;;  %v527_v0 = vmov (!%p427_p6), 0.0  }
  0x11   : > { %s566_s18 = scalar_lea.vmem %s590_s0, %s424_s15  ;;  %s204_s22 = scalar_lea.vmem %s591_s1, %s426_s19  ;;  %218 = vst [vmem:[%s592_s2] sm:$0xff] (!%p427_p6), %v527_v0 }
  0x16 PF: > { %v495_v1 = vld [vmem:[%s204_s22] sm:$0xff]   ;;  %v528_v2 = vmov 0.0   ;;  %v496_v3 = vld [vmem:[%s204_s22 + $0x8] sm:$0xff]   ;;  %vm529_vm0 = vmmov 0   ;;  %v497_v4 = vld [vmem:[%s204_s22 + $0x10] sm:$0xff]  }
  0x17   : > { %448 = vmatprep.subr.bf16.mxu0 %v528_v2  ;;  %464 = vmatprep.mubr.msk.bf16.mxu0 %vm529_vm0, %v528_v2  ;;  %v498_v5 = vld [vmem:[%s204_s22 + $0x18] sm:$0xff]   ;;  %v499_v6 = vld [vmem:[%s204_s22 + $0x20] sm:$0xff]   ;;  %v500_v7 = vld [vmem:[%s204_s22 + $0x28] sm:$0xff]  }
  0x18   : > { %449 = vmatpush3.bf16.msra.mxu0 %v495_v1  ;;  %v501_v8 = vld [vmem:[%s204_s22 + $0x30] sm:$0xff]   ;;  %v502_v9 = vld [vmem:[%s204_s22 + $0x38] sm:$0xff]   ;;  %v220_v10 = vld [vmem:[%s566_s18] sm:$0xf] }
  0x19   : > { %450 = vmatprep.subr.bf16.mxu0 %v528_v2  ;;  %v219_v11 = vld [vmem:[%s592_s2] sm:$0xff] }
  0x1c   : > { %451 = vmatpush3.bf16.msra.mxu0 %v496_v3 }
  0x1d   : > { %452 = vmatprep.subr.bf16.mxu0 %v528_v2 }
  0x20   : > { %453 = vmatpush3.bf16.msra.mxu0 %v497_v4 }
  0x21   : > { %454 = vmatprep.subr.bf16.mxu0 %v528_v2 }
  0x24   : > { %455 = vmatpush3.bf16.msra.mxu0 %v498_v5 }
  0x25   : > { %456 = vmatprep.subr.bf16.mxu0 %v528_v2 }
  0x28   : > { %457 = vmatpush3.bf16.msra.mxu0 %v499_v6 }
  0x29   : > { %458 = vmatprep.subr.bf16.mxu0 %v528_v2 }
  0x2c   : > { %459 = vmatpush3.bf16.msra.mxu0 %v500_v7 }
  0x2d   : > { %460 = vmatprep.subr.bf16.mxu0 %v528_v2 }
  0x30   : > { %461 = vmatpush3.bf16.msra.mxu0 %v501_v8 }
  0x31   : > { %462 = vmatprep.subr.bf16.mxu0 %v528_v2 }
  0x34   : > { %463 = vmatpush3.bf16.msra.mxu0 %v502_v9 }
  0x37   : > { %465 = vmatmul.mubr.bf16.vlgmr.msra.gmra.mrb[0].mxu0 %v220_v10 }
 0x10a   : > { %v319_v12 = vpop.f32.mrb[0].mxu0 }
 0x10b   : > { %v325_v13 = vadd.f32 %v319_v12, %v219_v11  ;;  %v466_v14 = vpop.f32.mrb[1].mxu0 }
 0x10c   : > { %v322_v15 = vpop.f32.mrb[2].mxu0 }
 0x10d   : > { %326 = vst [vmem:[%s592_s2] sm:$0xff] %v325_v13  ;;  %v467_v16 = vpop.f32.mrb[3].mxu0 }
 0x10e PF: > { %s12_s11 = sadd.s32 1, %s525_s11   ;;  %s593_s9 = smov %s521_s10 }
 0x10f   : > { %p9_p7 = scmp.ge.s32.totalorder %s12_s11, 11   ;;  %s594_s10 = smov %s596_s12 }
 0x111   :  { %11 = sbr.rel (!%p9_p7) target bundleno = 2 (0x2), region = 65 }

// kernel: derain_forward.72
= control target key start
LH: loop header
LB: loop body
LE: loop exit
PB: predicated region body
PF: predicated region fallthrough
CT: control target
= control target key end

     0   :  { %s83_s0 = inlined_call_operand.vmem [shape: f32[8,128], index: 0, kind: input, shape index: {}]   ;;  %s84_s1 = inlined_call_operand.vmem [shape: f32[1,128], index: 1, kind: input, shape index: {}]   ;;  %s85_s2 = inlined_call_operand.vmem [shape: f32[1,128], index: 2, kind: input, shape index: {}]   ;;  %s86_s3 = inlined_call_operand.vmem [shape: f32[8,128], index: 3, kind: input, shape index: {}]   ;;  %s87_s4 = inlined_call_operand.vmem [shape: f32[8,128], index: 4, kind: output, shape index: {}]  }
   0x1   :  { %v17_v0 = vld [vmem:[%s83_s0] sm:$0xff] }
   0x2   :  { %v41_v1 = vld [vmem:[%s84_s1] ss:$0 sm:$0xff] }
   0x3   :  { %v42_v2 = vld [vmem:[%s85_s2] ss:$0 sm:$0xff]  ;;  %v25_v3 = vmul.f32 %v41_v1, %v17_v0 }
   0x4   :  { %v34_v4 = vld [vmem:[%s86_s3] sm:$0xff] }
   0x5   :  { %v33_v5 = vadd.f32 %v42_v2, %v25_v3 }
   0x7   :  { %v35_v6 = vadd.f32 %v34_v4, %v33_v5 }
   0x9   :  { %36 = vst [vmem:[%s87_s4] sm:$0xff] %v35_v6 }

// kernel: derain_forward.82
= control target key start
LH: loop header
LB: loop body
LE: loop exit
PB: predicated region body
PF: predicated region fallthrough
CT: control target
= control target key end

     0   :  { %s613_s1 = inlined_call_operand.vmem [shape: bf16[512,128], index: 1, kind: input, shape index: {}]   ;;  %s614_s0 = inlined_call_operand.vmem [shape: bf16[8,512], index: 0, kind: input, shape index: {}]   ;;  %s615_s2 = inlined_call_operand.vmem [shape: f32[8,128], index: 2, kind: output, shape index: {}]  }
   0x1   :  { %v457_v0 = vld [vmem:[%s613_s1 + $0x40] sm:$0xff]   ;;  %v461_v4 = vld [vmem:[%s613_s1 + $0x48] sm:$0xff]   ;;  %v465_v8 = vld [vmem:[%s613_s1 + $0x50] sm:$0xff]  }
   0x2   :  { %v458_v1 = vld [vmem:[%s613_s1 + $0xc0] sm:$0xff]   ;;  %412 = vmatprep.subr.bf16.mxu0 %v457_v0  ;;  %v462_v5 = vld [vmem:[%s613_s1 + $0xc8] sm:$0xff]   ;;  %v466_v9 = vld [vmem:[%s613_s1 + $0xd0] sm:$0xff]  }
   0x3   :  { %v459_v2 = vld [vmem:[%s613_s1] sm:$0xff]   ;;  %434 = vmatprep.subr.bf16.mxu1 %v458_v1  ;;  %v463_v6 = vld [vmem:[%s613_s1 + $0x8] sm:$0xff]   ;;  %v467_v10 = vld [vmem:[%s613_s1 + $0x10] sm:$0xff]  }
   0x4   :  { %v460_v3 = vld [vmem:[%s613_s1 + $0x80] sm:$0xff]   ;;  %413 = vmatpush3.bf16.msra.mxu0 %v459_v2  ;;  %v464_v7 = vld [vmem:[%s613_s1 + $0x88] sm:$0xff]   ;;  %v468_v11 = vld [vmem:[%s613_s1 + $0x90] sm:$0xff]  }
   0x5   :  { %435 = vmatpush3.bf16.msra.mxu1 %v460_v3  ;;  %414 = vmatprep.subr.bf16.mxu0 %v461_v4  ;;  %v469_v12 = vld [vmem:[%s613_s1 + $0x58] sm:$0xff]   ;;  %v473_v16 = vld [vmem:[%s613_s1 + $0x60] sm:$0xff]   ;;  %v477_v20 = vld [vmem:[%s613_s1 + $0x68] sm:$0xff]  }
   0x6   :  { %436 = vmatprep.subr.bf16.mxu1 %v462_v5  ;;  %v470_v13 = vld [vmem:[%s613_s1 + $0xd8] sm:$0xff]   ;;  %v474_v17 = vld [vmem:[%s613_s1 + $0xe0] sm:$0xff]   ;;  %v478_v21 = vld [vmem:[%s613_s1 + $0xe8] sm:$0xff]  }
   0x7   :  { %v471_v14 = vld [vmem:[%s613_s1 + $0x18] sm:$0xff]   ;;  %v475_v18 = vld [vmem:[%s613_s1 + $0x20] sm:$0xff]   ;;  %v479_v22 = vld [vmem:[%s613_s1 + $0x28] sm:$0xff]  }
   0x8   :  { %415 = vmatpush3.bf16.msra.mxu0 %v463_v6  ;;  %v472_v15 = vld [vmem:[%s613_s1 + $0x98] sm:$0xff]   ;;  %v476_v19 = vld [vmem:[%s613_s1 + $0xa0] sm:$0xff]   ;;  %v480_v23 = vld [vmem:[%s613_s1 + $0xa8] sm:$0xff]  }
   0x9   :  { %437 = vmatpush3.bf16.msra.mxu1 %v464_v7  ;;  %416 = vmatprep.subr.bf16.mxu0 %v465_v8  ;;  %v481_v24 = vld [vmem:[%s613_s1 + $0x70] sm:$0xff]   ;;  %v485_v28 = vld [vmem:[%s613_s1 + $0x78] sm:$0xff]   ;;  %v18_v32 = vld [vmem:[%s614_s0] sm:$0xff] }
   0xa   :  { %438 = vmatprep.subr.bf16.mxu1 %v466_v9  ;;  %v482_v25 = vld [vmem:[%s613_s1 + $0xf0] sm:$0xff]   ;;  %v486_v29 = vld [vmem:[%s613_s1 + $0xf8] sm:$0xff]   ;;  %v19_v33 = vld [vmem:[%s614_s0 + $0x8] sm:$0xff]  ;;  %v376_v34 = vcombine.low %v18_v32, %v18_v32  ;;  %v377_v35 = vcombine.high %v18_v32, %v18_v32 }
   0xb   :  { %v483_v26 = vld [vmem:[%s613_s1 + $0x30] sm:$0xff]   ;;  %v487_v30 = vld [vmem:[%s613_s1 + $0x38] sm:$0xff]   ;;  %v378_v36 = vcombine.low %v19_v33, %v19_v33  ;;  %v379_v37 = vcombine.high %v19_v33, %v19_v33 }
   0xc   :  { %417 = vmatpush3.bf16.msra.mxu0 %v467_v10  ;;  %v484_v27 = vld [vmem:[%s613_s1 + $0xb0] sm:$0xff]   ;;  %v488_v31 = vld [vmem:[%s613_s1 + $0xb8] sm:$0xff]   ;;  %322 = vmatprep.mubr.bf16.mxu0 %v377_v35 }
   0xd   :  { %439 = vmatpush3.bf16.msra.mxu1 %v468_v11  ;;  %418 = vmatprep.subr.bf16.mxu0 %v469_v12 }
   0xe   :  { %440 = vmatprep.subr.bf16.mxu1 %v470_v13  ;;  %362 = vmatprep.mubr.bf16.mxu1 %v379_v37 }
  0x10   :  { %419 = vmatpush3.bf16.msra.mxu0 %v471_v14 }
  0x11   :  { %441 = vmatpush3.bf16.msra.mxu1 %v472_v15  ;;  %420 = vmatprep.subr.bf16.mxu0 %v473_v16 }
  0x12   :  { %442 = vmatprep.subr.bf16.mxu1 %v474_v17 }
  0x14   :  { %421 = vmatpush3.bf16.msra.mxu0 %v475_v18 }
  0x15   :  { %443 = vmatpush3.bf16.msra.mxu1 %v476_v19  ;;  %422 = vmatprep.subr.bf16.mxu0 %v477_v20 }
  0x16   :  { %444 = vmatprep.subr.bf16.mxu1 %v478_v21 }
  0x18   :  { %423 = vmatpush3.bf16.msra.mxu0 %v479_v22 }
  0x19   :  { %445 = vmatpush3.bf16.msra.mxu1 %v480_v23  ;;  %424 = vmatprep.subr.bf16.mxu0 %v481_v24 }
  0x1a   :  { %446 = vmatprep.subr.bf16.mxu1 %v482_v25 }
  0x1c   :  { %425 = vmatpush3.bf16.msra.mxu0 %v483_v26 }
  0x1d   :  { %447 = vmatpush3.bf16.msra.mxu1 %v484_v27  ;;  %426 = vmatprep.subr.bf16.mxu0 %v485_v28 }
  0x1e   :  { %448 = vmatprep.subr.bf16.mxu1 %v486_v29 }
  0x20   :  { %427 = vmatpush3.bf16.msra.mxu0 %v487_v30 }
  0x21   :  { %449 = vmatpush3.bf16.msra.mxu1 %v488_v31 }
  0x23   :  { %323 = vmatmul.mubr.bf16.vlgmr.msra.gmra.mrb[0].mxu0 %v376_v34 }
  0x24   :  { %363 = vmatmul.mubr.bf16.vlgmr.msra.gmra.mrb[0].mxu1 %v378_v36 }
  0xf6   :  { %v428_v38 = vpop.f32.mrb[0].mxu0 }
  0xf7   :  { %v450_v39 = vpop.f32.mrb[0].mxu1  ;;  %v429_v40 = vpop.f32.mrb[1].mxu0 }
  0xf8   :  { %v451_v41 = vpop.f32.mrb[1].mxu1  ;;  %v430_v42 = vadd.f32 %v429_v40, %v428_v38  ;;  %v431_v44 = vpop.f32.mrb[2].mxu0 }
  0xf9   :  { %v452_v43 = vadd.f32 %v451_v41, %v450_v39  ;;  %v453_v45 = vpop.f32.mrb[2].mxu1  ;;  %v432_v46 = vpop.f32.mrb[3].mxu0 }
  0xfa   :  { %v454_v47 = vpop.f32.mrb[3].mxu1 }
  0xfb   :  { %v365_v48 = vadd.f32 %v452_v43, %v430_v42 }
  0xfd   :  { %371 = vst [vmem:[%s615_s2] sm:$0xff] %v365_v48 }

// kernel: derain_forward.88
= control target key start
LH: loop header
LB: loop body
LE: loop exit
PB: predicated region body
PF: predicated region fallthrough
CT: control target
= control target key end

     0   :  { %s638_s1 = inlined_call_operand.vmem [shape: bf16[512,128], index: 1, kind: input, shape index: {}]   ;;  %s639_s0 = inlined_call_operand.vmem [shape: bf16[16,512], index: 0, kind: input, shape index: {}]   ;;  %s640_s2 = inlined_call_operand.vmem [shape: f32[16,128], index: 2, kind: output, shape index: {}]  }
   0x1   :  { %v471_v0 = vld [vmem:[%s638_s1 + $0x40] sm:$0xff]   ;;  %v475_v4 = vld [vmem:[%s638_s1 + $0x48] sm:$0xff]   ;;  %v479_v8 = vld [vmem:[%s638_s1 + $0x50] sm:$0xff]  }
   0x2   :  { %v472_v1 = vld [vmem:[%s638_s1 + $0xc0] sm:$0xff]   ;;  %426 = vmatprep.subr.bf16.mxu0 %v471_v0  ;;  %v476_v5 = vld [vmem:[%s638_s1 + $0xc8] sm:$0xff]   ;;  %v480_v9 = vld [vmem:[%s638_s1 + $0xd0] sm:$0xff]  }
   0x3   :  { %v473_v2 = vld [vmem:[%s638_s1] sm:$0xff]   ;;  %448 = vmatprep.subr.bf16.mxu1 %v472_v1  ;;  %v477_v6 = vld [vmem:[%s638_s1 + $0x8] sm:$0xff]   ;;  %v481_v10 = vld [vmem:[%s638_s1 + $0x10] sm:$0xff]  }
   0x4   :  { %v474_v3 = vld [vmem:[%s638_s1 + $0x80] sm:$0xff]   ;;  %427 = vmatpush3.bf16.msra.mxu0 %v473_v2  ;;  %v478_v7 = vld [vmem:[%s638_s1 + $0x88] sm:$0xff]   ;;  %v482_v11 = vld [vmem:[%s638_s1 + $0x90] sm:$0xff]  }
   0x5   :  { %449 = vmatpush3.bf16.msra.mxu1 %v474_v3  ;;  %428 = vmatprep.subr.bf16.mxu0 %v475_v4  ;;  %v483_v12 = vld [vmem:[%s638_s1 + $0x58] sm:$0xff]   ;;  %v487_v16 = vld [vmem:[%s638_s1 + $0x60] sm:$0xff]   ;;  %v491_v20 = vld [vmem:[%s638_s1 + $0x68] sm:$0xff]  }
   0x6   :  { %450 = vmatprep.subr.bf16.mxu1 %v476_v5  ;;  %v484_v13 = vld [vmem:[%s638_s1 + $0xd8] sm:$0xff]   ;;  %v488_v17 = vld [vmem:[%s638_s1 + $0xe0] sm:$0xff]   ;;  %v492_v21 = vld [vmem:[%s638_s1 + $0xe8] sm:$0xff]  }
   0x7   :  { %v485_v14 = vld [vmem:[%s638_s1 + $0x18] sm:$0xff]   ;;  %v489_v18 = vld [vmem:[%s638_s1 + $0x20] sm:$0xff]   ;;  %v493_v22 = vld [vmem:[%s638_s1 + $0x28] sm:$0xff]  }
   0x8   :  { %429 = vmatpush3.bf16.msra.mxu0 %v477_v6  ;;  %v486_v15 = vld [vmem:[%s638_s1 + $0x98] sm:$0xff]   ;;  %v490_v19 = vld [vmem:[%s638_s1 + $0xa0] sm:$0xff]   ;;  %v494_v23 = vld [vmem:[%s638_s1 + $0xa8] sm:$0xff]  }
   0x9   :  { %451 = vmatpush3.bf16.msra.mxu1 %v478_v7  ;;  %430 = vmatprep.subr.bf16.mxu0 %v479_v8  ;;  %v495_v24 = vld [vmem:[%s638_s1 + $0x70] sm:$0xff]   ;;  %v499_v28 = vld [vmem:[%s638_s1 + $0x78] sm:$0xff]  }
   0xa   :  { %452 = vmatprep.subr.bf16.mxu1 %v480_v9  ;;  %v496_v25 = vld [vmem:[%s638_s1 + $0xf0] sm:$0xff]   ;;  %v500_v29 = vld [vmem:[%s638_s1 + $0xf8] sm:$0xff]  }
   0xb   :  { %v497_v26 = vld [vmem:[%s638_s1 + $0x30] sm:$0xff]   ;;  %v501_v30 = vld [vmem:[%s638_s1 + $0x38] sm:$0xff]  }
   0xc   :  { %431 = vmatpush3.bf16.msra.mxu0 %v481_v10  ;;  %v498_v27 = vld [vmem:[%s638_s1 + $0xb0] sm:$0xff]   ;;  %v502_v31 = vld [vmem:[%s638_s1 + $0xb8] sm:$0xff]  }
   0xd   :  { %453 = vmatpush3.bf16.msra.mxu1 %v482_v11  ;;  %432 = vmatprep.subr.bf16.mxu0 %v483_v12  ;;  %v503_v32 = vld [vmem:[%s639_s0] ss:$16 sps:$4 sm:$0xff]   ;;  %v505_v33 = vld [vmem:[%s639_s0 + $0x4] ss:$16 sps:$4 sm:$0xff]   ;;  %v506_v34 = vld [vmem:[%s639_s0 + $0x8] ss:$16 sps:$4 sm:$0xff]  }
   0xe   :  { %454 = vmatprep.subr.bf16.mxu1 %v484_v13  ;;  %v508_v35 = vld [vmem:[%s639_s0 + $0xc] ss:$16 sps:$4 sm:$0xff]   ;;  %332 = vmatprep.mubr.bf16.mxu0 %v505_v33 }
   0xf   :  { %373 = vmatprep.mubr.bf16.mxu1 %v508_v35 }
  0x10   :  { %433 = vmatpush3.bf16.msra.mxu0 %v485_v14 }
  0x11   :  { %455 = vmatpush3.bf16.msra.mxu1 %v486_v15  ;;  %434 = vmatprep.subr.bf16.mxu0 %v487_v16 }
  0x12   :  { %456 = vmatprep.subr.bf16.mxu1 %v488_v17 }
  0x14   :  { %435 = vmatpush3.bf16.msra.mxu0 %v489_v18 }
  0x15   :  { %457 = vmatpush3.bf16.msra.mxu1 %v490_v19  ;;  %436 = vmatprep.subr.bf16.mxu0 %v491_v20 }
  0x16   :  { %458 = vmatprep.subr.bf16.mxu1 %v492_v21 }
  0x18   :  { %437 = vmatpush3.bf16.msra.mxu0 %v493_v22 }
  0x19   :  { %459 = vmatpush3.bf16.msra.mxu1 %v494_v23  ;;  %438 = vmatprep.subr.bf16.mxu0 %v495_v24 }
  0x1a   :  { %460 = vmatprep.subr.bf16.mxu1 %v496_v25 }
  0x1c   :  { %439 = vmatpush3.bf16.msra.mxu0 %v497_v26 }
  0x1d   :  { %461 = vmatpush3.bf16.msra.mxu1 %v498_v27  ;;  %440 = vmatprep.subr.bf16.mxu0 %v499_v28 }
  0x1e   :  { %462 = vmatprep.subr.bf16.mxu1 %v500_v29 }
  0x20   :  { %441 = vmatpush3.bf16.msra.mxu0 %v501_v30 }
  0x21   :  { %463 = vmatpush3.bf16.msra.mxu1 %v502_v31 }
  0x23   :  { %333 = vmatmul.mubr.bf16.vlgmr.msra.gmra.mrb[0].mxu0 %v503_v32 }
  0x24   :  { %374 = vmatmul.mubr.bf16.vlgmr.msra.gmra.mrb[0].mxu1 %v506_v34 }
  0xf6   :  { %v442_v36 = vpop.f32.mrb[0].mxu0 }
  0xf7   :  { %v464_v37 = vpop.f32.mrb[0].mxu1  ;;  %v443_v38 = vpop.f32.mrb[1].mxu0 }
  0xf8   :  { %v444_v39 = vadd.f32 %v443_v38, %v442_v36  ;;  %v465_v40 = vpop.f32.mrb[1].mxu1  ;;  %v445_v41 = vpop.f32.mrb[2].mxu0 }
  0xf9   :  { %v466_v42 = vadd.f32 %v465_v40, %v464_v37  ;;  %v467_v43 = vpop.f32.mrb[2].mxu1  ;;  %v446_v44 = vpop.f32.mrb[3].mxu0 }
  0xfa   :  { %v447_v45 = vadd.f32 %v446_v44, %v445_v41  ;;  %v468_v46 = vpop.f32.mrb[3].mxu1 }
  0xfb   :  { %v376_v47 = vadd.f32 %v466_v42, %v444_v39  ;;  %v469_v48 = vadd.f32 %v468_v46, %v467_v43 }
  0xfd   :  { %v379_v49 = vadd.f32 %v469_v48, %v447_v45  ;;  %384 = vst [vmem:[%s640_s2] sm:$0xff] %v376_v47 }
  0xff   :  { %385 = vst [vmem:[%s640_s2 + $0x8] sm:$0xff] %v379_v49 }

// kernel: derain_forward.103
= control target key start
LH: loop header
LB: loop body
LE: loop exit
PB: predicated region body
PF: predicated region fallthrough
CT: control target
= control target key end

     0   :  { %s2211_s12 = smov 0   ;;  %s2213_s13 = smov 0   ;;  %s2484_s0 = inlined_call_operand.vmem [shape: bf16[1024,512], index: 0, kind: input, shape index: {}]   ;;  %s2485_s1 = inlined_call_operand.vmem [shape: bf16[512,128], index: 1, kind: input, shape index: {}]   ;;  %s2486_s2 = inlined_call_operand.vmem [shape: f32[1,128], index: 2, kind: input, shape index: {}]   ;;  %s2487_s3 = inlined_call_operand.vmem [shape: f32[1024,128], index: 3, kind: output, shape index: {}]  }
   0x1   :  { %s2215_s14 = smov 0  }
   0x2 LB: > { %s32_s15 = sadd.s32 1, %s2185_s13  ;;  %p1620_p0 = scmp.ge.s32.totalorder %s2189_s14, 1  ;;  %s2189_s14 = sphi %s2215_s14, %s13_s14   ;;  %s2185_s13 = sphi %s2213_s13, %s2489_s13   ;;  %s2181_s12 = sphi %s2211_s12, %s2488_s12  }
   0x3   : > { %p34_p1 = scmp.ge.s32.totalorder %s32_s15, 4  ;;  %p191_p2 = scmp.lt.s32.totalorder %s2189_s14, 5 }
   0x5   : > { %s2491_s15 = smov (%p34_p1, %s32_s15), 0  ;;  %p192_p3 = pnand %p1620_p0, %p191_p2 }
   0x6   : > { %v1975_v0 = vld [vmem:[%s2485_s1 + $0x40] sm:$0xff] (!%p192_p3)   ;;  %v1979_v4 = vld [vmem:[%s2485_s1 + $0x48] sm:$0xff] (!%p192_p3)   ;;  %v1983_v8 = vld [vmem:[%s2485_s1 + $0x50] sm:$0xff] (!%p192_p3)   ;;  %s1621_s25 = sshll.u32 (!%p192_p3), %s2181_s12, 5 }
   0x7   : > { %195 = sbr.rel (%p192_p3) target bundleno = 394 (0x18a), region = 32  ;;  %v1976_v1 = vld [vmem:[%s2485_s1 + $0xc0] sm:$0xff] (!%p192_p3)   ;;  %1726 = vmatprep.subr.bf16.mxu0 (!%p192_p3), %v1975_v0  ;;  %v1980_v5 = vld [vmem:[%s2485_s1 + $0xc8] sm:$0xff] (!%p192_p3)   ;;  %v1984_v9 = vld [vmem:[%s2485_s1 + $0xd0] sm:$0xff] (!%p192_p3)   ;;  %p236_p4 = scmp.lt.s32.totalorder (!%p192_p3), %s1621_s25, 127 }
   0x8   : > { %v1977_v2 = vld [vmem:[%s2485_s1] sm:$0xff] (!%p192_p3)   ;;  %1838 = vmatprep.subr.bf16.mxu1 (!%p192_p3), %v1976_v1  ;;  %v1981_v6 = vld [vmem:[%s2485_s1 + $0x8] sm:$0xff] (!%p192_p3)   ;;  %v1985_v10 = vld [vmem:[%s2485_s1 + $0x10] sm:$0xff] (!%p192_p3)  }
   0x9   : > { %v1978_v3 = vld [vmem:[%s2485_s1 + $0x80] sm:$0xff] (!%p192_p3)   ;;  %1727 = vmatpush3.bf16.msra.mxu0 (!%p192_p3), %v1977_v2  ;;  %v1982_v7 = vld [vmem:[%s2485_s1 + $0x88] sm:$0xff] (!%p192_p3)   ;;  %v1986_v11 = vld [vmem:[%s2485_s1 + $0x90] sm:$0xff] (!%p192_p3)  }
   0xa   : > { %1839 = vmatpush3.bf16.msra.mxu1 (!%p192_p3), %v1978_v3  ;;  %1728 = vmatprep.subr.bf16.mxu0 (!%p192_p3), %v1979_v4  ;;  %v1987_v12 = vld [vmem:[%s2485_s1 + $0x58] sm:$0xff] (!%p192_p3)   ;;  %v1991_v16 = vld [vmem:[%s2485_s1 + $0x60] sm:$0xff] (!%p192_p3)   ;;  %v1995_v20 = vld [vmem:[%s2485_s1 + $0x68] sm:$0xff] (!%p192_p3)  }
   0xb   : > { %1840 = vmatprep.subr.bf16.mxu1 (!%p192_p3), %v1980_v5  ;;  %v1988_v13 = vld [vmem:[%s2485_s1 + $0xd8] sm:$0xff] (!%p192_p3)   ;;  %v1992_v17 = vld [vmem:[%s2485_s1 + $0xe0] sm:$0xff] (!%p192_p3)   ;;  %v1996_v21 = vld [vmem:[%s2485_s1 + $0xe8] sm:$0xff] (!%p192_p3)  }
   0xc   : > { %v1989_v14 = vld [vmem:[%s2485_s1 + $0x18] sm:$0xff] (!%p192_p3)   ;;  %v1993_v18 = vld [vmem:[%s2485_s1 + $0x20] sm:$0xff] (!%p192_p3)   ;;  %v1997_v22 = vld [vmem:[%s2485_s1 + $0x28] sm:$0xff] (!%p192_p3)  }
   0xd   : > { %1729 = vmatpush3.bf16.msra.mxu0 (!%p192_p3), %v1981_v6  ;;  %v1990_v15 = vld [vmem:[%s2485_s1 + $0x98] sm:$0xff] (!%p192_p3)   ;;  %v1994_v19 = vld [vmem:[%s2485_s1 + $0xa0] sm:$0xff] (!%p192_p3)   ;;  %v1998_v23 = vld [vmem:[%s2485_s1 + $0xa8] sm:$0xff] (!%p192_p3)  }
   0xe   : > { %1841 = vmatpush3.bf16.msra.mxu1 %v1982_v7  ;;  %1730 = vmatprep.subr.bf16.mxu0 %v1983_v8  ;;  %s2493_s25 = smov (!%p236_p4, %s1621_s25), 127  ;;  %v1999_v24 = vld [vmem:[%s2485_s1 + $0x70] sm:$0xff]   ;;  %v2003_v28 = vld [vmem:[%s2485_s1 + $0x78] sm:$0xff]  }
   0xf   : > { %1842 = vmatprep.subr.bf16.mxu1 %v1984_v9  ;;  %v2000_v25 = vld [vmem:[%s2485_s1 + $0xf0] sm:$0xff]   ;;  %s1725_s24 = sshll.u32 %s2493_s25, 4  ;;  %v2004_v29 = vld [vmem:[%s2485_s1 + $0xf8] sm:$0xff]   ;;  %s1625_s17 = sshll.u32 %s2493_s25, 3 }
  0x10   : > { %v2001_v26 = vld [vmem:[%s2485_s1 + $0x30] sm:$0xff]   ;;  %s2328_s12 = scalar_lea.vmem %s2484_s0, %s1725_s24  ;;  %v2005_v30 = vld [vmem:[%s2485_s1 + $0x38] sm:$0xff]   ;;  %s2412_s20 = scalar_lea.vmem %s2487_s3, %s1625_s17 }
  0x11   : > { %1731 = vmatpush3.bf16.msra.mxu0 %v1985_v10  ;;  %v2002_v27 = vld [vmem:[%s2485_s1 + $0xb0] sm:$0xff]   ;;  %v2006_v31 = vld [vmem:[%s2485_s1 + $0xb8] sm:$0xff]  }
  0x12   : > { %1843 = vmatpush3.bf16.msra.mxu1 %v1986_v11  ;;  %1732 = vmatprep.subr.bf16.mxu0 %v1987_v12  ;;  %v2007_v32 = vld [vmem:[%s2328_s12] ss:$16 sps:$4 sm:$0xff]   ;;  %v2009_v33 = vld [vmem:[%s2328_s12 + $0x4] ss:$16 sps:$4 sm:$0xff]   ;;  %v2010_v34 = vld [vmem:[%s2328_s12 + $0x8] ss:$16 sps:$4 sm:$0xff]  }
  0x13   : > { %1844 = vmatprep.subr.bf16.mxu1 %v1988_v13  ;;  %v2012_v35 = vld [vmem:[%s2328_s12 + $0xc] ss:$16 sps:$4 sm:$0xff]   ;;  %1008 = vmatprep.mubr.bf16.mxu0 %v2009_v33  ;;  %v2013_v36 = vld [vmem:[%s2328_s12 + $0x24] ss:$16 sps:$4 sm:$0xff]   ;;  %v2017_v38 = vld [vmem:[%s2328_s12 + $0x20] ss:$16 sps:$4 sm:$0xff]  }
  0x14   : > { %1169 = vmatprep.mubr.bf16.mxu1 %v2012_v35  ;;  %v2015_v37 = vld [vmem:[%s2328_s12 + $0x2c] ss:$16 sps:$4 sm:$0xff]   ;;  %v2018_v39 = vld [vmem:[%s2328_s12 + $0x28] ss:$16 sps:$4 sm:$0xff]   ;;  %v2019_v40 = vld [vmem:[%s2328_s12 + $0x44] ss:$16 sps:$4 sm:$0xff]  }
  0x15   : > { %1733 = vmatpush3.bf16.msra.mxu0 %v1989_v14  ;;  %v2021_v41 = vld [vmem:[%s2328_s12 + $0x4c] ss:$16 sps:$4 sm:$0xff]   ;;  %v2023_v42 = vld [vmem:[%s2328_s12 + $0x40] ss:$16 sps:$4 sm:$0xff]   ;;  %v2024_v43 = vld [vmem:[%s2328_s12 + $0x48] ss:$16 sps:$4 sm:$0xff]  }
  0x16   : > { %1845 = vmatpush3.bf16.msra.mxu1 %v1990_v15  ;;  %1734 = vmatprep.subr.bf16.mxu0 %v1991_v16  ;;  %v2025_v44 = vld [vmem:[%s2328_s12 + $0x64] ss:$16 sps:$4 sm:$0xff]   ;;  %v2027_v45 = vld [vmem:[%s2328_s12 + $0x6c] ss:$16 sps:$4 sm:$0xff]   ;;  %v2029_v46 = vld [vmem:[%s2328_s12 + $0x60] ss:$16 sps:$4 sm:$0xff]  }
  0x17   : > { %1846 = vmatprep.subr.bf16.mxu1 %v1992_v17  ;;  %v2030_v47 = vld [vmem:[%s2328_s12 + $0x68] ss:$16 sps:$4 sm:$0xff]   ;;  %v2031_v48 = vld [vmem:[%s2328_s12 + $0x84] ss:$16 sps:$4 sm:$0xff]   ;;  %v2033_v49 = vld [vmem:[%s2328_s12 + $0x8c] ss:$16 sps:$4 sm:$0xff]  }
  0x18   : > { %v2035_v50 = vld [vmem:[%s2328_s12 + $0x80] ss:$16 sps:$4 sm:$0xff]   ;;  %v2036_v51 = vld [vmem:[%s2328_s12 + $0x88] ss:$16 sps:$4 sm:$0xff]   ;;  %v2037_v52 = vld [vmem:[%s2328_s12 + $0xa4] ss:$16 sps:$4 sm:$0xff]  }
  0x19   : > { %1735 = vmatpush3.bf16.msra.mxu0 %v1993_v18  ;;  %v2039_v53 = vld [vmem:[%s2328_s12 + $0xac] ss:$16 sps:$4 sm:$0xff]   ;;  %v2041_v54 = vld [vmem:[%s2328_s12 + $0xa0] ss:$16 sps:$4 sm:$0xff]   ;;  %v2042_v55 = vld [vmem:[%s2328_s12 + $0xa8] ss:$16 sps:$4 sm:$0xff]  }
  0x1a   : > { %1847 = vmatpush3.bf16.msra.mxu1 %v1994_v19  ;;  %1736 = vmatprep.subr.bf16.mxu0 %v1995_v20  ;;  %v2043_v56 = vld [vmem:[%s2328_s12 + $0xc4] ss:$16 sps:$4 sm:$0xff]   ;;  %v2045_v57 = vld [vmem:[%s2328_s12 + $0xcc] ss:$16 sps:$4 sm:$0xff]   ;;  %v2047_v58 = vld [vmem:[%s2328_s12 + $0xc0] ss:$16 sps:$4 sm:$0xff]  }
  0x1b   : > { %1848 = vmatprep.subr.bf16.mxu1 %v1996_v21  ;;  %v2048_v59 = vld [vmem:[%s2328_s12 + $0xc8] ss:$16 sps:$4 sm:$0xff]   ;;  %v2049_v60 = vld [vmem:[%s2328_s12 + $0xe4] ss:$16 sps:$4 sm:$0xff]   ;;  %v2051_v61 = vld [vmem:[%s2328_s12 + $0xec] ss:$16 sps:$4 sm:$0xff]  }
  0x1c   : > { %v2053_v62 = vld [vmem:[%s2328_s12 + $0xe0] ss:$16 sps:$4 sm:$0xff]   ;;  %v2054_v63 = vld [vmem:[%s2328_s12 + $0xe8] ss:$16 sps:$4 sm:$0xff]   ;;  %v2055_v0 = vld [vmem:[%s2328_s12 + $0x104] ss:$16 sps:$4 sm:$0xff]  }
  0x1d   : > { %1737 = vmatpush3.bf16.msra.mxu0 %v1997_v22  ;;  %v2057_v1 = vld [vmem:[%s2328_s12 + $0x10c] ss:$16 sps:$4 sm:$0xff]   ;;  %v2059_v2 = vld [vmem:[%s2328_s12 + $0x100] ss:$16 sps:$4 sm:$0xff]   ;;  %v2060_v3 = vld [vmem:[%s2328_s12 + $0x108] ss:$16 sps:$4 sm:$0xff]  }
  0x1e   : > { %1849 = vmatpush3.bf16.msra.mxu1 %v1998_v23  ;;  %1738 = vmatprep.subr.bf16.mxu0 %v1999_v24  ;;  %v2061_v4 = vld [vmem:[%s2328_s12 + $0x124] ss:$16 sps:$4 sm:$0xff]   ;;  %v2063_v5 = vld [vmem:[%s2328_s12 + $0x12c] ss:$16 sps:$4 sm:$0xff]   ;;  %v2065_v6 = vld [vmem:[%s2328_s12 + $0x120] ss:$16 sps:$4 sm:$0xff]  }
  0x1f   : > { %1850 = vmatprep.subr.bf16.mxu1 %v2000_v25  ;;  %v2066_v7 = vld [vmem:[%s2328_s12 + $0x128] ss:$16 sps:$4 sm:$0xff]   ;;  %v2067_v8 = vld [vmem:[%s2328_s12 + $0x144] ss:$16 sps:$4 sm:$0xff]   ;;  %v2069_v9 = vld [vmem:[%s2328_s12 + $0x14c] ss:$16 sps:$4 sm:$0xff]  }
  0x20   : > { %v2071_v10 = vld [vmem:[%s2328_s12 + $0x140] ss:$16 sps:$4 sm:$0xff]   ;;  %v2072_v11 = vld [vmem:[%s2328_s12 + $0x148] ss:$16 sps:$4 sm:$0xff]   ;;  %v2073_v12 = vld [vmem:[%s2328_s12 + $0x164] ss:$16 sps:$4 sm:$0xff]  }
  0x21   : > { %1739 = vmatpush3.bf16.msra.mxu0 %v2001_v26  ;;  %v2075_v13 = vld [vmem:[%s2328_s12 + $0x16c] ss:$16 sps:$4 sm:$0xff]   ;;  %v2077_v14 = vld [vmem:[%s2328_s12 + $0x160] ss:$16 sps:$4 sm:$0xff]   ;;  %v2078_v15 = vld [vmem:[%s2328_s12 + $0x168] ss:$16 sps:$4 sm:$0xff]  }
  0x22   : > { %1851 = vmatpush3.bf16.msra.mxu1 %v2002_v27  ;;  %1740 = vmatprep.subr.bf16.mxu0 %v2003_v28  ;;  %v2079_v16 = vld [vmem:[%s2328_s12 + $0x184] ss:$16 sps:$4 sm:$0xff]   ;;  %v2081_v17 = vld [vmem:[%s2328_s12 + $0x18c] ss:$16 sps:$4 sm:$0xff]   ;;  %v2083_v18 = vld [vmem:[%s2328_s12 + $0x180] ss:$16 sps:$4 sm:$0xff]  }
  0x23   : > { %1852 = vmatprep.subr.bf16.mxu1 %v2004_v29  ;;  %v2084_v19 = vld [vmem:[%s2328_s12 + $0x188] ss:$16 sps:$4 sm:$0xff]   ;;  %v2085_v20 = vld [vmem:[%s2328_s12 + $0x1a4] ss:$16 sps:$4 sm:$0xff]   ;;  %v2087_v21 = vld [vmem:[%s2328_s12 + $0x1ac] ss:$16 sps:$4 sm:$0xff]  }
  0x24   : > { %v2089_v22 = vld [vmem:[%s2328_s12 + $0x1a0] ss:$16 sps:$4 sm:$0xff]   ;;  %v2090_v23 = vld [vmem:[%s2328_s12 + $0x1a8] ss:$16 sps:$4 sm:$0xff]   ;;  %v2091_v24 = vld [vmem:[%s2328_s12 + $0x1c4] ss:$16 sps:$4 sm:$0xff]  }
  0x25   : > { %1741 = vmatpush3.bf16.msra.mxu0 %v2005_v30  ;;  %v2093_v25 = vld [vmem:[%s2328_s12 + $0x1cc] ss:$16 sps:$4 sm:$0xff]   ;;  %v2095_v26 = vld [vmem:[%s2328_s12 + $0x1c0] ss:$16 sps:$4 sm:$0xff]   ;;  %v2096_v27 = vld [vmem:[%s2328_s12 + $0x1c8] ss:$16 sps:$4 sm:$0xff]  }
  0x26   : > { %1853 = vmatpush3.bf16.msra.mxu1 %v2006_v31  ;;  %v2097_v28 = vld [vmem:[%s2328_s12 + $0x1e4] ss:$16 sps:$4 sm:$0xff]   ;;  %v2099_v29 = vld [vmem:[%s2328_s12 + $0x1ec] ss:$16 sps:$4 sm:$0xff]   ;;  %v2101_v30 = vld [vmem:[%s2328_s12 + $0x1e0] ss:$16 sps:$4 sm:$0xff]  }
  0x27   : > { %v2102_v31 = vld [vmem:[%s2328_s12 + $0x1e8] ss:$16 sps:$4 sm:$0xff]  }
  0x28   : > { %1009 = vmatmul.mubr.bf16.vlgmr.msra.gmra.mrb[0].mxu0 %v2007_v32 }
  0x29   : > { %1170 = vmatmul.mubr.bf16.vlgmr.msra.gmra.mrb[0].mxu1 %v2010_v34  ;;  %1016 = vmatprep.mubr.bf16.mxu0 %v2013_v36 }
  0x2a   : > { %1177 = vmatprep.mubr.bf16.mxu1 %v2015_v37 }
  0x30   : > { %1017 = vmatmul.mubr.bf16.gmra.mrb[4].mxu0 %v2017_v38 }
  0x31   : > { %1178 = vmatmul.mubr.bf16.gmra.mrb[4].mxu1 %v2018_v39  ;;  %1024 = vmatprep.mubr.bf16.mxu0 %v2019_v40 }
  0x32   : > { %1185 = vmatprep.mubr.bf16.mxu1 %v2021_v41 }
  0x38   : > { %1025 = vmatmul.mubr.bf16.gmra.mrb[8].mxu0 %v2023_v42 }
  0x39   : > { %1186 = vmatmul.mubr.bf16.gmra.mrb[8].mxu1 %v2024_v43  ;;  %1032 = vmatprep.mubr.bf16.mxu0 %v2025_v44 }
  0x3a   : > { %1193 = vmatprep.mubr.bf16.mxu1 %v2027_v45  ;;  %v2403_v45 = vld [vmem:[%s2486_s2] ss:$0 sm:$0xff] }
  0x40   : > { %1033 = vmatmul.mubr.bf16.gmra.mrb[12].mxu0 %v2029_v46 }
  0x41   : > { %1194 = vmatmul.mubr.bf16.gmra.mrb[12].mxu1 %v2030_v47  ;;  %1040 = vmatprep.mubr.bf16.mxu0 %v2031_v48 }
  0x42   : > { %1201 = vmatprep.mubr.bf16.mxu1 %v2033_v49 }
  0x48   : > { %1041 = vmatmul.mubr.bf16.gmra.mrb[16].mxu0 %v2035_v50 }
  0x49   : > { %1202 = vmatmul.mubr.bf16.gmra.mrb[16].mxu1 %v2036_v51  ;;  %1048 = vmatprep.mubr.bf16.mxu0 %v2037_v52 }
  0x4a   : > { %1209 = vmatprep.mubr.bf16.mxu1 %v2039_v53 }
  0x50   : > { %1049 = vmatmul.mubr.bf16.gmra.mrb[20].mxu0 %v2041_v54 }
  0x51   : > { %1210 = vmatmul.mubr.bf16.gmra.mrb[20].mxu1 %v2042_v55  ;;  %1056 = vmatprep.mubr.bf16.mxu0 %v2043_v56 }
  0x52   : > { %1217 = vmatprep.mubr.bf16.mxu1 %v2045_v57 }
  0x58   : > { %1057 = vmatmul.mubr.bf16.gmra.mrb[24].mxu0 %v2047_v58 }
  0x59   : > { %1218 = vmatmul.mubr.bf16.gmra.mrb[24].mxu1 %v2048_v59  ;;  %1064 = vmatprep.mubr.bf16.mxu0 %v2049_v60 }
  0x5a   : > { %1225 = vmatprep.mubr.bf16.mxu1 %v2051_v61 }
  0x60   : > { %1065 = vmatmul.mubr.bf16.gmra.mrb[28].mxu0 %v2053_v62 }
  0x61   : > { %1226 = vmatmul.mubr.bf16.gmra.mrb[28].mxu1 %v2054_v63  ;;  %1072 = vmatprep.mubr.bf16.mxu0 %v2055_v0 }
  0x62   : > { %1233 = vmatprep.mubr.bf16.mxu1 %v2057_v1 }
  0x68   : > { %1073 = vmatmul.mubr.bf16.gmra.mrb[32].mxu0 %v2059_v2 }
  0x69   : > { %1234 = vmatmul.mubr.bf16.gmra.mrb[32].mxu1 %v2060_v3  ;;  %1080 = vmatprep.mubr.bf16.mxu0 %v2061_v4 }
  0x6a   : > { %1241 = vmatprep.mubr.bf16.mxu1 %v2063_v5 }
  0x70   : > { %1081 = vmatmul.mubr.bf16.gmra.mrb[36].mxu0 %v2065_v6 }
  0x71   : > { %1242 = vmatmul.mubr.bf16.gmra.mrb[36].mxu1 %v2066_v7  ;;  %1088 = vmatprep.mubr.bf16.mxu0 %v2067_v8 }
  0x72   : > { %1249 = vmatprep.mubr.bf16.mxu1 %v2069_v9 }
  0x78   : > { %1089 = vmatmul.mubr.bf16.gmra.mrb[40].mxu0 %v2071_v10 }
  0x79   : > { %1250 = vmatmul.mubr.bf16.gmra.mrb[40].mxu1 %v2072_v11  ;;  %1096 = vmatprep.mubr.bf16.mxu0 %v2073_v12 }
  0x7a   : > { %1257 = vmatprep.mubr.bf16.mxu1 %v2075_v13 }
  0x80   : > { %1097 = vmatmul.mubr.bf16.gmra.mrb[44].mxu0 %v2077_v14 }
  0x81   : > { %1258 = vmatmul.mubr.bf16.gmra.mrb[44].mxu1 %v2078_v15  ;;  %1104 = vmatprep.mubr.bf16.mxu0 %v2079_v16 }
  0x82   : > { %1265 = vmatprep.mubr.bf16.mxu1 %v2081_v17 }
  0x88   : > { %1105 = vmatmul.mubr.bf16.gmra.mrb[48].mxu0 %v2083_v18 }
  0x89   : > { %1266 = vmatmul.mubr.bf16.gmra.mrb[48].mxu1 %v2084_v19  ;;  %1112 = vmatprep.mubr.bf16.mxu0 %v2085_v20 }
  0x8a   : > { %1273 = vmatprep.mubr.bf16.mxu1 %v2087_v21 }
  0x90   : > { %1113 = vmatmul.mubr.bf16.gmra.mrb[52].mxu0 %v2089_v22 }
  0x91   : > { %1274 = vmatmul.mubr.bf16.gmra.mrb[52].mxu1 %v2090_v23  ;;  %1120 = vmatprep.mubr.bf16.mxu0 %v2091_v24 }
  0x92   : > { %1281 = vmatprep.mubr.bf16.mxu1 %v2093_v25 }
  0x98   : > { %1121 = vmatmul.mubr.bf16.gmra.mrb[56].mxu0 %v2095_v26 }
  0x99   : > { %1282 = vmatmul.mubr.bf16.gmra.mrb[56].mxu1 %v2096_v27  ;;  %1128 = vmatprep.mubr.bf16.mxu0 %v2097_v28 }
  0x9a   : > { %1289 = vmatprep.mubr.bf16.mxu1 %v2099_v29 }
  0xa0   : > { %1129 = vmatmul.mubr.bf16.gmra.mrb[60].mxu0 %v2101_v30 }
  0xa1   : > { %1290 = vmatmul.mubr.bf16.gmra.mrb[60].mxu1 %v2102_v31 }
  0xfb   : > { %v1742_v32 = vpop.f32.mrb[0].mxu0 }
  0xfc   : > { %v1854_v33 = vpop.f32.mrb[0].mxu1  ;;  %v1743_v34 = vpop.f32.mrb[1].mxu0 }
  0xfd   : > { %v1744_v35 = vadd.f32 %v1743_v34, %v1742_v32  ;;  %v1855_v36 = vpop.f32.mrb[1].mxu1  ;;  %v1745_v37 = vpop.f32.mrb[2].mxu0 }
  0xfe   : > { %v1856_v38 = vadd.f32 %v1855_v36, %v1854_v33  ;;  %v1857_v39 = vpop.f32.mrb[2].mxu1  ;;  %v1746_v40 = vpop.f32.mrb[3].mxu0 }
  0xff   : > { %v1747_v41 = vadd.f32 %v1746_v40, %v1745_v37  ;;  %v1858_v42 = vpop.f32.mrb[3].mxu1 }
 0x100   : > { %v1172_v43 = vadd.f32 %v1856_v38, %v1744_v35  ;;  %v1859_v44 = vadd.f32 %v1858_v42, %v1857_v39 }
 0x102   : > { %v1175_v46 = vadd.f32 %v1859_v44, %v1747_v41  ;;  %v1404_v48 = vadd.f32 %v2403_v45, %v1172_v43 }
 0x103   : > { %v1748_v47 = vpop.f32.mrb[4].mxu0 }
 0x104   : > { %v1860_v49 = vpop.f32.mrb[4].mxu1  ;;  %v1749_v50 = vpop.f32.mrb[5].mxu0  ;;  %2103 = vtanh.f32 %v1404_v48  ;;  %v1405_v54 = vadd.f32 %v2403_v45, %v1175_v46 }
 0x105   : > { %v1750_v51 = vadd.f32 %v1749_v50, %v1748_v47  ;;  %v1861_v52 = vpop.f32.mrb[5].mxu1  ;;  %v1751_v53 = vpop.f32.mrb[6].mxu0 }
 0x106   : > { %v1862_v55 = vadd.f32 %v1861_v52, %v1860_v49  ;;  %v1863_v56 = vpop.f32.mrb[6].mxu1  ;;  %v1752_v57 = vpop.f32.mrb[7].mxu0  ;;  %2105 = vtanh.f32 %v1405_v54 }
 0x107   : > { %v1753_v58 = vadd.f32 %v1752_v57, %v1751_v53  ;;  %v1864_v59 = vpop.f32.mrb[7].mxu1 }
 0x108   : > { %v1180_v60 = vadd.f32 %v1862_v55, %v1750_v51  ;;  %v1865_v61 = vadd.f32 %v1864_v59, %v1863_v56 }
 0x10a   : > { %v1183_v62 = vadd.f32 %v1865_v61, %v1753_v58  ;;  %v1406_v0 = vadd.f32 %v2403_v45, %v1180_v60 }
 0x10b   : > { %v1754_v63 = vpop.f32.mrb[8].mxu0 }
 0x10c   : > { %v1866_v1 = vpop.f32.mrb[8].mxu1  ;;  %v1755_v2 = vpop.f32.mrb[9].mxu0  ;;  %2107 = vtanh.f32 %v1406_v0  ;;  %v1407_v6 = vadd.f32 %v2403_v45, %v1183_v62 }
 0x10d   : > { %v1756_v3 = vadd.f32 %v1755_v2, %v1754_v63  ;;  %v1867_v4 = vpop.f32.mrb[9].mxu1  ;;  %v1757_v5 = vpop.f32.mrb[10].mxu0 }
 0x10e   : > { %v1868_v7 = vadd.f32 %v1867_v4, %v1866_v1  ;;  %v1869_v8 = vpop.f32.mrb[10].mxu1  ;;  %v1758_v9 = vpop.f32.mrb[11].mxu0  ;;  %2109 = vtanh.f32 %v1407_v6 }
 0x10f   : > { %v1759_v10 = vadd.f32 %v1758_v9, %v1757_v5  ;;  %v1870_v11 = vpop.f32.mrb[11].mxu1  ;;  %v2104_v12 = vpop.eup %2103 }
 0x110   : > { %v1188_v13 = vadd.f32 %v1868_v7, %v1756_v3  ;;  %v1871_v14 = vadd.f32 %v1870_v11, %v1869_v8  ;;  %1468 = vst [vmem:[%s2412_s20] sm:$0xff] %v2104_v12  ;;  %v2106_v15 = vpop.eup %2105 }
 0x111   : > { %1469 = vst [vmem:[%s2412_s20 + $0x8] sm:$0xff] %v2106_v15 }
 0x112   : > { %v1191_v16 = vadd.f32 %v1871_v14, %v1759_v10  ;;  %v1408_v18 = vadd.f32 %v2403_v45, %v1188_v13 }
 0x113   : > { %v1760_v17 = vpop.f32.mrb[12].mxu0 }
 0x114   : > { %v1872_v19 = vpop.f32.mrb[12].mxu1  ;;  %v1761_v20 = vpop.f32.mrb[13].mxu0  ;;  %2111 = vtanh.f32 %v1408_v18  ;;  %v1409_v24 = vadd.f32 %v2403_v45, %v1191_v16 }
 0x115   : > { %v1762_v21 = vadd.f32 %v1761_v20, %v1760_v17  ;;  %v1873_v22 = vpop.f32.mrb[13].mxu1  ;;  %v1763_v23 = vpop.f32.mrb[14].mxu0 }
 0x116   : > { %v1874_v25 = vadd.f32 %v1873_v22, %v1872_v19  ;;  %v1875_v26 = vpop.f32.mrb[14].mxu1  ;;  %v1764_v27 = vpop.f32.mrb[15].mxu0  ;;  %2113 = vtanh.f32 %v1409_v24 }
 0x117   : > { %v1765_v28 = vadd.f32 %v1764_v27, %v1763_v23  ;;  %v1876_v29 = vpop.f32.mrb[15].mxu1  ;;  %v2108_v30 = vpop.eup %2107 }
 0x118   : > { %v1196_v31 = vadd.f32 %v1874_v25, %v1762_v21  ;;  %v1877_v32 = vadd.f32 %v1876_v29, %v1875_v26  ;;  %1470 = vst [vmem:[%s2412_s20 + $0x10] sm:$0xff] %v2108_v30  ;;  %v2110_v33 = vpop.eup %2109 }
 0x119   : > { %1471 = vst [vmem:[%s2412_s20 + $0x18] sm:$0xff] %v2110_v33 }
 0x11a   : > { %v1199_v34 = vadd.f32 %v1877_v32, %v1765_v28  ;;  %v1410_v36 = vadd.f32 %v2403_v45, %v1196_v31 }
 0x11b   : > { %v1766_v35 = vpop.f32.mrb[16].mxu0 }
 0x11c   : > { %v1878_v37 = vpop.f32.mrb[16].mxu1  ;;  %v1767_v38 = vpop.f32.mrb[17].mxu0  ;;  %2115 = vtanh.f32 %v1410_v36  ;;  %v1411_v42 = vadd.f32 %v2403_v45, %v1199_v34 }
 0x11d   : > { %v1768_v39 = vadd.f32 %v1767_v38, %v1766_v35  ;;  %v1879_v40 = vpop.f32.mrb[17].mxu1  ;;  %v1769_v41 = vpop.f32.mrb[18].mxu0 }
 0x11e   : > { %v1880_v43 = vadd.f32 %v1879_v40, %v1878_v37  ;;  %v1881_v44 = vpop.f32.mrb[18].mxu1  ;;  %v1770_v46 = vpop.f32.mrb[19].mxu0  ;;  %2117 = vtanh.f32 %v1411_v42 }
 0x11f   : > { %v1771_v47 = vadd.f32 %v1770_v46, %v1769_v41  ;;  %v1882_v48 = vpop.f32.mrb[19].mxu1  ;;  %v2112_v49 = vpop.eup %2111 }
 0x120   : > { %v1204_v50 = vadd.f32 %v1880_v43, %v1768_v39  ;;  %v1883_v51 = vadd.f32 %v1882_v48, %v1881_v44  ;;  %1472 = vst [vmem:[%s2412_s20 + $0x20] sm:$0xff] %v2112_v49  ;;  %v2114_v52 = vpop.eup %2113 }
 0x121   : > { %1473 = vst [vmem:[%s2412_s20 + $0x28] sm:$0xff] %v2114_v52 }
 0x122   : > { %v1207_v53 = vadd.f32 %v1883_v51, %v1771_v47  ;;  %v1412_v55 = vadd.f32 %v2403_v45, %v1204_v50 }
 0x123   : > { %v1772_v54 = vpop.f32.mrb[20].mxu0 }
 0x124   : > { %v1884_v56 = vpop.f32.mrb[20].mxu1  ;;  %v1773_v57 = vpop.f32.mrb[21].mxu0  ;;  %2119 = vtanh.f32 %v1412_v55  ;;  %v1413_v61 = vadd.f32 %v2403_v45, %v1207_v53 }
 0x125   : > { %v1774_v58 = vadd.f32 %v1773_v57, %v1772_v54  ;;  %v1885_v59 = vpop.f32.mrb[21].mxu1  ;;  %v1775_v60 = vpop.f32.mrb[22].mxu0 }
 0x126   : > { %v1886_v62 = vadd.f32 %v1885_v59, %v1884_v56  ;;  %v1887_v63 = vpop.f32.mrb[22].mxu1  ;;  %v1776_v0 = vpop.f32.mrb[23].mxu0  ;;  %2121 = vtanh.f32 %v1413_v61 }
 0x127   : > { %v1777_v1 = vadd.f32 %v1776_v0, %v1775_v60  ;;  %v1888_v2 = vpop.f32.mrb[23].mxu1  ;;  %v2116_v3 = vpop.eup %2115 }
 0x128   : > { %v1212_v4 = vadd.f32 %v1886_v62, %v1774_v58  ;;  %v1889_v5 = vadd.f32 %v1888_v2, %v1887_v63  ;;  %1474 = vst [vmem:[%s2412_s20 + $0x30] sm:$0xff] %v2116_v3  ;;  %v2118_v6 = vpop.eup %2117 }
 0x129   : > { %1475 = vst [vmem:[%s2412_s20 + $0x38] sm:$0xff] %v2118_v6 }
 0x12a   : > { %v1215_v7 = vadd.f32 %v1889_v5, %v1777_v1  ;;  %v1414_v9 = vadd.f32 %v2403_v45, %v1212_v4 }
 0x12b   : > { %v1778_v8 = vpop.f32.mrb[24].mxu0 }
 0x12c   : > { %v1890_v10 = vpop.f32.mrb[24].mxu1  ;;  %v1779_v11 = vpop.f32.mrb[25].mxu0  ;;  %2123 = vtanh.f32 %v1414_v9  ;;  %v1415_v15 = vadd.f32 %v2403_v45, %v1215_v7 }
 0x12d   : > { %v1780_v12 = vadd.f32 %v1779_v11, %v1778_v8  ;;  %v1891_v13 = vpop.f32.mrb[25].mxu1  ;;  %v1781_v14 = vpop.f32.mrb[26].mxu0 }
 0x12e   : > { %v1892_v16 = vadd.f32 %v1891_v13, %v1890_v10  ;;  %v1893_v17 = vpop.f32.mrb[26].mxu1  ;;  %v1782_v18 = vpop.f32.mrb[27].mxu0  ;;  %2125 = vtanh.f32 %v1415_v15 }
 0x12f   : > { %v1783_v19 = vadd.f32 %v1782_v18, %v1781_v14  ;;  %v1894_v20 = vpop.f32.mrb[27].mxu1  ;;  %v2120_v21 = vpop.eup %2119 }
 0x130   : > { %v1220_v22 = vadd.f32 %v1892_v16, %v1780_v12  ;;  %v1895_v23 = vadd.f32 %v1894_v20, %v1893_v17  ;;  %1476 = vst [vmem:[%s2412_s20 + $0x40] sm:$0xff] %v2120_v21  ;;  %v2122_v24 = vpop.eup %2121 }
 0x131   : > { %1477 = vst [vmem:[%s2412_s20 + $0x48] sm:$0xff] %v2122_v24 }
 0x132   : > { %v1223_v25 = vadd.f32 %v1895_v23, %v1783_v19  ;;  %v1416_v27 = vadd.f32 %v2403_v45, %v1220_v22 }
 0x133   : > { %v1784_v26 = vpop.f32.mrb[28].mxu0 }
 0x134   : > { %v1896_v28 = vpop.f32.mrb[28].mxu1  ;;  %v1785_v29 = vpop.f32.mrb[29].mxu0  ;;  %2127 = vtanh.f32 %v1416_v27  ;;  %v1417_v33 = vadd.f32 %v2403_v45, %v1223_v25 }
 0x135   : > { %v1786_v30 = vadd.f32 %v1785_v29, %v1784_v26  ;;  %v1897_v31 = vpop.f32.mrb[29].mxu1  ;;  %v1787_v32 = vpop.f32.mrb[30].mxu0 }
 0x136   : > { %v1898_v34 = vadd.f32 %v1897_v31, %v1896_v28  ;;  %v1899_v35 = vpop.f32.mrb[30].mxu1  ;;  %v1788_v36 = vpop.f32.mrb[31].mxu0  ;;  %2129 = vtanh.f32 %v1417_v33 }
 0x137   : > { %v1789_v37 = vadd.f32 %v1788_v36, %v1787_v32  ;;  %v1900_v38 = vpop.f32.mrb[31].mxu1  ;;  %v2124_v39 = vpop.eup %2123 }
 0x138   : > { %v1228_v40 = vadd.f32 %v1898_v34, %v1786_v30  ;;  %v1901_v41 = vadd.f32 %v1900_v38, %v1899_v35  ;;  %1478 = vst [vmem:[%s2412_s20 + $0x50] sm:$0xff] %v2124_v39  ;;  %v2126_v42 = vpop.eup %2125 }
 0x139   : > { %1479 = vst [vmem:[%s2412_s20 + $0x58] sm:$0xff] %v2126_v42 }
 0x13a   : > { %v1231_v43 = vadd.f32 %v1901_v41, %v1789_v37  ;;  %v1418_v46 = vadd.f32 %v2403_v45, %v1228_v40 }
 0x13b   : > { %v1790_v44 = vpop.f32.mrb[32].mxu0 }
 0x13c   : > { %v1902_v47 = vpop.f32.mrb[32].mxu1  ;;  %v1791_v48 = vpop.f32.mrb[33].mxu0  ;;  %2131 = vtanh.f32 %v1418_v46  ;;  %v1419_v52 = vadd.f32 %v2403_v45, %v1231_v43 }
 0x13d   : > { %v1792_v49 = vadd.f32 %v1791_v48, %v1790_v44  ;;  %v1903_v50 = vpop.f32.mrb[33].mxu1  ;;  %v1793_v51 = vpop.f32.mrb[34].mxu0 }
 0x13e   : > { %v1904_v53 = vadd.f32 %v1903_v50, %v1902_v47  ;;  %v1905_v54 = vpop.f32.mrb[34].mxu1  ;;  %v1794_v55 = vpop.f32.mrb[35].mxu0  ;;  %2133 = vtanh.f32 %v1419_v52 }
 0x13f   : > { %v1795_v56 = vadd.f32 %v1794_v55, %v1793_v51  ;;  %v1906_v57 = vpop.f32.mrb[35].mxu1  ;;  %v2128_v58 = vpop.eup %2127 }
 0x140   : > { %v1236_v59 = vadd.f32 %v1904_v53, %v1792_v49  ;;  %v1907_v60 = vadd.f32 %v1906_v57, %v1905_v54  ;;  %1480 = vst [vmem:[%s2412_s20 + $0x60] sm:$0xff] %v2128_v58  ;;  %v2130_v61 = vpop.eup %2129 }
 0x141   : > { %1481 = vst [vmem:[%s2412_s20 + $0x68] sm:$0xff] %v2130_v61 }
 0x142   : > { %v1239_v62 = vadd.f32 %v1907_v60, %v1795_v56  ;;  %v1420_v0 = vadd.f32 %v2403_v45, %v1236_v59 }
 0x143   : > { %v1796_v63 = vpop.f32.mrb[36].mxu0 }
 0x144   : > { %v1908_v1 = vpop.f32.mrb[36].mxu1  ;;  %v1797_v2 = vpop.f32.mrb[37].mxu0  ;;  %2135 = vtanh.f32 %v1420_v0  ;;  %v1421_v6 = vadd.f32 %v2403_v45, %v1239_v62 }
 0x145   : > { %v1798_v3 = vadd.f32 %v1797_v2, %v1796_v63  ;;  %v1909_v4 = vpop.f32.mrb[37].mxu1  ;;  %v1799_v5 = vpop.f32.mrb[38].mxu0 }
 0x146   : > { %v1910_v7 = vadd.f32 %v1909_v4, %v1908_v1  ;;  %v1911_v8 = vpop.f32.mrb[38].mxu1  ;;  %v1800_v9 = vpop.f32.mrb[39].mxu0  ;;  %2137 = vtanh.f32 %v1421_v6 }
 0x147   : > { %v1801_v10 = vadd.f32 %v1800_v9, %v1799_v5  ;;  %v1912_v11 = vpop.f32.mrb[39].mxu1  ;;  %v2132_v12 = vpop.eup %2131 }
 0x148   : > { %v1244_v13 = vadd.f32 %v1910_v7, %v1798_v3  ;;  %v1913_v14 = vadd.f32 %v1912_v11, %v1911_v8  ;;  %1482 = vst [vmem:[%s2412_s20 + $0x70] sm:$0xff] %v2132_v12  ;;  %v2134_v15 = vpop.eup %2133 }
 0x149   : > { %1483 = vst [vmem:[%s2412_s20 + $0x78] sm:$0xff] %v2134_v15 }
 0x14a   : > { %v1247_v16 = vadd.f32 %v1913_v14, %v1801_v10  ;;  %v1422_v18 = vadd.f32 %v2403_v45, %v1244_v13 }
 0x14b   : > { %v1802_v17 = vpop.f32.mrb[40].mxu0 }
 0x14c   : > { %v1914_v19 = vpop.f32.mrb[40].mxu1  ;;  %v1803_v20 = vpop.f32.mrb[41].mxu0  ;;  %2139 = vtanh.f32 %v1422_v18  ;;  %v1423_v24 = vadd.f32 %v2403_v45, %v1247_v16 }
 0x14d   : > { %v1804_v21 = vadd.f32 %v1803_v20, %v1802_v17  ;;  %v1915_v22 = vpop.f32.mrb[41].mxu1  ;;  %v1805_v23 = vpop.f32.mrb[42].mxu0 }
 0x14e   : > { %v1916_v25 = vadd.f32 %v1915_v22, %v1914_v19  ;;  %v1917_v26 = vpop.f32.mrb[42].mxu1  ;;  %v1806_v27 = vpop.f32.mrb[43].mxu0  ;;  %2141 = vtanh.f32 %v1423_v24 }
 0x14f   : > { %v1807_v28 = vadd.f32 %v1806_v27, %v1805_v23  ;;  %v1918_v29 = vpop.f32.mrb[43].mxu1  ;;  %v2136_v30 = vpop.eup %2135 }
 0x150   : > { %v1252_v31 = vadd.f32 %v1916_v25, %v1804_v21  ;;  %v1919_v32 = vadd.f32 %v1918_v29, %v1917_v26  ;;  %1484 = vst [vmem:[%s2412_s20 + $0x80] sm:$0xff] %v2136_v30  ;;  %v2138_v33 = vpop.eup %2137 }
 0x151   : > { %1485 = vst [vmem:[%s2412_s20 + $0x88] sm:$0xff] %v2138_v33 }
 0x152   : > { %v1255_v34 = vadd.f32 %v1919_v32, %v1807_v28  ;;  %v1424_v36 = vadd.f32 %v2403_v45, %v1252_v31 }
 0x153   : > { %v1808_v35 = vpop.f32.mrb[44].mxu0 }
 0x154   : > { %v1920_v37 = vpop.f32.mrb[44].mxu1  ;;  %v1809_v38 = vpop.f32.mrb[45].mxu0  ;;  %2143 = vtanh.f32 %v1424_v36  ;;  %v1425_v42 = vadd.f32 %v2403_v45, %v1255_v34 }
 0x155   : > { %v1810_v39 = vadd.f32 %v1809_v38, %v1808_v35  ;;  %v1921_v40 = vpop.f32.mrb[45].mxu1  ;;  %v1811_v41 = vpop.f32.mrb[46].mxu0 }
 0x156   : > { %v1922_v43 = vadd.f32 %v1921_v40, %v1920_v37  ;;  %v1923_v44 = vpop.f32.mrb[46].mxu1  ;;  %v1812_v46 = vpop.f32.mrb[47].mxu0  ;;  %2145 = vtanh.f32 %v1425_v42 }
 0x157   : > { %v1813_v47 = vadd.f32 %v1812_v46, %v1811_v41  ;;  %v1924_v48 = vpop.f32.mrb[47].mxu1  ;;  %v2140_v49 = vpop.eup %2139 }
 0x158   : > { %v1260_v50 = vadd.f32 %v1922_v43, %v1810_v39  ;;  %v1925_v51 = vadd.f32 %v1924_v48, %v1923_v44  ;;  %1486 = vst [vmem:[%s2412_s20 + $0x90] sm:$0xff] %v2140_v49  ;;  %v2142_v52 = vpop.eup %2141 }
 0x159   : > { %1487 = vst [vmem:[%s2412_s20 + $0x98] sm:$0xff] %v2142_v52 }
 0x15a   : > { %v1263_v53 = vadd.f32 %v1925_v51, %v1813_v47  ;;  %v1426_v55 = vadd.f32 %v2403_v45, %v1260_v50 }
 0x15b   : > { %v1814_v54 = vpop.f32.mrb[48].mxu0 }
 0x15c   : > { %v1926_v56 = vpop.f32.mrb[48].mxu1  ;;  %v1815_v57 = vpop.f32.mrb[49].mxu0  ;;  %2147 = vtanh.f32 %v1426_v55  ;;  %v1427_v61 = vadd.f32 %v2403_v45, %v1263_v53 }
 0x15d   : > { %v1816_v58 = vadd.f32 %v1815_v57, %v1814_v54  ;;  %v1927_v59 = vpop.f32.mrb[49].mxu1  ;;  %v1817_v60 = vpop.f32.mrb[50].mxu0 }
 0x15e   : > { %v1928_v62 = vadd.f32 %v1927_v59, %v1926_v56  ;;  %v1929_v63 = vpop.f32.mrb[50].mxu1  ;;  %v1818_v0 = vpop.f32.mrb[51].mxu0  ;;  %2149 = vtanh.f32 %v1427_v61 }
 0x15f   : > { %v1819_v1 = vadd.f32 %v1818_v0, %v1817_v60  ;;  %v1930_v2 = vpop.f32.mrb[51].mxu1  ;;  %v2144_v3 = vpop.eup %2143 }
 0x160   : > { %v1268_v4 = vadd.f32 %v1928_v62, %v1816_v58  ;;  %v1931_v5 = vadd.f32 %v1930_v2, %v1929_v63  ;;  %1488 = vst [vmem:[%s2412_s20 + $0xa0] sm:$0xff] %v2144_v3  ;;  %v2146_v6 = vpop.eup %2145 }
 0x161   : > { %1489 = vst [vmem:[%s2412_s20 + $0xa8] sm:$0xff] %v2146_v6 }
 0x162   : > { %v1271_v7 = vadd.f32 %v1931_v5, %v1819_v1  ;;  %v1428_v9 = vadd.f32 %v2403_v45, %v1268_v4 }
 0x163   : > { %v1820_v8 = vpop.f32.mrb[52].mxu0 }
 0x164   : > { %v1932_v10 = vpop.f32.mrb[52].mxu1  ;;  %v1821_v11 = vpop.f32.mrb[53].mxu0  ;;  %2151 = vtanh.f32 %v1428_v9  ;;  %v1429_v15 = vadd.f32 %v2403_v45, %v1271_v7 }
 0x165   : > { %v1822_v12 = vadd.f32 %v1821_v11, %v1820_v8  ;;  %v1933_v13 = vpop.f32.mrb[53].mxu1  ;;  %v1823_v14 = vpop.f32.mrb[54].mxu0 }
 0x166   : > { %v1934_v16 = vadd.f32 %v1933_v13, %v1932_v10  ;;  %v1935_v17 = vpop.f32.mrb[54].mxu1  ;;  %v1824_v18 = vpop.f32.mrb[55].mxu0  ;;  %2153 = vtanh.f32 %v1429_v15 }
 0x167   : > { %v1825_v19 = vadd.f32 %v1824_v18, %v1823_v14  ;;  %v1936_v20 = vpop.f32.mrb[55].mxu1  ;;  %v2148_v21 = vpop.eup %2147 }
 0x168   : > { %v1276_v22 = vadd.f32 %v1934_v16, %v1822_v12  ;;  %v1937_v23 = vadd.f32 %v1936_v20, %v1935_v17  ;;  %1490 = vst [vmem:[%s2412_s20 + $0xb0] sm:$0xff] %v2148_v21  ;;  %v2150_v24 = vpop.eup %2149 }
 0x169   : > { %1491 = vst [vmem:[%s2412_s20 + $0xb8] sm:$0xff] %v2150_v24 }
 0x16a   : > { %v1279_v25 = vadd.f32 %v1937_v23, %v1825_v19  ;;  %v1430_v27 = vadd.f32 %v2403_v45, %v1276_v22 }
 0x16b   : > { %v1826_v26 = vpop.f32.mrb[56].mxu0 }
 0x16c   : > { %v1938_v28 = vpop.f32.mrb[56].mxu1  ;;  %v1827_v29 = vpop.f32.mrb[57].mxu0  ;;  %2155 = vtanh.f32 %v1430_v27  ;;  %v1431_v33 = vadd.f32 %v2403_v45, %v1279_v25 }
 0x16d   : > { %v1828_v30 = vadd.f32 %v1827_v29, %v1826_v26  ;;  %v1939_v31 = vpop.f32.mrb[57].mxu1  ;;  %v1829_v32 = vpop.f32.mrb[58].mxu0 }
 0x16e   : > { %v1940_v34 = vadd.f32 %v1939_v31, %v1938_v28  ;;  %v1941_v35 = vpop.f32.mrb[58].mxu1  ;;  %v1830_v36 = vpop.f32.mrb[59].mxu0  ;;  %2157 = vtanh.f32 %v1431_v33 }
 0x16f   : > { %v1831_v37 = vadd.f32 %v1830_v36, %v1829_v32  ;;  %v1942_v38 = vpop.f32.mrb[59].mxu1  ;;  %v2152_v39 = vpop.eup %2151 }
 0x170   : > { %v1284_v40 = vadd.f32 %v1940_v34, %v1828_v30  ;;  %v1943_v41 = vadd.f32 %v1942_v38, %v1941_v35  ;;  %1492 = vst [vmem:[%s2412_s20 + $0xc0] sm:$0xff] %v2152_v39  ;;  %v2154_v42 = vpop.eup %2153 }
 0x171   : > { %1493 = vst [vmem:[%s2412_s20 + $0xc8] sm:$0xff] %v2154_v42 }
 0x172   : > { %v1287_v43 = vadd.f32 %v1943_v41, %v1831_v37  ;;  %v1432_v46 = vadd.f32 %v2403_v45, %v1284_v40 }
 0x173   : > { %v1832_v44 = vpop.f32.mrb[60].mxu0 }
 0x174   : > { %v1944_v47 = vpop.f32.mrb[60].mxu1  ;;  %v1833_v48 = vpop.f32.mrb[61].mxu0  ;;  %2159 = vtanh.f32 %v1432_v46  ;;  %v1433_v52 = vadd.f32 %v2403_v45, %v1287_v43 }
 0x175   : > { %v1834_v49 = vadd.f32 %v1833_v48, %v1832_v44  ;;  %v1945_v50 = vpop.f32.mrb[61].mxu1  ;;  %v1835_v51 = vpop.f32.mrb[62].mxu0 }
 0x176   : > { %v1946_v53 = vadd.f32 %v1945_v50, %v1944_v47  ;;  %v1947_v54 = vpop.f32.mrb[62].mxu1  ;;  %v1836_v55 = vpop.f32.mrb[63].mxu0  ;;  %2161 = vtanh.f32 %v1433_v52 }
 0x177   : > { %v1837_v56 = vadd.f32 %v1836_v55, %v1835_v51  ;;  %v1948_v57 = vpop.f32.mrb[63].mxu1  ;;  %v2156_v58 = vpop.eup %2155 }
 0x178   : > { %v1292_v59 = vadd.f32 %v1946_v53, %v1834_v49  ;;  %v1949_v60 = vadd.f32 %v1948_v57, %v1947_v54  ;;  %1494 = vst [vmem:[%s2412_s20 + $0xd0] sm:$0xff] %v2156_v58  ;;  %v2158_v61 = vpop.eup %2157 }
 0x179   : > { %1495 = vst [vmem:[%s2412_s20 + $0xd8] sm:$0xff] %v2158_v61 }
 0x17a   : > { %v1295_v62 = vadd.f32 %v1949_v60, %v1837_v56  ;;  %v1434_v63 = vadd.f32 %v2403_v45, %v1292_v59 }
 0x17c   : > { %2163 = vtanh.f32 %v1434_v63  ;;  %v1435_v0 = vadd.f32 %v2403_v45, %v1295_v62 }
 0x17e   : > { %v2160_v1 = vpop.eup %2159  ;;  %2165 = vtanh.f32 %v1435_v0 }
 0x17f   : > { %1496 = vst [vmem:[%s2412_s20 + $0xe0] sm:$0xff] %v2160_v1 }
 0x180   : > { %v2162_v2 = vpop.eup %2161 }
 0x181   : > { %1497 = vst [vmem:[%s2412_s20 + $0xe8] sm:$0xff] %v2162_v2 }
 0x186   : > { %v2164_v3 = vpop.eup %2163 }
 0x187   : > { %1498 = vst [vmem:[%s2412_s20 + $0xf0] sm:$0xff] %v2164_v3 }
 0x188   : > { %v2166_v4 = vpop.eup %2165 }
 0x189   : > { %1499 = vst [vmem:[%s2412_s20 + $0xf8] sm:$0xff] %v2166_v4 }
 0x18a PF: > { %s13_s14 = sadd.s32 1, %s2189_s14   ;;  %s2488_s12 = smov %s2185_s13 }
 0x18b   : > { %p10_p5 = scmp.ge.s32.totalorder %s13_s14, 6   ;;  %s2489_s13 = smov %s2491_s15 }
 0x18d   :  { %12 = sbr.rel (!%p10_p5) target bundleno = 2 (0x2), region = 76 }

</bundles_post_ra>
